<compile_context>
chip_gen: v7x
topology: tpu7x:2x2x1
jax: 0.10.0
libtpu: 0.0.40
codegen_flags: <defaults>
</compile_context>

<pallas_src>
import functools

import jax
import jax.numpy as jnp
from jax.experimental import pallas as pl
from jax.experimental.pallas import tpu as pltpu

N_EMBD = 384               # matches the module's n_embd constant
HIDDEN = 4 * N_EMBD        # 1536
H_CHUNK = 512              # hidden-dim fusion chunk; multiple of 256 (MXU)


def _round_up(x, m):
    return ((x + m - 1) // m) * m


def _ffn_kernel(x_ref, w1_ref, b1_ref, w2_ref, b2_ref, o_ref, acc_ref,
                *, hc, compute_dtype):
    """Fused FFN on one (tile_m, C) row tile.

    x_ref:   (tm, C)  input rows (cast to `compute_dtype` in-kernel)
    w1_ref:  (C, H)   first weight  (resident)
    b1_ref:  (1, H)   first bias    (f32, resident)
    w2_ref:  (H, C)   second weight (resident)
    b2_ref:  (1, C)   second bias   (f32, resident)
    o_ref:   (tm, C)  output tile
    acc_ref: (tm, C)  f32 VMEM accumulator scratch
    """
    H = w1_ref.shape[1]
    xb = x_ref[...].astype(compute_dtype)                 # in-kernel cast (VPU)

    # Fused GEMM1 -> bias/ReLU -> GEMM2, chunked over the hidden dimension.
    for idx, k0 in enumerate(range(0, H, hc)):            # static, unrolled
        k1 = min(k0 + hc, H)
        w1c = w1_ref[:, k0:k1].astype(compute_dtype)       # (C, hc)
        h = jnp.dot(xb, w1c, preferred_element_type=jnp.float32)
        h = jnp.maximum(h + b1_ref[:, k0:k1], 0.0)         # bias + ReLU in f32
        w2c = w2_ref[k0:k1, :].astype(compute_dtype)       # (hc, C)
        contrib = jnp.dot(h.astype(compute_dtype), w2c,
                          preferred_element_type=jnp.float32)
        if idx == 0:
            acc_ref[...] = contrib
        else:
            acc_ref[...] += contrib

    o_ref[...] = (acc_ref[...] + b2_ref[...]).astype(o_ref.dtype)


def _pick_tile_m(M, tm_max=512):
    """Row-tile size: single tile for small M, even 2-way split for mid-size M
    (keeps both v7x TensorCores busy), tm_max-row tiles for large M."""
    m16 = _round_up(M, 16)
    if m16 <= 256:
        return m16
    if m16 <= 2 * tm_max:
        return min(_round_up(pl.cdiv(M, 2), 16), tm_max)
    return tm_max


_single_buffer_ok = hasattr(pl, "Buffered")


def _resident_spec(shape, single_buffered):
    """BlockSpec for a weight/bias that is resident across the whole grid."""
    index_map = lambda i: (0,) * len(shape)
    if single_buffered:
        try:
            # Constant index_map => never re-DMA'd; single buffering halves its
            # VMEM footprint.
            return pl.BlockSpec(shape, index_map, pipeline_mode=pl.Buffered(1))
        except Exception:
            pass
    return pl.BlockSpec(shape, index_map)


def feedforward(x, w1, b1, w2, b2, *, compute_dtype=jnp.bfloat16, tm_max=512):
    """x: (..., C).  w1: (C, H), b1: (H,), w2: (H, C), b2: (C,).

    Returns an array of x's shape/dtype.  Matmuls run in `compute_dtype`
    (bf16 by default) with f32 accumulation on the MXU; the hidden activation
    is requantized to `compute_dtype` between the two GEMMs.  Pass weights
    already stored in bf16 to avoid any per-call cast traffic.
    """
    global _single_buffer_ok

    *lead, C = x.shape
    H = w1.shape[1]
    assert w1.shape == (C, H) and w2.shape == (H, C)
    assert b1.shape == (H,) and b2.shape == (C,)
    assert C % 128 == 0 and H % 128 == 0, "lane dims must be multiples of 128"

    M = 1
    for d in lead:
        M *= d
    x2d = x.reshape(M, C)
    b1_2d = b1.reshape(1, H).astype(jnp.float32)
    b2_2d = b2.reshape(1, C).astype(jnp.float32)

    tile_m = _pick_tile_m(M, tm_max)
    grid = (pl.cdiv(M, tile_m),)        # ragged last block handled by masking
    hc = min(H_CHUNK, H)

    x_bytes = jnp.dtype(x.dtype).itemsize
    cost = pl.CostEstimate(
        flops=4 * M * C * H,            # two GEMMs
        transcendentals=0,
        bytes_accessed=(M * C * x_bytes                       # x
                        + M * C * x_bytes                     # out
                        + C * H * jnp.dtype(w1.dtype).itemsize
                        + H * C * jnp.dtype(w2.dtype).itemsize
                        + (H + C) * 4),                       # biases (f32)
    )

    kernel = functools.partial(_ffn_kernel, hc=hc, compute_dtype=compute_dtype)

    def build(single_buffered):
        return pl.pallas_call(
            kernel,
            out_shape=jax.ShapeDtypeStruct((M, C), x.dtype),
            grid_spec=pltpu.PrefetchScalarGridSpec(
                num_scalar_prefetch=0,
                grid=grid,
                in_specs=[
                    pl.BlockSpec((tile_m, C), lambda i: (i, 0)),   # x row tile
                    _resident_spec((C, H), single_buffered),       # w1
                    _resident_spec((1, H), single_buffered),       # b1
                    _resident_spec((H, C), single_buffered),       # w2
                    _resident_spec((1, C), single_buffered),       # b2
                ],
                out_specs=pl.BlockSpec((tile_m, C), lambda i: (i, 0)),
                scratch_shapes=[pltpu.VMEM((tile_m, C), jnp.float32)],
            ),
            compiler_params=pltpu.CompilerParams(
                dimension_semantics=("parallel",),   # row tiles shard on v7x 2xTC
                vmem_limit_bytes=32 * 1024 * 1024,
            ),
            cost_estimate=cost,
        )

    try:
        out2d = build(_single_buffer_ok)(x2d, w1, b1_2d, w2, b2_2d)
    except Exception:
        if not _single_buffer_ok:
            raise
        # Installed Pallas rejected pipeline_mode=pl.Buffered(1); retry without.
        _single_buffer_ok = False
        out2d = build(False)(x2d, w1, b1_2d, w2, b2_2d)

    return out2d.reshape(x.shape)


# ----------------------------- references / tests -----------------------------

def _ref_feedforward_f32(x2d, w1, b1, w2, b2):
    h = jnp.maximum(x2d @ w1 + b1, 0.0)
    return h @ w2 + b2


def _ref_feedforward_mixed(x2d, w1, b1, w2, b2, compute_dtype=jnp.bfloat16):
    # Mirrors the kernel's precision contract: bf16 operands, f32 accumulation,
    # f32 bias + ReLU, bf16 re-quantized hidden activations.
    xc = x2d.astype(compute_dtype)
    h = jnp.dot(xc, w1.astype(compute_dtype), preferred_element_type=jnp.float32)
    h = jnp.maximum(h + b1.astype(jnp.float32), 0.0).astype(compute_dtype)
    y = jnp.dot(h, w2.astype(compute_dtype), preferred_element_type=jnp.float32)
    return (y + b2.astype(jnp.float32)).astype(x2d.dtype)


def _check(x, w1_bf16, b1, w2_bf16, b2, w1_f32, w2_f32):
    out = jax.block_until_ready(feedforward(x, w1_bf16, b1, w2_bf16, b2))
    assert out.shape == x.shape and out.dtype == x.dtype
    x2d = x.reshape(-1, x.shape[-1])
    out2d = out.reshape(-1, x.shape[-1])
    ref_mixed = _ref_feedforward_mixed(x2d, w1_f32, b1, w2_f32, b2)
    ref_f32 = _ref_feedforward_f32(x2d, w1_f32, b1, w2_f32, b2)
    assert jnp.allclose(out2d, ref_mixed, atol=1e-2, rtol=1e-2), \
        "mismatch vs mixed-precision reference"
    assert jnp.allclose(out2d, ref_f32, atol=5e-2, rtol=5e-2), \
        "mismatch vs f32 reference"


if __name__ == "__main__":
    key = jax.random.PRNGKey(0)
    k_w1, k_b1, k_w2, k_b2, k_x1, k_x2 = jax.random.split(key, 6)

    # Deterministic parameter init (uniform, like nn.Linear defaults).
    lim1 = 1.0 / (N_EMBD ** 0.5)
    lim2 = 1.0 / (HIDDEN ** 0.5)
    w1 = jax.random.uniform(k_w1, (N_EMBD, HIDDEN), jnp.float32, -lim1, lim1)
    b1 = jax.random.uniform(k_b1, (HIDDEN,), jnp.float32, -lim1, lim1)
    w2 = jax.random.uniform(k_w2, (HIDDEN, N_EMBD), jnp.float32, -lim2, lim2)
    b2 = jax.random.uniform(k_b2, (N_EMBD,), jnp.float32, -lim2, lim2)

    # Cast weights to bf16 ONCE at init (no per-call weight-cast HBM traffic).
    w1_b = w1.astype(jnp.bfloat16)
    w2_b = w2.astype(jnp.bfloat16)

    # Small case (B, T, C) = (2, 8, 384): single-tile grid.
    x1 = jax.random.normal(k_x1, (2, 8, N_EMBD), dtype=jnp.float32)
    _check(x1, w1_b, b1, w2_b, b2, w1, w2)

    # Ragged multi-tile case: M = 300 rows -> tile_m = 160, grid = 2, with a
    # masked partial last block (no wrapper-side padding or output slicing).
    x2 = jax.random.normal(k_x2, (2, 150, N_EMBD), dtype=jnp.float32)
    _check(x2, w1_b, b1, w2_b, b2, w1, w2)

    print("KERNEL_OK")
</pallas_src>

<mosaic_0001>
module attributes {stable_mosaic.version = 11 : i64} {
  func.func @_ffn_kernel(%arg0: i32, %arg1: memref<16x384xf32, #tpu.memory_space<vmem>>, %arg2: memref<384x1536xbf16, #tpu.memory_space<vmem>>, %arg3: memref<1x1536xf32, #tpu.memory_space<vmem>>, %arg4: memref<1536x384xbf16, #tpu.memory_space<vmem>>, %arg5: memref<1x384xf32, #tpu.memory_space<vmem>>, %arg6: memref<16x384xf32, #tpu.memory_space<vmem>>, %arg7: memref<16x384xf32, #tpu.memory_space<vmem>>) attributes {dimension_semantics = [#tpu.dimension_semantics<parallel>], iteration_bounds = array<i64: 1>, scalar_prefetch = 0 : i64, scratch_operands = 1 : i64, tpu.core_type = #tpu.core_type<tc>, window_params = [{transform_indices = @transform_0, window_bounds = array<i64: 16, 384>}, {pipeline_mode = #tpu.pipeline_mode<synchronous>, transform_indices = @transform_1, window_bounds = array<i64: 384, 1536>}, {pipeline_mode = #tpu.pipeline_mode<synchronous>, transform_indices = @transform_2, window_bounds = array<i64: 1, 1536>}, {pipeline_mode = #tpu.pipeline_mode<synchronous>, transform_indices = @transform_3, window_bounds = array<i64: 1536, 384>}, {pipeline_mode = #tpu.pipeline_mode<synchronous>, transform_indices = @transform_4, window_bounds = array<i64: 1, 384>}, {transform_indices = @transform_5, window_bounds = array<i64: 16, 384>}]} {
    %c0 = arith.constant 0 : index
    %c0_0 = arith.constant 0 : index
    %0 = vector.load %arg1[%c0, %c0_0] : memref<16x384xf32, #tpu.memory_space<vmem>>, vector<16x384xf32>
    %1 = arith.truncf %0 : vector<16x384xf32> to vector<16x384xbf16>
    %c0_1 = arith.constant 0 : index
    %c0_2 = arith.constant 0 : index
    %2 = vector.load %arg2[%c0_1, %c0_2] : memref<384x1536xbf16, #tpu.memory_space<vmem>>, vector<384x512xbf16>
    %cst = arith.constant dense<0.000000e+00> : vector<16x512xf32>
    %3 = tpu.matmul %1, %2, %cst {dimension_numbers = #tpu.dot_dimension_numbers<[1], [0], [0], [1], [0, 0, 1, 1], [], []>} : vector<16x384xbf16>, vector<384x512xbf16>, vector<16x512xf32> -> vector<16x512xf32>
    %c0_3 = arith.constant 0 : index
    %c0_4 = arith.constant 0 : index
    %4 = vector.load %arg3[%c0_3, %c0_4] : memref<1x1536xf32, #tpu.memory_space<vmem>>, vector<1x512xf32>
    %5 = vector.broadcast %4 : vector<1x512xf32> to vector<16x512xf32>
    %6 = arith.addf %3, %5 : vector<16x512xf32>
    %cst_5 = arith.constant 0.000000e+00 : f32
    %7 = vector.broadcast %cst_5 : f32 to vector<16x512xf32>
    %8 = arith.maximumf %6, %7 : vector<16x512xf32>
    %c0_6 = arith.constant 0 : index
    %c0_7 = arith.constant 0 : index
    %9 = vector.load %arg4[%c0_6, %c0_7] : memref<1536x384xbf16, #tpu.memory_space<vmem>>, vector<512x384xbf16>
    %10 = arith.truncf %8 : vector<16x512xf32> to vector<16x512xbf16>
    %cst_8 = arith.constant dense<0.000000e+00> : vector<16x384xf32>
    %11 = tpu.matmul %10, %9, %cst_8 {dimension_numbers = #tpu.dot_dimension_numbers<[1], [0], [0], [1], [0, 0, 1, 1], [], []>} : vector<16x512xbf16>, vector<512x384xbf16>, vector<16x384xf32> -> vector<16x384xf32>
    %c0_9 = arith.constant 0 : index
    %c0_10 = arith.constant 0 : index
    %12 = vector.load %arg7[%c0_9, %c0_10] : memref<16x384xf32, #tpu.memory_space<vmem>>, vector<16x384xf32>
    tpu.vector_store %arg7[%c0_9, %c0_10], %11 {strides = array<i32>} : memref<16x384xf32, #tpu.memory_space<vmem>>, vector<16x384xf32>,
    %c0_11 = arith.constant 0 : index
    %c512 = arith.constant 512 : index
    %13 = vector.load %arg2[%c0_11, %c512] : memref<384x1536xbf16, #tpu.memory_space<vmem>>, vector<384x512xbf16>
    %cst_12 = arith.constant dense<0.000000e+00> : vector<16x512xf32>
    %14 = tpu.matmul %1, %13, %cst_12 {dimension_numbers = #tpu.dot_dimension_numbers<[1], [0], [0], [1], [0, 0, 1, 1], [], []>} : vector<16x384xbf16>, vector<384x512xbf16>, vector<16x512xf32> -> vector<16x512xf32>
    %c0_13 = arith.constant 0 : index
    %c512_14 = arith.constant 512 : index
    %15 = vector.load %arg3[%c0_13, %c512_14] : memref<1x1536xf32, #tpu.memory_space<vmem>>, vector<1x512xf32>
    %16 = vector.broadcast %15 : vector<1x512xf32> to vector<16x512xf32>
    %17 = arith.addf %14, %16 : vector<16x512xf32>
    %cst_15 = arith.constant 0.000000e+00 : f32
    %18 = vector.broadcast %cst_15 : f32 to vector<16x512xf32>
    %19 = arith.maximumf %17, %18 : vector<16x512xf32>
    %c512_16 = arith.constant 512 : index
    %c0_17 = arith.constant 0 : index
    %20 = vector.load %arg4[%c512_16, %c0_17] : memref<1536x384xbf16, #tpu.memory_space<vmem>>, vector<512x384xbf16>
    %21 = arith.truncf %19 : vector<16x512xf32> to vector<16x512xbf16>
    %cst_18 = arith.constant dense<0.000000e+00> : vector<16x384xf32>
    %22 = tpu.matmul %21, %20, %cst_18 {dimension_numbers = #tpu.dot_dimension_numbers<[1], [0], [0], [1], [0, 0, 1, 1], [], []>} : vector<16x512xbf16>, vector<512x384xbf16>, vector<16x384xf32> -> vector<16x384xf32>
    %c0_19 = arith.constant 0 : index
    %c0_20 = arith.constant 0 : index
    %23 = vector.load %arg7[%c0_19, %c0_20] : memref<16x384xf32, #tpu.memory_space<vmem>>, vector<16x384xf32>
    %24 = arith.addf %23, %22 : vector<16x384xf32>
    %c0_21 = arith.constant 0 : index
    %c0_22 = arith.constant 0 : index
    %25 = vector.load %arg7[%c0_21, %c0_22] : memref<16x384xf32, #tpu.memory_space<vmem>>, vector<16x384xf32>
    tpu.vector_store %arg7[%c0_21, %c0_22], %24 {strides = array<i32>} : memref<16x384xf32, #tpu.memory_space<vmem>>, vector<16x384xf32>,
    %c0_23 = arith.constant 0 : index
    %c1024 = arith.constant 1024 : index
    %26 = vector.load %arg2[%c0_23, %c1024] : memref<384x1536xbf16, #tpu.memory_space<vmem>>, vector<384x512xbf16>
    %cst_24 = arith.constant dense<0.000000e+00> : vector<16x512xf32>
    %27 = tpu.matmul %1, %26, %cst_24 {dimension_numbers = #tpu.dot_dimension_numbers<[1], [0], [0], [1], [0, 0, 1, 1], [], []>} : vector<16x384xbf16>, vector<384x512xbf16>, vector<16x512xf32> -> vector<16x512xf32>
    %c0_25 = arith.constant 0 : index
    %c1024_26 = arith.constant 1024 : index
    %28 = vector.load %arg3[%c0_25, %c1024_26] : memref<1x1536xf32, #tpu.memory_space<vmem>>, vector<1x512xf32>
    %29 = vector.broadcast %28 : vector<1x512xf32> to vector<16x512xf32>
    %30 = arith.addf %27, %29 : vector<16x512xf32>
    %cst_27 = arith.constant 0.000000e+00 : f32
    %31 = vector.broadcast %cst_27 : f32 to vector<16x512xf32>
    %32 = arith.maximumf %30, %31 : vector<16x512xf32>
    %c1024_28 = arith.constant 1024 : index
    %c0_29 = arith.constant 0 : index
    %33 = vector.load %arg4[%c1024_28, %c0_29] : memref<1536x384xbf16, #tpu.memory_space<vmem>>, vector<512x384xbf16>
    %34 = arith.truncf %32 : vector<16x512xf32> to vector<16x512xbf16>
    %cst_30 = arith.constant dense<0.000000e+00> : vector<16x384xf32>
    %35 = tpu.matmul %34, %33, %cst_30 {dimension_numbers = #tpu.dot_dimension_numbers<[1], [0], [0], [1], [0, 0, 1, 1], [], []>} : vector<16x512xbf16>, vector<512x384xbf16>, vector<16x384xf32> -> vector<16x384xf32>
    %c0_31 = arith.constant 0 : index
    %c0_32 = arith.constant 0 : index
    %36 = vector.load %arg7[%c0_31, %c0_32] : memref<16x384xf32, #tpu.memory_space<vmem>>, vector<16x384xf32>
    %37 = arith.addf %36, %35 : vector<16x384xf32>
    %c0_33 = arith.constant 0 : index
    %c0_34 = arith.constant 0 : index
    %38 = vector.load %arg7[%c0_33, %c0_34] : memref<16x384xf32, #tpu.memory_space<vmem>>, vector<16x384xf32>
    tpu.vector_store %arg7[%c0_33, %c0_34], %37 {strides = array<i32>} : memref<16x384xf32, #tpu.memory_space<vmem>>, vector<16x384xf32>,
    %c0_35 = arith.constant 0 : index
    %c0_36 = arith.constant 0 : index
    %39 = vector.load %arg7[%c0_35, %c0_36] : memref<16x384xf32, #tpu.memory_space<vmem>>, vector<16x384xf32>
    %c0_37 = arith.constant 0 : index
    %c0_38 = arith.constant 0 : index
    %40 = vector.load %arg5[%c0_37, %c0_38] : memref<1x384xf32, #tpu.memory_space<vmem>>, vector<1x384xf32>
    %41 = vector.broadcast %40 : vector<1x384xf32> to vector<16x384xf32>
    %42 = arith.addf %39, %41 : vector<16x384xf32>
    %c0_39 = arith.constant 0 : index
    %c0_40 = arith.constant 0 : index
    %43 = vector.load %arg6[%c0_39, %c0_40] : memref<16x384xf32, #tpu.memory_space<vmem>>, vector<16x384xf32>
    tpu.vector_store %arg6[%c0_39, %c0_40], %42 {strides = array<i32>} : memref<16x384xf32, #tpu.memory_space<vmem>>, vector<16x384xf32>,
    return
  }
  func.func @transform_0(%arg0: i32) -> (i32, i32) {
    %c0_i32 = arith.constant 0 : i32
    %c0_i32_0 = arith.constant 0 : i32
    return %arg0, %c0_i32 : i32, i32
  }
  func.func @transform_1(%arg0: i32) -> (i32, i32) {
    %c0_i32 = arith.constant 0 : i32
    %c0_i32_0 = arith.constant 0 : i32
    %c0_i32_1 = arith.constant 0 : i32
    return %c0_i32, %c0_i32_0 : i32, i32
  }
  func.func @transform_2(%arg0: i32) -> (i32, i32) {
    %c0_i32 = arith.constant 0 : i32
    %c0_i32_0 = arith.constant 0 : i32
    %c0_i32_1 = arith.constant 0 : i32
    return %c0_i32, %c0_i32_0 : i32, i32
  }
  func.func @transform_3(%arg0: i32) -> (i32, i32) {
    %c0_i32 = arith.constant 0 : i32
    %c0_i32_0 = arith.constant 0 : i32
    %c0_i32_1 = arith.constant 0 : i32
    return %c0_i32, %c0_i32_0 : i32, i32
  }
  func.func @transform_4(%arg0: i32) -> (i32, i32) {
    %c0_i32 = arith.constant 0 : i32
    %c0_i32_0 = arith.constant 0 : i32
    %c0_i32_1 = arith.constant 0 : i32
    return %c0_i32, %c0_i32_0 : i32, i32
  }
  func.func @transform_5(%arg0: i32) -> (i32, i32) {
    %c0_i32 = arith.constant 0 : i32
    %c0_i32_0 = arith.constant 0 : i32
    return %arg0, %c0_i32 : i32, i32
  }
}

module attributes {stable_mosaic.version = 11 : i64} {
  func.func @_ffn_kernel(%arg0: i32, %arg1: memref<16x384xf32, #tpu.memory_space<vmem>>, %arg2: memref<384x1536xbf16, #tpu.memory_space<vmem>>, %arg3: memref<1x1536xf32, #tpu.memory_space<vmem>>, %arg4: memref<1536x384xbf16, #tpu.memory_space<vmem>>, %arg5: memref<1x384xf32, #tpu.memory_space<vmem>>, %arg6: memref<16x384xf32, #tpu.memory_space<vmem>>, %arg7: memref<16x384xf32, #tpu.memory_space<vmem>>) attributes {dimension_semantics = [#tpu.dimension_semantics<parallel>], iteration_bounds = array<i64: 1>, scalar_prefetch = 0 : i64, scratch_operands = 1 : i64, tpu.core_type = #tpu.core_type<tc>, window_params = [{transform_indices = @transform_0, window_bounds = array<i64: 16, 384>}, {pipeline_mode = #tpu.pipeline_mode<synchronous>, transform_indices = @transform_1, window_bounds = array<i64: 384, 1536>}, {pipeline_mode = #tpu.pipeline_mode<synchronous>, transform_indices = @transform_2, window_bounds = array<i64: 1, 1536>}, {pipeline_mode = #tpu.pipeline_mode<synchronous>, transform_indices = @transform_3, window_bounds = array<i64: 1536, 384>}, {pipeline_mode = #tpu.pipeline_mode<synchronous>, transform_indices = @transform_4, window_bounds = array<i64: 1, 384>}, {transform_indices = @transform_5, window_bounds = array<i64: 16, 384>}]} {
    %c0 = arith.constant 0 : index
    %c0_0 = arith.constant 0 : index
    %0 = vector.load %arg1[%c0, %c0_0] : memref<16x384xf32, #tpu.memory_space<vmem>>, vector<16x384xf32>
    %1 = arith.truncf %0 : vector<16x384xf32> to vector<16x384xbf16>
    %c0_1 = arith.constant 0 : index
    %c0_2 = arith.constant 0 : index
    %2 = vector.load %arg2[%c0_1, %c0_2] : memref<384x1536xbf16, #tpu.memory_space<vmem>>, vector<384x512xbf16>
    %cst = arith.constant dense<0.000000e+00> : vector<16x512xf32>
    %3 = tpu.matmul %1, %2, %cst {dimension_numbers = #tpu.dot_dimension_numbers<[1], [0], [0], [1], [0, 0, 1, 1], [], []>} : vector<16x384xbf16>, vector<384x512xbf16>, vector<16x512xf32> -> vector<16x512xf32>
    %c0_3 = arith.constant 0 : index
    %c0_4 = arith.constant 0 : index
    %4 = vector.load %arg3[%c0_3, %c0_4] : memref<1x1536xf32, #tpu.memory_space<vmem>>, vector<1x512xf32>
    %5 = vector.broadcast %4 : vector<1x512xf32> to vector<16x512xf32>
    %6 = arith.addf %3, %5 : vector<16x512xf32>
    %cst_5 = arith.constant 0.000000e+00 : f32
    %7 = vector.broadcast %cst_5 : f32 to vector<16x512xf32>
    %8 = arith.maximumf %6, %7 : vector<16x512xf32>
    %c0_6 = arith.constant 0 : index
    %c0_7 = arith.constant 0 : index
    %9 = vector.load %arg4[%c0_6, %c0_7] : memref<1536x384xbf16, #tpu.memory_space<vmem>>, vector<512x384xbf16>
    %10 = arith.truncf %8 : vector<16x512xf32> to vector<16x512xbf16>
    %cst_8 = arith.constant dense<0.000000e+00> : vector<16x384xf32>
    %11 = tpu.matmul %10, %9, %cst_8 {dimension_numbers = #tpu.dot_dimension_numbers<[1], [0], [0], [1], [0, 0, 1, 1], [], []>} : vector<16x512xbf16>, vector<512x384xbf16>, vector<16x384xf32> -> vector<16x384xf32>
    %c0_9 = arith.constant 0 : index
    %c0_10 = arith.constant 0 : index
    %12 = vector.load %arg7[%c0_9, %c0_10] : memref<16x384xf32, #tpu.memory_space<vmem>>, vector<16x384xf32>
    tpu.vector_store %arg7[%c0_9, %c0_10], %11 {strides = array<i32>} : memref<16x384xf32, #tpu.memory_space<vmem>>, vector<16x384xf32>,
    %c0_11 = arith.constant 0 : index
    %c512 = arith.constant 512 : index
    %13 = vector.load %arg2[%c0_11, %c512] : memref<384x1536xbf16, #tpu.memory_space<vmem>>, vector<384x512xbf16>
    %cst_12 = arith.constant dense<0.000000e+00> : vector<16x512xf32>
    %14 = tpu.matmul %1, %13, %cst_12 {dimension_numbers = #tpu.dot_dimension_numbers<[1], [0], [0], [1], [0, 0, 1, 1], [], []>} : vector<16x384xbf16>, vector<384x512xbf16>, vector<16x512xf32> -> vector<16x512xf32>
    %c0_13 = arith.constant 0 : index
    %c512_14 = arith.constant 512 : index
    %15 = vector.load %arg3[%c0_13, %c512_14] : memref<1x1536xf32, #tpu.memory_space<vmem>>, vector<1x512xf32>
    %16 = vector.broadcast %15 : vector<1x512xf32> to vector<16x512xf32>
    %17 = arith.addf %14, %16 : vector<16x512xf32>
    %cst_15 = arith.constant 0.000000e+00 : f32
    %18 = vector.broadcast %cst_15 : f32 to vector<16x512xf32>
    %19 = arith.maximumf %17, %18 : vector<16x512xf32>
    %c512_16 = arith.constant 512 : index
    %c0_17 = arith.constant 0 : index
    %20 = vector.load %arg4[%c512_16, %c0_17] : memref<1536x384xbf16, #tpu.memory_space<vmem>>, vector<512x384xbf16>
    %21 = arith.truncf %19 : vector<16x512xf32> to vector<16x512xbf16>
    %cst_18 = arith.constant dense<0.000000e+00> : vector<16x384xf32>
    %22 = tpu.matmul %21, %20, %cst_18 {dimension_numbers = #tpu.dot_dimension_numbers<[1], [0], [0], [1], [0, 0, 1, 1], [], []>} : vector<16x512xbf16>, vector<512x384xbf16>, vector<16x384xf32> -> vector<16x384xf32>
    %c0_19 = arith.constant 0 : index
    %c0_20 = arith.constant 0 : index
    %23 = vector.load %arg7[%c0_19, %c0_20] : memref<16x384xf32, #tpu.memory_space<vmem>>, vector<16x384xf32>
    %24 = arith.addf %23, %22 : vector<16x384xf32>
    %c0_21 = arith.constant 0 : index
    %c0_22 = arith.constant 0 : index
    %25 = vector.load %arg7[%c0_21, %c0_22] : memref<16x384xf32, #tpu.memory_space<vmem>>, vector<16x384xf32>
    tpu.vector_store %arg7[%c0_21, %c0_22], %24 {strides = array<i32>} : memref<16x384xf32, #tpu.memory_space<vmem>>, vector<16x384xf32>,
    %c0_23 = arith.constant 0 : index
    %c1024 = arith.constant 1024 : index
    %26 = vector.load %arg2[%c0_23, %c1024] : memref<384x1536xbf16, #tpu.memory_space<vmem>>, vector<384x512xbf16>
    %cst_24 = arith.constant dense<0.000000e+00> : vector<16x512xf32>
    %27 = tpu.matmul %1, %26, %cst_24 {dimension_numbers = #tpu.dot_dimension_numbers<[1], [0], [0], [1], [0, 0, 1, 1], [], []>} : vector<16x384xbf16>, vector<384x512xbf16>, vector<16x512xf32> -> vector<16x512xf32>
    %c0_25 = arith.constant 0 : index
    %c1024_26 = arith.constant 1024 : index
    %28 = vector.load %arg3[%c0_25, %c1024_26] : memref<1x1536xf32, #tpu.memory_space<vmem>>, vector<1x512xf32>
    %29 = vector.broadcast %28 : vector<1x512xf32> to vector<16x512xf32>
    %30 = arith.addf %27, %29 : vector<16x512xf32>
    %cst_27 = arith.constant 0.000000e+00 : f32
    %31 = vector.broadcast %cst_27 : f32 to vector<16x512xf32>
    %32 = arith.maximumf %30, %31 : vector<16x512xf32>
    %c1024_28 = arith.constant 1024 : index
    %c0_29 = arith.constant 0 : index
    %33 = vector.load %arg4[%c1024_28, %c0_29] : memref<1536x384xbf16, #tpu.memory_space<vmem>>, vector<512x384xbf16>
    %34 = arith.truncf %32 : vector<16x512xf32> to vector<16x512xbf16>
    %cst_30 = arith.constant dense<0.000000e+00> : vector<16x384xf32>
    %35 = tpu.matmul %34, %33, %cst_30 {dimension_numbers = #tpu.dot_dimension_numbers<[1], [0], [0], [1], [0, 0, 1, 1], [], []>} : vector<16x512xbf16>, vector<512x384xbf16>, vector<16x384xf32> -> vector<16x384xf32>
    %c0_31 = arith.constant 0 : index
    %c0_32 = arith.constant 0 : index
    %36 = vector.load %arg7[%c0_31, %c0_32] : memref<16x384xf32, #tpu.memory_space<vmem>>, vector<16x384xf32>
    %37 = arith.addf %36, %35 : vector<16x384xf32>
    %c0_33 = arith.constant 0 : index
    %c0_34 = arith.constant 0 : index
    %38 = vector.load %arg7[%c0_33, %c0_34] : memref<16x384xf32, #tpu.memory_space<vmem>>, vector<16x384xf32>
    tpu.vector_store %arg7[%c0_33, %c0_34], %37 {strides = array<i32>} : memref<16x384xf32, #tpu.memory_space<vmem>>, vector<16x384xf32>,
    %c0_35 = arith.constant 0 : index
    %c0_36 = arith.constant 0 : index
    %39 = vector.load %arg7[%c0_35, %c0_36] : memref<16x384xf32, #tpu.memory_space<vmem>>, vector<16x384xf32>
    %c0_37 = arith.constant 0 : index
    %c0_38 = arith.constant 0 : index
    %40 = vector.load %arg5[%c0_37, %c0_38] : memref<1x384xf32, #tpu.memory_space<vmem>>, vector<1x384xf32>
    %41 = vector.broadcast %40 : vector<1x384xf32> to vector<16x384xf32>
    %42 = arith.addf %39, %41 : vector<16x384xf32>
    %c0_39 = arith.constant 0 : index
    %c0_40 = arith.constant 0 : index
    %43 = vector.load %arg6[%c0_39, %c0_40] : memref<16x384xf32, #tpu.memory_space<vmem>>, vector<16x384xf32>
    tpu.vector_store %arg6[%c0_39, %c0_40], %42 {strides = array<i32>} : memref<16x384xf32, #tpu.memory_space<vmem>>, vector<16x384xf32>,
    return
  }
  func.func @transform_0(%arg0: i32) -> (i32, i32) {
    %c0_i32 = arith.constant 0 : i32
    %c0_i32_0 = arith.constant 0 : i32
    return %arg0, %c0_i32 : i32, i32
  }
  func.func @transform_1(%arg0: i32) -> (i32, i32) {
    %c0_i32 = arith.constant 0 : i32
    %c0_i32_0 = arith.constant 0 : i32
    %c0_i32_1 = arith.constant 0 : i32
    return %c0_i32, %c0_i32_0 : i32, i32
  }
  func.func @transform_2(%arg0: i32) -> (i32, i32) {
    %c0_i32 = arith.constant 0 : i32
    %c0_i32_0 = arith.constant 0 : i32
    %c0_i32_1 = arith.constant 0 : i32
    return %c0_i32, %c0_i32_0 : i32, i32
  }
  func.func @transform_3(%arg0: i32) -> (i32, i32) {
    %c0_i32 = arith.constant 0 : i32
    %c0_i32_0 = arith.constant 0 : i32
    %c0_i32_1 = arith.constant 0 : i32
    return %c0_i32, %c0_i32_0 : i32, i32
  }
  func.func @transform_4(%arg0: i32) -> (i32, i32) {
    %c0_i32 = arith.constant 0 : i32
    %c0_i32_0 = arith.constant 0 : i32
    %c0_i32_1 = arith.constant 0 : i32
    return %c0_i32, %c0_i32_0 : i32, i32
  }
  func.func @transform_5(%arg0: i32) -> (i32, i32) {
    %c0_i32 = arith.constant 0 : i32
    %c0_i32_0 = arith.constant 0 : i32
    return %arg0, %c0_i32 : i32, i32
  }
}

</mosaic_0001>

<bundles_post_ra>
// kernel: tpu_custom_call.1
= control target key start
LH: loop header
LB: loop body
LE: loop exit
PB: predicated region body
PF: predicated region fallthrough
CT: control target
= control target key end

     0   :  { %10 = vsyncpa [#allocation4], 0  ;;  %s6912_s0 = inlined_call_operand.hbm [shape: f32[16,384], index: 0, kind: input, shape index: {}]   ;;  %s6913_s1 = inlined_call_operand.hbm [shape: bf16[384,1536], index: 1, kind: input, shape index: {}]   ;;  %s6914_s2 = inlined_call_operand.hbm [shape: f32[1,1536], index: 2, kind: input, shape index: {}]   ;;  %s6915_s3 = inlined_call_operand.hbm [shape: bf16[1536,384], index: 3, kind: input, shape index: {}]   ;;  %s6916_s4 = inlined_call_operand.hbm [shape: f32[1,384], index: 4, kind: input, shape index: {}]   ;;  %s6917_s5 = inlined_call_operand.hbm [shape: f32[16,384], index: 5, kind: output, shape index: {}]  }
   0x1   :  { %11 = vsyncpa [#allocation7], 0 }
   0x2   :  { %12 = vsyncpa [#allocation10], 0 }
   0x3   :  { %13 = vsyncpa [#allocation5], 0  ;;  %s6706_s18 = smov [#allocation6]   ;;  %s6566_s22 = scalar_lea.hbm %s6913_s1, 36864 }
   0x4   :  { %s31_s19 = sshll.u32 %s6706_s18, 4  ;;  %p6567_p0 = scmp.ne.s32.totalorder %s6913_s1, %s6566_s22  ;;  %s32_s19 = int_to_ptr.vmem [resolvable:$true] %s31_s19 }
   0x5   :  { %p6570_p1 = scmp.lt.u32.totalorder %s6566_s22, %s6913_s1 }
   0x7   :  { %p6572_p2 = pnand %p6570_p1, %p6567_p0 }
   0x9   :  { %6575 = shalt.err (!%p6572_p2)
}
   0xa   :  { %s6576_s27 = scalar_lea.vmem %s32_s19, 36864  ;;  %p6581_p4 = scmp.lt.s32.totalorder %s32_s19, %s32_s19 }
   0xb   :  { %p6577_p3 = scmp.ne.s32.totalorder %s32_s19, %s6576_s27  ;;  %p6582_p5 = scmp.lt.s32.totalorder %s6576_s27, %s6576_s27 }
   0xd   :  { %p6583_p6 = por %p6582_p5, %p6581_p4 }
   0xf   :  { %p6584_p7 = pnand %p6583_p6, %p6577_p3 }
  0x11   :  { %6587 = shalt.err (!%p6584_p7)
}
  0x12   :  { %s6707_s28 = smov 768   ;;  %s6708_s29 = smov 48  }
  0x13   :  { %37 = dma.hbm_to_vmem [thread:$0]  %s6913_s1, 36864, %s32_s19, [#allocation7], %s6707_s28, %s6707_s28, %s6708_s29  }
  0x14   :  { %s6709_s7 = smov [#allocation9]   ;;  %s6588_s11 = scalar_lea.hbm %s6915_s3, 36864 }
  0x15   :  { %s53_s8 = sshll.u32 %s6709_s7, 4  ;;  %p6589_p8 = scmp.ne.s32.totalorder %s6915_s3, %s6588_s11  ;;  %s54_s8 = int_to_ptr.vmem [resolvable:$true] %s53_s8 }
  0x16   :  { %p6592_p9 = scmp.lt.u32.totalorder %s6588_s11, %s6915_s3 }
  0x18   :  { %p6594_p10 = pnand %p6592_p9, %p6589_p8 }
  0x1a   :  { %6597 = shalt.err (!%p6594_p10)
}
  0x1b   :  { %s6598_s16 = scalar_lea.vmem %s54_s8, 36864  ;;  %p6603_p12 = scmp.lt.s32.totalorder %s54_s8, %s54_s8 }
  0x1c   :  { %p6599_p11 = scmp.ne.s32.totalorder %s54_s8, %s6598_s16  ;;  %p6604_p13 = scmp.lt.s32.totalorder %s6598_s16, %s6598_s16 }
  0x1e   :  { %p6605_p0 = por %p6604_p13, %p6603_p12 }
  0x20   :  { %p6606_p1 = pnand %p6605_p0, %p6599_p11 }
  0x22   :  { %6609 = shalt.err (!%p6606_p1)
}
  0x23   :  { %s6710_s1 = smov 192   ;;  %s6711_s17 = smov 12  }
  0x24   :  { %59 = dma.hbm_to_vmem [thread:$0]  %s6915_s3, 36864, %s54_s8, [#allocation10], %s6710_s1, %s6710_s1, %s6711_s17  }
  0x25   :  { %s6712_s20 = smov [#allocation3]   ;;  %s6610_s24 = scalar_lea.hbm %s6912_s0, 768 }
  0x26   :  { %s19_s21 = sshll.u32 %s6712_s20, 4  ;;  %p6611_p2 = scmp.ne.s32.totalorder %s6912_s0, %s6610_s24  ;;  %s20_s21 = int_to_ptr.vmem [resolvable:$true] %s19_s21 }
  0x27   :  { %p6614_p3 = scmp.lt.u32.totalorder %s6610_s24, %s6912_s0 }
  0x29   :  { %p6616_p4 = pnand %p6614_p3, %p6611_p2 }
  0x2b   :  { %6619 = shalt.err (!%p6616_p4)
}
  0x2c   :  { %s6620_s29 = scalar_lea.vmem %s20_s21, 768  ;;  %p6625_p6 = scmp.lt.s32.totalorder %s20_s21, %s20_s21 }
  0x2d   :  { %p6621_p5 = scmp.ne.s32.totalorder %s20_s21, %s6620_s29  ;;  %p6626_p7 = scmp.lt.s32.totalorder %s6620_s29, %s6620_s29 }
  0x2f   :  { %p6627_p8 = por %p6626_p7, %p6625_p6 }
  0x31   :  { %p6628_p9 = pnand %p6627_p8, %p6621_p5 }
  0x33   :  { %6631 = shalt.err (!%p6628_p9)
}
  0x34   :  { %s6713_s3 = smov 384   ;;  %s6714_s30 = smov 24  }
  0x35   :  { %25 = dma.hbm_to_vmem [thread:$0]  %s6912_s0, 768, %s20_s21, [#allocation4], %s6713_s3, %s6713_s3, %s6714_s30  }
  0x36   :  { %s6715_s8 = smov [#allocation8]   ;;  %s6716_s10 = smov [#allocation11]  }
  0x37   :  { %s44_s9 = sshll.u32 %s6715_s8, 4  ;;  %s66_s11 = sshll.u32 %s6716_s10, 4  ;;  %s45_s9 = int_to_ptr.vmem [resolvable:$true] %s44_s9  ;;  %s67_s11 = int_to_ptr.vmem [resolvable:$true] %s66_s11 }
  0x38   :  { %s6632_s14 = scalar_lea.hbm %s6914_s2, 192 }
  0x39   :  { %p6633_p10 = scmp.ne.s32.totalorder %s6914_s2, %s6632_s14  ;;  %p6636_p11 = scmp.lt.u32.totalorder %s6632_s14, %s6914_s2 }
  0x3b   :  { %p6638_p12 = pnand %p6636_p11, %p6633_p10 }
  0x3d   :  { %6641 = shalt.err (!%p6638_p12)
}
  0x3e   :  { %s6642_s0 = scalar_lea.vmem %s45_s9, 192  ;;  %p6647_p0 = scmp.lt.s32.totalorder %s45_s9, %s45_s9 }
  0x3f   :  { %p6643_p13 = scmp.ne.s32.totalorder %s45_s9, %s6642_s0  ;;  %p6648_p1 = scmp.lt.s32.totalorder %s6642_s0, %s6642_s0 }
  0x41   :  { %p6649_p2 = por %p6648_p1, %p6647_p0 }
  0x43   :  { %p6650_p3 = pnand %p6649_p2, %p6643_p13 }
  0x45   :  { %6653 = shalt.err (!%p6650_p3)
}
  0x46   :  { %47 = dma.hbm_to_vmem [thread:$0]  %s6914_s2, 192, %s45_s9, [#allocation7]  }
  0x47   :  { %s6654_s22 = scalar_lea.hbm %s6916_s4, 48 }
  0x48   :  { %p6655_p4 = scmp.ne.s32.totalorder %s6916_s4, %s6654_s22  ;;  %p6658_p5 = scmp.lt.u32.totalorder %s6654_s22, %s6916_s4 }
  0x4a   :  { %p6660_p6 = pnand %p6658_p5, %p6655_p4 }
  0x4c   :  { %6663 = shalt.err (!%p6660_p6)
}
  0x4d   :  { %s6664_s27 = scalar_lea.vmem %s67_s11, 48  ;;  %s6668_s28 = scalar_lea.vmem %s67_s11, 64 }
  0x4e   :  { %p6665_p7 = scmp.ne.s32.totalorder %s67_s11, %s6664_s27  ;;  %p6669_p8 = scmp.lt.s32.totalorder %s67_s11, %s67_s11 }
  0x4f   :  { %p6670_p9 = scmp.lt.s32.totalorder %s6668_s28, %s6664_s27 }
  0x51   :  { %p6671_p10 = por %p6670_p9, %p6669_p8 }
  0x53   :  { %p6672_p11 = pnand %p6671_p10, %p6665_p7 }
  0x55   :  { %6675 = shalt.err (!%p6672_p11)
}
  0x56   :  { %69 = dma.hbm_to_vmem [thread:$0]  %s6916_s4, 48, %s67_s11, [#allocation10]  }
  0x57   :  { %6698 = dma.done.wait [#allocation4], 768  }
  0x58   :  { %6699 = vsyncadd [#allocation4], 4294966528 }
  0x59   :  { %6700 = dma.done.wait [#allocation7], 37056  }
  0x5a   :  { %6701 = vsyncadd [#allocation7], 4294930240 }
  0x5b   :  { %6702 = dma.done.wait [#allocation10], 36912  }
  0x5c   :  { %6703 = vsyncadd [#allocation10], 4294930384  ;;  %v5750_v0 = vld [vmem:[#allocation6 + $0x4] ss:$48 sps:$4 sm:$0xff]   ;;  %v5752_v1 = vld [vmem:[#allocation6 + $0xc] ss:$48 sps:$4 sm:$0xff]  }
  0x5d   :  { %693 = vmatprep.subr.bf16.mxu0 %v5750_v0  ;;  %v5754_v2 = vld [vmem:[#allocation6] ss:$48 sps:$4 sm:$0xff]   ;;  %v5755_v3 = vld [vmem:[#allocation6 + $0x8] ss:$48 sps:$4 sm:$0xff]   ;;  %779 = vmatprep.subr.bf16.mxu1 %v5752_v1  ;;  %v5756_v4 = vld [vmem:[#allocation6 + $0x64] ss:$48 sps:$4 sm:$0xff]  }
  0x5e   :  { %694 = vmatpush1.bf16.msra.mxu0 %v5754_v2  ;;  %780 = vmatpush1.bf16.msra.mxu1 %v5755_v3  ;;  %v5758_v5 = vld [vmem:[#allocation6 + $0x6c] ss:$48 sps:$4 sm:$0xff]   ;;  %v5760_v6 = vld [vmem:[#allocation6 + $0x60] ss:$48 sps:$4 sm:$0xff]   ;;  %v5761_v7 = vld [vmem:[#allocation6 + $0x68] ss:$48 sps:$4 sm:$0xff]  }
  0x5f   :  { %695 = vmatprep.subr.bf16.mxu0 %v5756_v4  ;;  %781 = vmatprep.subr.bf16.mxu1 %v5758_v5  ;;  %v5762_v8 = vld [vmem:[#allocation6 + $0xc4] ss:$48 sps:$4 sm:$0xff]   ;;  %v5764_v9 = vld [vmem:[#allocation6 + $0xcc] ss:$48 sps:$4 sm:$0xff]   ;;  %v5766_v10 = vld [vmem:[#allocation6 + $0xc0] ss:$48 sps:$4 sm:$0xff]  }
  0x60   :  { %v5767_v11 = vld [vmem:[#allocation6 + $0xc8] ss:$48 sps:$4 sm:$0xff]   ;;  %v5768_v12 = vld [vmem:[#allocation6 + $0x124] ss:$48 sps:$4 sm:$0xff]   ;;  %v5770_v13 = vld [vmem:[#allocation6 + $0x12c] ss:$48 sps:$4 sm:$0xff]  }
  0x61   :  { %v5772_v14 = vld [vmem:[#allocation6 + $0x120] ss:$48 sps:$4 sm:$0xff]   ;;  %v5773_v15 = vld [vmem:[#allocation6 + $0x128] ss:$48 sps:$4 sm:$0xff]   ;;  %v5774_v16 = vld [vmem:[#allocation6 + $0x184] ss:$48 sps:$4 sm:$0xff]  }
  0x62   :  { %696 = vmatpush1.bf16.msra.mxu0 %v5760_v6  ;;  %782 = vmatpush1.bf16.msra.mxu1 %v5761_v7  ;;  %v5776_v17 = vld [vmem:[#allocation6 + $0x18c] ss:$48 sps:$4 sm:$0xff]   ;;  %v5778_v18 = vld [vmem:[#allocation6 + $0x180] ss:$48 sps:$4 sm:$0xff]   ;;  %v5779_v19 = vld [vmem:[#allocation6 + $0x188] ss:$48 sps:$4 sm:$0xff]  }
  0x63   :  { %697 = vmatprep.subr.bf16.mxu0 %v5762_v8  ;;  %783 = vmatprep.subr.bf16.mxu1 %v5764_v9  ;;  %v5780_v20 = vld [vmem:[#allocation6 + $0x1e4] ss:$48 sps:$4 sm:$0xff]   ;;  %v5782_v21 = vld [vmem:[#allocation6 + $0x1ec] ss:$48 sps:$4 sm:$0xff]   ;;  %v5784_v22 = vld [vmem:[#allocation6 + $0x1e0] ss:$48 sps:$4 sm:$0xff]  }
  0x64   :  { %v5785_v23 = vld [vmem:[#allocation6 + $0x1e8] ss:$48 sps:$4 sm:$0xff]   ;;  %v5786_v24 = vld [vmem:[#allocation6 + $0x244] ss:$48 sps:$4 sm:$0xff]   ;;  %v5788_v25 = vld [vmem:[#allocation6 + $0x24c] ss:$48 sps:$4 sm:$0xff]  }
  0x65   :  { %v5790_v26 = vld [vmem:[#allocation6 + $0x240] ss:$48 sps:$4 sm:$0xff]   ;;  %v5791_v27 = vld [vmem:[#allocation6 + $0x248] ss:$48 sps:$4 sm:$0xff]   ;;  %v5792_v28 = vld [vmem:[#allocation6 + $0x2a4] ss:$48 sps:$4 sm:$0xff]  }
  0x66   :  { %698 = vmatpush1.bf16.msra.mxu0 %v5766_v10  ;;  %784 = vmatpush1.bf16.msra.mxu1 %v5767_v11  ;;  %v5794_v29 = vld [vmem:[#allocation6 + $0x2ac] ss:$48 sps:$4 sm:$0xff]   ;;  %v5796_v30 = vld [vmem:[#allocation6 + $0x2a0] ss:$48 sps:$4 sm:$0xff]   ;;  %v5797_v31 = vld [vmem:[#allocation6 + $0x2a8] ss:$48 sps:$4 sm:$0xff]  }
  0x67   :  { %699 = vmatprep.subr.bf16.mxu0 %v5768_v12  ;;  %785 = vmatprep.subr.bf16.mxu1 %v5770_v13  ;;  %v5798_v32 = vld [vmem:[#allocation6 + $0x304] ss:$48 sps:$4 sm:$0xff]   ;;  %v5800_v33 = vld [vmem:[#allocation6 + $0x30c] ss:$48 sps:$4 sm:$0xff]   ;;  %v5802_v34 = vld [vmem:[#allocation6 + $0x300] ss:$48 sps:$4 sm:$0xff]  }
  0x68   :  { %v5803_v35 = vld [vmem:[#allocation6 + $0x308] ss:$48 sps:$4 sm:$0xff]   ;;  %v5804_v36 = vld [vmem:[#allocation6 + $0x364] ss:$48 sps:$4 sm:$0xff]   ;;  %v5806_v37 = vld [vmem:[#allocation6 + $0x36c] ss:$48 sps:$4 sm:$0xff]  }
  0x69   :  { %v5808_v38 = vld [vmem:[#allocation6 + $0x360] ss:$48 sps:$4 sm:$0xff]   ;;  %v5809_v39 = vld [vmem:[#allocation6 + $0x368] ss:$48 sps:$4 sm:$0xff]   ;;  %v5810_v40 = vld [vmem:[#allocation6 + $0x3c4] ss:$48 sps:$4 sm:$0xff]  }
  0x6a   :  { %700 = vmatpush1.bf16.msra.mxu0 %v5772_v14  ;;  %786 = vmatpush1.bf16.msra.mxu1 %v5773_v15  ;;  %v5812_v41 = vld [vmem:[#allocation6 + $0x3cc] ss:$48 sps:$4 sm:$0xff]   ;;  %v5814_v42 = vld [vmem:[#allocation6 + $0x3c0] ss:$48 sps:$4 sm:$0xff]   ;;  %v5815_v43 = vld [vmem:[#allocation6 + $0x3c8] ss:$48 sps:$4 sm:$0xff]  }
  0x6b   :  { %701 = vmatprep.subr.bf16.mxu0 %v5774_v16  ;;  %787 = vmatprep.subr.bf16.mxu1 %v5776_v17  ;;  %v5816_v44 = vld [vmem:[#allocation6 + $0x424] ss:$48 sps:$4 sm:$0xff]   ;;  %v5818_v45 = vld [vmem:[#allocation6 + $0x42c] ss:$48 sps:$4 sm:$0xff]   ;;  %v5820_v48 = vld [vmem:[#allocation6 + $0x420] ss:$48 sps:$4 sm:$0xff]  }
  0x6c   :  { %v87_v46 = vld [vmem:[#allocation3 + $0x8] sm:$0xff]  ;;  %v90_v47 = vld [vmem:[#allocation3 + $0x20] sm:$0xff]  ;;  %v89_v5 = vld [vmem:[#allocation3 + $0x18] sm:$0xff]  ;;  %v6717_v16 = vmov 0   ;;  %s6718_s4 = smov [#allocation12]  }
  0x6d   :  { %v5821_v49 = vld [vmem:[#allocation6 + $0x428] ss:$48 sps:$4 sm:$0xff]   ;;  %v6812_v50 = vpack.c.bf16 %v90_v47, %v87_v46  ;;  %v5822_v51 = vld [vmem:[#allocation6 + $0x484] ss:$48 sps:$4 sm:$0xff]   ;;  %v5824_v52 = vld [vmem:[#allocation6 + $0x48c] ss:$48 sps:$4 sm:$0xff]  }
  0x6e   :  { %702 = vmatpush1.bf16.msra.mxu0 %v5778_v18  ;;  %788 = vmatpush1.bf16.msra.mxu1 %v5779_v19  ;;  %v5826_v53 = vld [vmem:[#allocation6 + $0x480] ss:$48 sps:$4 sm:$0xff]   ;;  %v5827_v54 = vld [vmem:[#allocation6 + $0x488] ss:$48 sps:$4 sm:$0xff]   ;;  %v5828_v55 = vld [vmem:[#allocation6 + $0x4e4] ss:$48 sps:$4 sm:$0xff]  }
  0x6f   :  { %703 = vmatprep.subr.bf16.mxu0 %v5780_v20  ;;  %789 = vmatprep.subr.bf16.mxu1 %v5782_v21  ;;  %v5830_v56 = vld [vmem:[#allocation6 + $0x4ec] ss:$48 sps:$4 sm:$0xff]   ;;  %v5832_v57 = vld [vmem:[#allocation6 + $0x4e0] ss:$48 sps:$4 sm:$0xff]   ;;  %v5833_v58 = vld [vmem:[#allocation6 + $0x4e8] ss:$48 sps:$4 sm:$0xff]  }
  0x70   :  { %725 = vmatprep.mubr.bf16.mxu0 %v6812_v50  ;;  %811 = vmatprep.mubr.bf16.mxu1 %v6812_v50  ;;  %v5834_v59 = vld [vmem:[#allocation6 + $0x544] ss:$48 sps:$4 sm:$0xff]   ;;  %v5836_v60 = vld [vmem:[#allocation6 + $0x54c] ss:$48 sps:$4 sm:$0xff]   ;;  %v5838_v61 = vld [vmem:[#allocation6 + $0x540] ss:$48 sps:$4 sm:$0xff]  }
  0x71   :  { %v5839_v62 = vld [vmem:[#allocation6 + $0x548] ss:$48 sps:$4 sm:$0xff]   ;;  %v5840_v63 = vld [vmem:[#allocation6 + $0x5a4] ss:$48 sps:$4 sm:$0xff]   ;;  %v5842_v0 = vld [vmem:[#allocation6 + $0x5ac] ss:$48 sps:$4 sm:$0xff]  }
  0x72   :  { %704 = vmatpush1.bf16.msra.mxu0 %v5784_v22  ;;  %790 = vmatpush1.bf16.msra.mxu1 %v5785_v23  ;;  %v5844_v1 = vld [vmem:[#allocation6 + $0x5a0] ss:$48 sps:$4 sm:$0xff]   ;;  %v5845_v2 = vld [vmem:[#allocation6 + $0x5a8] ss:$48 sps:$4 sm:$0xff]   ;;  %v5848_v3 = vld [vmem:[#allocation6 + $0x604] ss:$48 sps:$4 sm:$0xff]  }
  0x73   :  { %705 = vmatprep.subr.bf16.mxu0 %v5786_v24  ;;  %791 = vmatprep.subr.bf16.mxu1 %v5788_v25  ;;  %v86_v4 = vld [vmem:[#allocation3] sm:$0xff]  ;;  %v5851_v6 = vld [vmem:[#allocation6 + $0x60c] ss:$48 sps:$4 sm:$0xff]   ;;  %v5849_v9 = vld [vmem:[#allocation6 + $0x608] ss:$48 sps:$4 sm:$0xff]   ;;  %s4947_s6 = sshll.u32 %s6718_s4, 4  ;;  %s4948_s6 = int_to_ptr.vmem [resolvable:$true] %s4947_s6 }
  0x74   :  { %v5846_v7 = vld [vmem:[#allocation6 + $0x600] ss:$48 sps:$4 sm:$0xff]   ;;  %v6816_v8 = vpack.c.bf16 %v89_v5, %v86_v4  ;;  %v5854_v10 = vld [vmem:[#allocation6 + $0x664] ss:$48 sps:$4 sm:$0xff]   ;;  %v5857_v11 = vld [vmem:[#allocation6 + $0x66c] ss:$48 sps:$4 sm:$0xff]   ;;  %p6681_p13 = scmp.lt.s32.totalorder %s4948_s6, %s4948_s6 }
  0x75   :  { %v5852_v12 = vld [vmem:[#allocation6 + $0x660] ss:$48 sps:$4 sm:$0xff]   ;;  %v5855_v13 = vld [vmem:[#allocation6 + $0x668] ss:$48 sps:$4 sm:$0xff]   ;;  %v5860_v14 = vld [vmem:[#allocation6 + $0x6c4] ss:$48 sps:$4 sm:$0xff]  }
  0x76   :  { %706 = vmatpush1.bf16.msra.mxu0 %v5790_v26  ;;  %792 = vmatpush1.bf16.msra.mxu1 %v5791_v27  ;;  %v5863_v15 = vld [vmem:[#allocation6 + $0x6cc] ss:$48 sps:$4 sm:$0xff]   ;;  %v5858_v17 = vld [vmem:[#allocation6 + $0x6c0] ss:$48 sps:$4 sm:$0xff]   ;;  %v5861_v18 = vld [vmem:[#allocation6 + $0x6c8] ss:$48 sps:$4 sm:$0xff]  }
  0x77   :  { %707 = vmatprep.subr.bf16.mxu0 %v5792_v28  ;;  %793 = vmatprep.subr.bf16.mxu1 %v5794_v29  ;;  %v5866_v19 = vld [vmem:[#allocation6 + $0x724] ss:$48 sps:$4 sm:$0xff]   ;;  %v5869_v20 = vld [vmem:[#allocation6 + $0x72c] ss:$48 sps:$4 sm:$0xff]   ;;  %v5864_v21 = vld [vmem:[#allocation6 + $0x720] ss:$48 sps:$4 sm:$0xff]  }
  0x78   :  { %v5867_v22 = vld [vmem:[#allocation6 + $0x728] ss:$48 sps:$4 sm:$0xff]   ;;  %v5872_v23 = vld [vmem:[#allocation6 + $0x784] ss:$48 sps:$4 sm:$0xff]   ;;  %v5875_v24 = vld [vmem:[#allocation6 + $0x78c] ss:$48 sps:$4 sm:$0xff]  }
  0x79   :  { %v5870_v25 = vld [vmem:[#allocation6 + $0x780] ss:$48 sps:$4 sm:$0xff]   ;;  %v5873_v26 = vld [vmem:[#allocation6 + $0x788] ss:$48 sps:$4 sm:$0xff]   ;;  %v5878_v27 = vld [vmem:[#allocation6 + $0x7e4] ss:$48 sps:$4 sm:$0xff]  }
  0x7a   :  { %708 = vmatpush1.bf16.msra.mxu0 %v5796_v30  ;;  %794 = vmatpush1.bf16.msra.mxu1 %v5797_v31  ;;  %v5881_v28 = vld [vmem:[#allocation6 + $0x7ec] ss:$48 sps:$4 sm:$0xff]   ;;  %v5876_v29 = vld [vmem:[#allocation6 + $0x7e0] ss:$48 sps:$4 sm:$0xff]   ;;  %v5879_v30 = vld [vmem:[#allocation6 + $0x7e8] ss:$48 sps:$4 sm:$0xff]  }
  0x7b   :  { %709 = vmatprep.subr.bf16.mxu0 %v5798_v32  ;;  %795 = vmatprep.subr.bf16.mxu1 %v5800_v33  ;;  %v5884_v31 = vld [vmem:[#allocation6 + $0x844] ss:$48 sps:$4 sm:$0xff]   ;;  %v5887_v32 = vld [vmem:[#allocation6 + $0x84c] ss:$48 sps:$4 sm:$0xff]   ;;  %v5882_v33 = vld [vmem:[#allocation6 + $0x840] ss:$48 sps:$4 sm:$0xff]  }
  0x7c   :  { %v5922_v46 = vld [vmem:[#allocation9 + $0x8] ss:$12 sps:$4 sm:$0xff]   ;;  %v5926_v47 = vld [vmem:[#allocation9 + $0xe0] ss:$12 sps:$4 sm:$0xff]   ;;  %v5912_v4 = vld [vmem:[#allocation9 + $0x90] ss:$12 sps:$4 sm:$0xff]  }
  0x7d   :  { %v5917_v5 = vld [vmem:[#allocation9 + $0xac] ss:$12 sps:$4 sm:$0xff]   ;;  %s6676_s7 = scalar_lea.vmem %s4948_s6, 768 }
  0x7e   :  { %710 = vmatpush1.bf16.msra.mxu0 %v5802_v34  ;;  %796 = vmatpush1.bf16.msra.mxu1 %v5803_v35  ;;  %v5885_v34 = vld [vmem:[#allocation6 + $0x848] ss:$48 sps:$4 sm:$0xff]   ;;  %v5890_v35 = vld [vmem:[#allocation6 + $0x8a4] ss:$48 sps:$4 sm:$0xff]   ;;  %p6677_p12 = scmp.ne.s32.totalorder %s4948_s6, %s6676_s7  ;;  %p6682_p0 = scmp.lt.s32.totalorder %s6676_s7, %s6676_s7 }
  0x7f   :  { %711 = vmatprep.subr.bf16.mxu0 %v5804_v36  ;;  %797 = vmatprep.subr.bf16.mxu1 %v5806_v37  ;;  %v5893_v36 = vld [vmem:[#allocation6 + $0x8ac] ss:$48 sps:$4 sm:$0xff]   ;;  %v5888_v37 = vld [vmem:[#allocation6 + $0x8a0] ss:$48 sps:$4 sm:$0xff]  }
  0x80   :  { %p6683_p1 = por %p6682_p0, %p6681_p13 }
  0x82   :  { %712 = vmatpush1.bf16.msra.mxu0 %v5808_v38  ;;  %798 = vmatpush1.bf16.msra.mxu1 %v5809_v39  ;;  %v5891_v38 = vld [vmem:[#allocation6 + $0x8a8] ss:$48 sps:$4 sm:$0xff]   ;;  %v88_v39 = vld [vmem:[#allocation3 + $0x10] sm:$0xff]  ;;  %p6684_p2 = pnand %p6683_p1, %p6677_p12 }
  0x83   :  { %713 = vmatprep.subr.bf16.mxu0 %v5810_v40  ;;  %799 = vmatprep.subr.bf16.mxu1 %v5812_v41  ;;  %v91_v40 = vld [vmem:[#allocation3 + $0x28] sm:$0xff] }
  0x84   :  { %v5896_v41 = vld [vmem:[#allocation9 + $0x4] ss:$12 sps:$4 sm:$0xff]  }
  0x86   :  { %714 = vmatpush1.bf16.msra.mxu0 %v5814_v42  ;;  %800 = vmatpush1.bf16.msra.mxu1 %v5815_v43  ;;  %v5921_v42 = vld [vmem:[#allocation9 + $0xc8] ss:$12 sps:$4 sm:$0xff]   ;;  %v5894_v43 = vld [vmem:[#allocation9] ss:$12 sps:$4 sm:$0xff]  }
  0x87   :  { %715 = vmatprep.subr.bf16.mxu0 %v5816_v44  ;;  %801 = vmatprep.subr.bf16.mxu1 %v5818_v45  ;;  %v6822_v44 = vpack.c.bf16 %v91_v40, %v88_v39  ;;  %v5899_v45 = vld [vmem:[#allocation9 + $0x1c] ss:$12 sps:$4 sm:$0xff]  }
  0x8a   :  { %716 = vmatpush1.bf16.msra.mxu0 %v5820_v48  ;;  %802 = vmatpush1.bf16.msra.mxu1 %v5821_v49  ;;  %v5897_v48 = vld [vmem:[#allocation9 + $0x18] ss:$12 sps:$4 sm:$0xff]   ;;  %v5927_v49 = vld [vmem:[#allocation9 + $0x20] ss:$12 sps:$4 sm:$0xff]  }
  0x8b   :  { %717 = vmatprep.subr.bf16.mxu0 %v5822_v51  ;;  %803 = vmatprep.subr.bf16.mxu1 %v5824_v52  ;;  %v5902_v51 = vld [vmem:[#allocation9 + $0x34] ss:$12 sps:$4 sm:$0xff]   ;;  %v5931_v52 = vld [vmem:[#allocation9 + $0xf8] ss:$12 sps:$4 sm:$0xff]  }
  0x8e   :  { %718 = vmatpush1.bf16.msra.mxu0 %v5826_v53  ;;  %804 = vmatpush1.bf16.msra.mxu1 %v5827_v54  ;;  %v5900_v53 = vld [vmem:[#allocation9 + $0x30] ss:$12 sps:$4 sm:$0xff]   ;;  %v5932_v54 = vld [vmem:[#allocation9 + $0x38] ss:$12 sps:$4 sm:$0xff]  }
  0x8f   :  { %719 = vmatprep.subr.bf16.mxu0 %v5828_v55  ;;  %805 = vmatprep.subr.bf16.mxu1 %v5830_v56  ;;  %v5905_v55 = vld [vmem:[#allocation9 + $0x4c] ss:$12 sps:$4 sm:$0xff]   ;;  %v5936_v56 = vld [vmem:[#allocation9 + $0x110] ss:$12 sps:$4 sm:$0xff]  }
  0x92   :  { %720 = vmatpush1.bf16.msra.mxu0 %v5832_v57  ;;  %806 = vmatpush1.bf16.msra.mxu1 %v5833_v58  ;;  %v5903_v57 = vld [vmem:[#allocation9 + $0x48] ss:$12 sps:$4 sm:$0xff]   ;;  %v5937_v58 = vld [vmem:[#allocation9 + $0x50] ss:$12 sps:$4 sm:$0xff]  }
  0x93   :  { %721 = vmatprep.subr.bf16.mxu0 %v5834_v59  ;;  %807 = vmatprep.subr.bf16.mxu1 %v5836_v60  ;;  %v5908_v59 = vld [vmem:[#allocation9 + $0x64] ss:$12 sps:$4 sm:$0xff]   ;;  %v5941_v60 = vld [vmem:[#allocation9 + $0x128] ss:$12 sps:$4 sm:$0xff]  }
  0x96   :  { %722 = vmatpush1.bf16.msra.mxu0 %v5838_v61  ;;  %808 = vmatpush1.bf16.msra.mxu1 %v5839_v62  ;;  %v5906_v61 = vld [vmem:[#allocation9 + $0x60] ss:$12 sps:$4 sm:$0xff]   ;;  %v5942_v62 = vld [vmem:[#allocation9 + $0x68] ss:$12 sps:$4 sm:$0xff]  }
  0x97   :  { %723 = vmatprep.subr.bf16.mxu0 %v5840_v63  ;;  %809 = vmatprep.subr.bf16.mxu1 %v5842_v0  ;;  %v5911_v63 = vld [vmem:[#allocation9 + $0x7c] ss:$12 sps:$4 sm:$0xff]   ;;  %v5946_v0 = vld [vmem:[#allocation9 + $0x140] ss:$12 sps:$4 sm:$0xff]  }
  0x9a   :  { %724 = vmatpush1.bf16.msra.mxu0 %v5844_v1  ;;  %810 = vmatpush1.bf16.msra.mxu1 %v5845_v2  ;;  %v5909_v1 = vld [vmem:[#allocation9 + $0x78] ss:$12 sps:$4 sm:$0xff]   ;;  %v5947_v2 = vld [vmem:[#allocation9 + $0x80] ss:$12 sps:$4 sm:$0xff]  }
  0x9b   :  { %736 = vmatprep.subr.bf16.mxu0 %v5848_v3  ;;  %822 = vmatprep.subr.bf16.mxu1 %v5851_v6  ;;  %v5914_v3 = vld [vmem:[#allocation9 + $0x94] ss:$12 sps:$4 sm:$0xff]  }
  0x9c   :  { %v5915_v6 = vld [vmem:[#allocation9 + $0xa8] ss:$12 sps:$4 sm:$0xff]  }
  0x9d   :  { %726 = vmatmul.mubr.bf16.vlgmr.msra.gmra.mrb[0].mxu0 %v6816_v8  ;;  %812 = vmatmul.mubr.bf16.vlgmr.msra.gmra.mrb[0].mxu1 %v6816_v8 }
  0x9e   :  { %737 = vmatpush1.bf16.msra.mxu0 %v5846_v7  ;;  %823 = vmatpush1.bf16.msra.mxu1 %v5849_v9  ;;  %v5920_v7 = vld [vmem:[#allocation9 + $0xc4] ss:$12 sps:$4 sm:$0xff]   ;;  %v5918_v9 = vld [vmem:[#allocation9 + $0xc0] ss:$12 sps:$4 sm:$0xff]  }
  0x9f   :  { %738 = vmatprep.subr.bf16.mxu0 %v5854_v10  ;;  %824 = vmatprep.subr.bf16.mxu1 %v5857_v11  ;;  %v5925_v10 = vld [vmem:[#allocation9 + $0xdc] ss:$12 sps:$4 sm:$0xff]   ;;  %v5923_v11 = vld [vmem:[#allocation9 + $0xd8] ss:$12 sps:$4 sm:$0xff]  }
  0xa0   :  { %768 = vmatprep.mubr.bf16.mxu0 %v6717_v16  ;;  %854 = vmatprep.mubr.bf16.mxu1 %v6717_v16 }
  0xa2   :  { %739 = vmatpush1.bf16.msra.mxu0 %v5852_v12  ;;  %825 = vmatpush1.bf16.msra.mxu1 %v5855_v13  ;;  %v5930_v12 = vld [vmem:[#allocation9 + $0xf4] ss:$12 sps:$4 sm:$0xff]   ;;  %v5928_v13 = vld [vmem:[#allocation9 + $0xf0] ss:$12 sps:$4 sm:$0xff]  }
  0xa3   :  { %740 = vmatprep.subr.bf16.mxu0 %v5860_v14  ;;  %826 = vmatprep.subr.bf16.mxu1 %v5863_v15  ;;  %v5935_v14 = vld [vmem:[#allocation9 + $0x10c] ss:$12 sps:$4 sm:$0xff]   ;;  %v5933_v15 = vld [vmem:[#allocation9 + $0x108] ss:$12 sps:$4 sm:$0xff]  }
  0xa6   :  { %741 = vmatpush1.bf16.msra.mxu0 %v5858_v17  ;;  %827 = vmatpush1.bf16.msra.mxu1 %v5861_v18  ;;  %v5940_v17 = vld [vmem:[#allocation9 + $0x124] ss:$12 sps:$4 sm:$0xff]   ;;  %v5938_v18 = vld [vmem:[#allocation9 + $0x120] ss:$12 sps:$4 sm:$0xff]  }
  0xa7   :  { %742 = vmatprep.subr.bf16.mxu0 %v5866_v19  ;;  %828 = vmatprep.subr.bf16.mxu1 %v5869_v20  ;;  %v5945_v19 = vld [vmem:[#allocation9 + $0x13c] ss:$12 sps:$4 sm:$0xff]   ;;  %v5943_v20 = vld [vmem:[#allocation9 + $0x138] ss:$12 sps:$4 sm:$0xff]  }
  0xaa   :  { %743 = vmatpush1.bf16.msra.mxu0 %v5864_v21  ;;  %829 = vmatpush1.bf16.msra.mxu1 %v5867_v22  ;;  %v5950_v21 = vld [vmem:[#allocation9 + $0x154] ss:$12 sps:$4 sm:$0xff]   ;;  %v5951_v22 = vld [vmem:[#allocation9 + $0x158] ss:$12 sps:$4 sm:$0xff]  }
  0xab   :  { %744 = vmatprep.subr.bf16.mxu0 %v5872_v23  ;;  %830 = vmatprep.subr.bf16.mxu1 %v5875_v24  ;;  %v5948_v23 = vld [vmem:[#allocation9 + $0x150] ss:$12 sps:$4 sm:$0xff]   ;;  %v5952_v24 = vld [vmem:[#allocation9 + $0x98] ss:$12 sps:$4 sm:$0xff]  }
  0xae   :  { %745 = vmatpush1.bf16.msra.mxu0 %v5870_v25  ;;  %831 = vmatpush1.bf16.msra.mxu1 %v5873_v26  ;;  %v5955_v25 = vld [vmem:[#allocation9 + $0x16c] ss:$12 sps:$4 sm:$0xff]   ;;  %v5956_v26 = vld [vmem:[#allocation9 + $0x170] ss:$12 sps:$4 sm:$0xff]  }
  0xaf   :  { %746 = vmatprep.subr.bf16.mxu0 %v5878_v27  ;;  %832 = vmatprep.subr.bf16.mxu1 %v5881_v28  ;;  %v5953_v27 = vld [vmem:[#allocation9 + $0x168] ss:$12 sps:$4 sm:$0xff]   ;;  %v5957_v28 = vld [vmem:[#allocation9 + $0xb0] ss:$12 sps:$4 sm:$0xff]  }
  0xb2   :  { %747 = vmatpush1.bf16.msra.mxu0 %v5876_v29  ;;  %833 = vmatpush1.bf16.msra.mxu1 %v5879_v30  ;;  %v5960_v29 = vld [vmem:[#allocation9 + $0x184] ss:$12 sps:$4 sm:$0xff]   ;;  %v5961_v30 = vld [vmem:[#allocation9 + $0x248] ss:$12 sps:$4 sm:$0xff]  }
  0xb3   :  { %748 = vmatprep.subr.bf16.mxu0 %v5884_v31  ;;  %834 = vmatprep.subr.bf16.mxu1 %v5887_v32  ;;  %v193_v31 = vlaneseq }
  0xb5   :  { %v194_v32 = vshrl.u32 %v193_v31, 7  ;;  %v5987_v31 = vld [vmem:[#allocation9 + $0x200] ss:$12 sps:$4 sm:$0xff]  }
  0xb6   :  { %749 = vmatpush1.bf16.msra.mxu0 %v5882_v33  ;;  %835 = vmatpush1.bf16.msra.mxu1 %v5885_v34  ;;  %v191_v34 = vld [vmem:[#allocation8] sm:$0xf] }
  0xb7   :  { %750 = vmatprep.subr.bf16.mxu0 %v5890_v35  ;;  %836 = vmatprep.subr.bf16.mxu1 %v5893_v36  ;;  %v6826_v33 = vsub.s32 0, %v194_v32  ;;  %v6828_v35 = vsub.s32 2, %v194_v32  ;;  %v6830_v36 = vsub.s32 1, %v194_v32 }
  0xb9   :  { %v204_v39 = vrot.slane %v191_v34, %v6828_v35  ;;  %v200_v40 = vrot.slane %v191_v34, %v6830_v36 }
  0xba   :  { %751 = vmatpush1.bf16.msra.mxu0 %v5888_v37  ;;  %837 = vmatpush1.bf16.msra.mxu1 %v5891_v38  ;;  %v6832_v37 = vsub.s32 3, %v194_v32  ;;  %v196_v38 = vrot.slane %v191_v34, %v6826_v33  ;;  %v5990_v32 = vld [vmem:[#allocation9 + $0x214] ss:$12 sps:$4 sm:$0xff]  }
  0xbb   :  { %1517 = vmatprep.subr.bf16.mxu0 %v5896_v41  ;;  %5537 = vmatprep.subr.bf16.mxu1 %v5921_v42 }
  0xbc   :  { %v208_v41 = vrot.slane %v191_v34, %v6832_v37  ;;  %v5991_v34 = vld [vmem:[#allocation9 + $0x2d8] ss:$12 sps:$4 sm:$0xff]  }
  0xbd   :  { %769 = vmatmul.mubr.bf16.vlgmr.msra.gmra.mrb[0].mxu0 %v6822_v44  ;;  %855 = vmatmul.mubr.bf16.vlgmr.msra.gmra.mrb[0].mxu1 %v6822_v44 }
  0xbe   :  { %1518 = vmatpush1.bf16.msra.mxu0 %v5894_v43  ;;  %5538 = vmatpush3.bf16.msra.mxu1 %v5922_v46 }
  0xbf   :  { %1519 = vmatprep.subr.bf16.mxu0 %v5899_v45  ;;  %5539 = vmatprep.subr.bf16.mxu1 %v5926_v47 }
  0xc2   :  { %1520 = vmatpush1.bf16.msra.mxu0 %v5897_v48  ;;  %5540 = vmatpush3.bf16.msra.mxu1 %v5927_v49 }
  0xc3   :  { %1521 = vmatprep.subr.bf16.mxu0 %v5902_v51  ;;  %5541 = vmatprep.subr.bf16.mxu1 %v5931_v52 }
  0xc6   :  { %1522 = vmatpush1.bf16.msra.mxu0 %v5900_v53  ;;  %5542 = vmatpush3.bf16.msra.mxu1 %v5932_v54 }
  0xc7   :  { %1523 = vmatprep.subr.bf16.mxu0 %v5905_v55  ;;  %5543 = vmatprep.subr.bf16.mxu1 %v5936_v56 }
  0xca   :  { %1524 = vmatpush1.bf16.msra.mxu0 %v5903_v57  ;;  %5544 = vmatpush3.bf16.msra.mxu1 %v5937_v58 }
  0xcb   :  { %1525 = vmatprep.subr.bf16.mxu0 %v5908_v59  ;;  %5545 = vmatprep.subr.bf16.mxu1 %v5941_v60 }
  0xce   :  { %1526 = vmatpush1.bf16.msra.mxu0 %v5906_v61  ;;  %5546 = vmatpush3.bf16.msra.mxu1 %v5942_v62 }
  0xcf   :  { %1527 = vmatprep.subr.bf16.mxu0 %v5911_v63  ;;  %5547 = vmatprep.subr.bf16.mxu1 %v5946_v0 }
  0xd2   :  { %1528 = vmatpush1.bf16.msra.mxu0 %v5909_v1  ;;  %5548 = vmatpush3.bf16.msra.mxu1 %v5947_v2 }
  0xd3   :  { %1529 = vmatprep.subr.bf16.mxu0 %v5914_v3  ;;  %5549 = vmatprep.subr.bf16.mxu1 %v5951_v22  ;;  %v5973_v22 = vld [vmem:[#allocation9 + $0x1c8] ss:$12 sps:$4 sm:$0xff]  }
  0xd6   :  { %1530 = vmatpush1.bf16.msra.mxu0 %v5912_v4  ;;  %5550 = vmatpush3.bf16.msra.mxu1 %v5952_v24  ;;  %v5958_v4 = vld [vmem:[#allocation9 + $0x180] ss:$12 sps:$4 sm:$0xff]   ;;  %v5980_v24 = vld [vmem:[#allocation9 + $0x1e4] ss:$12 sps:$4 sm:$0xff]  }
  0xd7   :  { %1531 = vmatprep.subr.bf16.mxu0 %v5917_v5  ;;  %5551 = vmatprep.subr.bf16.mxu1 %v5956_v26  ;;  %v5962_v5 = vld [vmem:[#allocation9 + $0x188] ss:$12 sps:$4 sm:$0xff]   ;;  %v5978_v26 = vld [vmem:[#allocation9 + $0x1e0] ss:$12 sps:$4 sm:$0xff]  }
  0xda   :  { %1532 = vmatpush1.bf16.msra.mxu0 %v5915_v6  ;;  %5552 = vmatpush3.bf16.msra.mxu1 %v5957_v28  ;;  %v5985_v28 = vld [vmem:[#allocation9 + $0x1fc] ss:$12 sps:$4 sm:$0xff]  }
  0xdb   :  { %1533 = vmatprep.subr.bf16.mxu0 %v5920_v7  ;;  %5559 = vmatprep.subr.bf16.mxu1 %v5961_v30  ;;  %v5983_v30 = vld [vmem:[#allocation9 + $0x1f8] ss:$12 sps:$4 sm:$0xff]  }
  0xde   :  { %1534 = vmatpush1.bf16.msra.mxu0 %v5918_v9 }
  0xdf   :  { %1535 = vmatprep.subr.bf16.mxu0 %v5925_v10 }
  0xe2   :  { %1536 = vmatpush1.bf16.msra.mxu0 %v5923_v11  ;;  %v5965_v11 = vld [vmem:[#allocation9 + $0x19c] ss:$12 sps:$4 sm:$0xff]  }
  0xe3   :  { %1537 = vmatprep.subr.bf16.mxu0 %v5930_v12  ;;  %v5966_v12 = vld [vmem:[#allocation9 + $0x260] ss:$12 sps:$4 sm:$0xff]  }
  0xe6   :  { %1538 = vmatpush1.bf16.msra.mxu0 %v5928_v13  ;;  %v5963_v13 = vld [vmem:[#allocation9 + $0x198] ss:$12 sps:$4 sm:$0xff]  }
  0xe7   :  { %1539 = vmatprep.subr.bf16.mxu0 %v5935_v14  ;;  %v5967_v14 = vld [vmem:[#allocation9 + $0x1a0] ss:$12 sps:$4 sm:$0xff]  }
  0xea   :  { %1540 = vmatpush1.bf16.msra.mxu0 %v5933_v15  ;;  %v5970_v15 = vld [vmem:[#allocation9 + $0x1b4] ss:$12 sps:$4 sm:$0xff]  }
  0xeb   :  { %1541 = vmatprep.subr.bf16.mxu0 %v5940_v17  ;;  %v5971_v17 = vld [vmem:[#allocation9 + $0x278] ss:$12 sps:$4 sm:$0xff]  }
  0xee   :  { %1542 = vmatpush1.bf16.msra.mxu0 %v5938_v18  ;;  %v5968_v18 = vld [vmem:[#allocation9 + $0x1b0] ss:$12 sps:$4 sm:$0xff]  }
  0xef   :  { %1543 = vmatprep.subr.bf16.mxu0 %v5945_v19  ;;  %v5972_v19 = vld [vmem:[#allocation9 + $0x1b8] ss:$12 sps:$4 sm:$0xff]  }
  0xf2   :  { %1544 = vmatpush1.bf16.msra.mxu0 %v5943_v20  ;;  %v5975_v20 = vld [vmem:[#allocation9 + $0x1cc] ss:$12 sps:$4 sm:$0xff]  }
  0xf3   :  { %1545 = vmatprep.subr.bf16.mxu0 %v5950_v21  ;;  %v5976_v21 = vld [vmem:[#allocation9 + $0x290] ss:$12 sps:$4 sm:$0xff]  }
  0xf6   :  { %1546 = vmatpush1.bf16.msra.mxu0 %v5948_v23  ;;  %v5977_v23 = vld [vmem:[#allocation9 + $0x1d0] ss:$12 sps:$4 sm:$0xff]  }
  0xf7   :  { %1547 = vmatprep.subr.bf16.mxu0 %v5955_v25  ;;  %v5981_v25 = vld [vmem:[#allocation9 + $0x2a8] ss:$12 sps:$4 sm:$0xff]  }
  0xfa   :  { %1548 = vmatpush1.bf16.msra.mxu0 %v5953_v27  ;;  %v5982_v27 = vld [vmem:[#allocation9 + $0x1e8] ss:$12 sps:$4 sm:$0xff]  }
  0xfb   :  { %1560 = vmatprep.subr.bf16.mxu0 %v5960_v29  ;;  %v5986_v29 = vld [vmem:[#allocation9 + $0x2c0] ss:$12 sps:$4 sm:$0xff]  }
 0x190   :  { %v770_v42 = vpop.f32.mrb[0].mxu0  ;;  %v856_v43 = vpop.f32.mrb[0].mxu1 }
 0x191   :  { %v5669_v45 = vadd.f32 %v770_v42, %v196_v38  ;;  %v5673_v46 = vadd.f32 %v856_v43, %v204_v39  ;;  %v772_v47 = vpop.f32.mrb[1].mxu0  ;;  %v858_v48 = vpop.f32.mrb[1].mxu1  ;;  %v5993_v42 = vld [vmem:[#allocation9 + $0x228] ss:$12 sps:$4 sm:$0xff]   ;;  %v5997_v43 = vld [vmem:[#allocation9 + $0x230] ss:$12 sps:$4 sm:$0xff]  }
 0x192   :  { %v5670_v49 = vadd.f32 %v772_v47, %v200_v40  ;;  %v5674_v51 = vadd.f32 %v858_v48, %v208_v41  ;;  %v774_v52 = vpop.f32.mrb[2].mxu0  ;;  %v860_v53 = vpop.f32.mrb[2].mxu1  ;;  %v5998_v47 = vld [vmem:[#allocation9 + $0x240] ss:$12 sps:$4 sm:$0xff]   ;;  %v6001_v48 = vld [vmem:[#allocation6 + $0x10] ss:$48 sps:$4 sm:$0xff]  }
 0x193   :  { %v867_v54 = vmax.f32 %v5673_v46, 0.0  ;;  %v5671_v55 = vadd.f32 %v774_v52, %v196_v38  ;;  %v5675_v56 = vadd.f32 %v860_v53, %v204_v39  ;;  %v776_v57 = vpop.f32.mrb[3].mxu0  ;;  %v862_v58 = vpop.f32.mrb[3].mxu1  ;;  %v865_v59 = vmax.f32 %v5669_v45, 0.0  ;;  %v5988_v38 = vld [vmem:[#allocation9 + $0x210] ss:$12 sps:$4 sm:$0xff]  }
 0x194   :  { %v5672_v60 = vadd.f32 %v776_v57, %v200_v40  ;;  %v5676_v61 = vadd.f32 %v862_v58, %v208_v41  ;;  %v866_v62 = vmax.f32 %v5670_v49, 0.0  ;;  %v868_v63 = vmax.f32 %v5674_v51, 0.0  ;;  %v5992_v39 = vld [vmem:[#allocation9 + $0x218] ss:$12 sps:$4 sm:$0xff]   ;;  %v5996_v41 = vld [vmem:[#allocation9 + $0x2f0] ss:$12 sps:$4 sm:$0xff]  }
 0x195   :  { %v869_v0 = vmax.f32 %v5671_v55, 0.0  ;;  %v871_v1 = vmax.f32 %v5675_v56, 0.0  ;;  %v5995_v40 = vld [vmem:[#allocation9 + $0x22c] ss:$12 sps:$4 sm:$0xff]   ;;  %v6000_v45 = vld [vmem:[#allocation9 + $0x244] ss:$12 sps:$4 sm:$0xff]  }
 0x196   :  { %v870_v2 = vmax.f32 %v5672_v60, 0.0  ;;  %v872_v3 = vmax.f32 %v5676_v61, 0.0  ;;  %v6003_v46 = vld [vmem:[#allocation6 + $0x14] ss:$48 sps:$4 sm:$0xff]   ;;  %v6007_v53 = vld [vmem:[#allocation6 + $0x70] ss:$48 sps:$4 sm:$0xff]  }
 0x197   :  { %v1001_v6 = vpack.c.bf16 %v869_v0, %v865_v59  ;;  %v6838_v7 = vpack.c.bf16 %v871_v1, %v867_v54  ;;  %v6006_v49 = vld [vmem:[#allocation9 + $0x25c] ss:$12 sps:$4 sm:$0xff]   ;;  %v6004_v52 = vld [vmem:[#allocation9 + $0x258] ss:$12 sps:$4 sm:$0xff]   ;;  %v6012_v54 = vld [vmem:[#allocation9 + $0x274] ss:$12 sps:$4 sm:$0xff]  }
 0x198   :  { %v1002_v9 = vpack.c.bf16 %v870_v2, %v866_v62  ;;  %v1004_v10 = vpack.c.bf16 %v872_v3, %v868_v63  ;;  %v6009_v51 = vld [vmem:[#allocation6 + $0x74] ss:$48 sps:$4 sm:$0xff]   ;;  %v6010_v56 = vld [vmem:[#allocation9 + $0x270] ss:$12 sps:$4 sm:$0xff]   ;;  %v6013_v57 = vld [vmem:[#allocation6 + $0xd0] ss:$48 sps:$4 sm:$0xff]  }
 0x199   :  { %v6015_v55 = vld [vmem:[#allocation6 + $0xd4] ss:$48 sps:$4 sm:$0xff]   ;;  %v6019_v61 = vld [vmem:[#allocation6 + $0x130] ss:$48 sps:$4 sm:$0xff]   ;;  %v6022_v0 = vld [vmem:[#allocation9 + $0x2a0] ss:$12 sps:$4 sm:$0xff]  }
 0x19a   :  { %1549 = vmatprep.mubr.bf16.mxu0 %v1002_v9  ;;  %1635 = vmatprep.mubr.bf16.mxu1 %v1002_v9  ;;  %v6018_v58 = vld [vmem:[#allocation9 + $0x28c] ss:$12 sps:$4 sm:$0xff]   ;;  %v6016_v60 = vld [vmem:[#allocation9 + $0x288] ss:$12 sps:$4 sm:$0xff]   ;;  %v6024_v62 = vld [vmem:[#allocation9 + $0x2a4] ss:$12 sps:$4 sm:$0xff]  }
 0x19b   :  { %1550 = vmatmul.mubr.bf16.vlgmr.msra.gmra.mrb[4].mxu0 %v1001_v6  ;;  %1636 = vmatmul.mubr.bf16.vlgmr.msra.gmra.mrb[4].mxu1 %v1001_v6  ;;  %v6021_v59 = vld [vmem:[#allocation6 + $0x134] ss:$48 sps:$4 sm:$0xff]   ;;  %v6025_v1 = vld [vmem:[#allocation6 + $0x190] ss:$48 sps:$4 sm:$0xff]  }
 0x19c   :  { %1561 = vmatpush1.bf16.msra.mxu0 %v5958_v4  ;;  %5560 = vmatpush3.bf16.msra.mxu1 %v5962_v5  ;;  %v6027_v63 = vld [vmem:[#allocation6 + $0x194] ss:$48 sps:$4 sm:$0xff]   ;;  %v6031_v5 = vld [vmem:[#allocation6 + $0x1f0] ss:$48 sps:$4 sm:$0xff]  }
 0x19d   :  { %1592 = vmatprep.mubr.bf16.mxu0 %v1004_v10  ;;  %1676 = vmatprep.mubr.bf16.mxu1 %v1004_v10  ;;  %v6030_v2 = vld [vmem:[#allocation9 + $0x2bc] ss:$12 sps:$4 sm:$0xff]   ;;  %v6028_v4 = vld [vmem:[#allocation9 + $0x2b8] ss:$12 sps:$4 sm:$0xff]   ;;  %v6036_v6 = vld [vmem:[#allocation9 + $0x2d4] ss:$12 sps:$4 sm:$0xff]  }
 0x19e   :  { %1562 = vmatprep.subr.bf16.mxu0 %v5965_v11  ;;  %5561 = vmatprep.subr.bf16.mxu1 %v5966_v12  ;;  %v6033_v3 = vld [vmem:[#allocation6 + $0x1f4] ss:$48 sps:$4 sm:$0xff]   ;;  %v6034_v10 = vld [vmem:[#allocation9 + $0x2d0] ss:$12 sps:$4 sm:$0xff]   ;;  %v6037_v11 = vld [vmem:[#allocation6 + $0x250] ss:$48 sps:$4 sm:$0xff]  }
 0x19f   :  { %v6039_v9 = vld [vmem:[#allocation6 + $0x254] ss:$48 sps:$4 sm:$0xff]  }
 0x1a0   :  { %1563 = vmatpush1.bf16.msra.mxu0 %v5963_v13  ;;  %5562 = vmatpush3.bf16.msra.mxu1 %v5967_v14  ;;  %v6042_v12 = vld [vmem:[#allocation9 + $0x2ec] ss:$12 sps:$4 sm:$0xff]   ;;  %v6040_v14 = vld [vmem:[#allocation9 + $0x2e8] ss:$12 sps:$4 sm:$0xff]  }
 0x1a1   :  { %1564 = vmatprep.subr.bf16.mxu0 %v5970_v15  ;;  %5563 = vmatprep.subr.bf16.mxu1 %v5971_v17  ;;  %v6045_v13 = vld [vmem:[#allocation6 + $0x2b4] ss:$48 sps:$4 sm:$0xff]   ;;  %v6043_v15 = vld [vmem:[#allocation6 + $0x2b0] ss:$48 sps:$4 sm:$0xff]  }
 0x1a2   :  { %v6048_v17 = vld [vmem:[#allocation6 + $0x314] ss:$48 sps:$4 sm:$0xff]  }
 0x1a4   :  { %1565 = vmatpush1.bf16.msra.mxu0 %v5968_v18  ;;  %5564 = vmatpush3.bf16.msra.mxu1 %v5972_v19  ;;  %v6051_v18 = vld [vmem:[#allocation6 + $0x1c] ss:$48 sps:$4 sm:$0xff]   ;;  %v6046_v19 = vld [vmem:[#allocation6 + $0x310] ss:$48 sps:$4 sm:$0xff]  }
 0x1a5   :  { %1566 = vmatprep.subr.bf16.mxu0 %v5975_v20  ;;  %5565 = vmatprep.subr.bf16.mxu1 %v5976_v21  ;;  %v6049_v20 = vld [vmem:[#allocation6 + $0x18] ss:$48 sps:$4 sm:$0xff]   ;;  %v6054_v21 = vld [vmem:[#allocation6 + $0x374] ss:$48 sps:$4 sm:$0xff]  }
 0x1a8   :  { %1567 = vmatpush1.bf16.msra.mxu0 %v5973_v22  ;;  %5566 = vmatpush3.bf16.msra.mxu1 %v5977_v23  ;;  %v6057_v22 = vld [vmem:[#allocation6 + $0x7c] ss:$48 sps:$4 sm:$0xff]   ;;  %v6052_v23 = vld [vmem:[#allocation6 + $0x370] ss:$48 sps:$4 sm:$0xff]  }
 0x1a9   :  { %1568 = vmatprep.subr.bf16.mxu0 %v5980_v24  ;;  %5567 = vmatprep.subr.bf16.mxu1 %v5981_v25  ;;  %v6055_v24 = vld [vmem:[#allocation6 + $0x78] ss:$48 sps:$4 sm:$0xff]   ;;  %v6060_v25 = vld [vmem:[#allocation6 + $0x3d4] ss:$48 sps:$4 sm:$0xff]  }
 0x1ac   :  { %1569 = vmatpush1.bf16.msra.mxu0 %v5978_v26  ;;  %5568 = vmatpush3.bf16.msra.mxu1 %v5982_v27  ;;  %v6063_v26 = vld [vmem:[#allocation6 + $0xdc] ss:$48 sps:$4 sm:$0xff]   ;;  %v6058_v27 = vld [vmem:[#allocation6 + $0x3d0] ss:$48 sps:$4 sm:$0xff]  }
 0x1ad   :  { %1570 = vmatprep.subr.bf16.mxu0 %v5985_v28  ;;  %5569 = vmatprep.subr.bf16.mxu1 %v5986_v29  ;;  %v6061_v28 = vld [vmem:[#allocation6 + $0xd8] ss:$48 sps:$4 sm:$0xff]   ;;  %v6066_v29 = vld [vmem:[#allocation6 + $0x434] ss:$48 sps:$4 sm:$0xff]  }
 0x1b0   :  { %1571 = vmatpush1.bf16.msra.mxu0 %v5983_v30  ;;  %5570 = vmatpush3.bf16.msra.mxu1 %v5987_v31  ;;  %v6069_v30 = vld [vmem:[#allocation6 + $0x13c] ss:$48 sps:$4 sm:$0xff]   ;;  %v6067_v31 = vld [vmem:[#allocation6 + $0x138] ss:$48 sps:$4 sm:$0xff]  }
 0x1b1   :  { %1572 = vmatprep.subr.bf16.mxu0 %v5990_v32  ;;  %5571 = vmatprep.subr.bf16.mxu1 %v5991_v34  ;;  %v6072_v32 = vld [vmem:[#allocation6 + $0x494] ss:$48 sps:$4 sm:$0xff]   ;;  %v6075_v34 = vld [vmem:[#allocation6 + $0x19c] ss:$48 sps:$4 sm:$0xff]  }
 0x1b4   :  { %1573 = vmatpush1.bf16.msra.mxu0 %v5988_v38  ;;  %5572 = vmatpush3.bf16.msra.mxu1 %v5992_v39  ;;  %v6070_v38 = vld [vmem:[#allocation6 + $0x490] ss:$48 sps:$4 sm:$0xff]   ;;  %v6073_v39 = vld [vmem:[#allocation6 + $0x198] ss:$48 sps:$4 sm:$0xff]  }
 0x1b5   :  { %1574 = vmatprep.subr.bf16.mxu0 %v5995_v40  ;;  %5573 = vmatprep.subr.bf16.mxu1 %v5996_v41  ;;  %v6078_v40 = vld [vmem:[#allocation6 + $0x4f4] ss:$48 sps:$4 sm:$0xff]   ;;  %v6081_v41 = vld [vmem:[#allocation6 + $0x1fc] ss:$48 sps:$4 sm:$0xff]  }
 0x1b8   :  { %1575 = vmatpush1.bf16.msra.mxu0 %v5993_v42  ;;  %5574 = vmatpush3.bf16.msra.mxu1 %v5997_v43  ;;  %v6076_v42 = vld [vmem:[#allocation6 + $0x4f0] ss:$48 sps:$4 sm:$0xff]   ;;  %v6079_v43 = vld [vmem:[#allocation6 + $0x1f8] ss:$48 sps:$4 sm:$0xff]  }
 0x1b9   :  { %1576 = vmatprep.subr.bf16.mxu0 %v6000_v45  ;;  %2289 = vmatprep.subr.bf16.mxu1 %v6003_v46  ;;  %v6084_v45 = vld [vmem:[#allocation6 + $0x554] ss:$48 sps:$4 sm:$0xff]   ;;  %v6087_v46 = vld [vmem:[#allocation6 + $0x25c] ss:$48 sps:$4 sm:$0xff]  }
 0x1bb   :  { %1677 = vmatmul.mubr.bf16.vlgmr.msra.gmra.mrb[8].mxu1 %v6838_v7 }
 0x1bc   :  { %1577 = vmatpush1.bf16.msra.mxu0 %v5998_v47  ;;  %2290 = vmatpush1.bf16.msra.mxu1 %v6001_v48  ;;  %v6082_v47 = vld [vmem:[#allocation6 + $0x550] ss:$48 sps:$4 sm:$0xff]   ;;  %v6085_v48 = vld [vmem:[#allocation6 + $0x258] ss:$48 sps:$4 sm:$0xff]  }
 0x1bd   :  { %1578 = vmatprep.subr.bf16.mxu0 %v6006_v49  ;;  %2291 = vmatprep.subr.bf16.mxu1 %v6009_v51  ;;  %v6090_v49 = vld [vmem:[#allocation6 + $0x5b4] ss:$48 sps:$4 sm:$0xff]   ;;  %v6093_v51 = vld [vmem:[#allocation6 + $0x2bc] ss:$48 sps:$4 sm:$0xff]  }
 0x1be   :  { %2321 = vmatprep.mubr.bf16.mxu1 %v6812_v50 }
 0x1c0   :  { %1579 = vmatpush1.bf16.msra.mxu0 %v6004_v52  ;;  %2292 = vmatpush1.bf16.msra.mxu1 %v6007_v53  ;;  %v6088_v52 = vld [vmem:[#allocation6 + $0x5b0] ss:$48 sps:$4 sm:$0xff]   ;;  %v6091_v53 = vld [vmem:[#allocation6 + $0x2b8] ss:$48 sps:$4 sm:$0xff]  }
 0x1c1   :  { %1580 = vmatprep.subr.bf16.mxu0 %v6012_v54  ;;  %2293 = vmatprep.subr.bf16.mxu1 %v6015_v55  ;;  %v6096_v54 = vld [vmem:[#allocation6 + $0x614] ss:$48 sps:$4 sm:$0xff]   ;;  %v6099_v55 = vld [vmem:[#allocation6 + $0x31c] ss:$48 sps:$4 sm:$0xff]  }
 0x1c4   :  { %1581 = vmatpush1.bf16.msra.mxu0 %v6010_v56  ;;  %2294 = vmatpush1.bf16.msra.mxu1 %v6013_v57  ;;  %v6094_v56 = vld [vmem:[#allocation6 + $0x610] ss:$48 sps:$4 sm:$0xff]   ;;  %v6097_v57 = vld [vmem:[#allocation6 + $0x318] ss:$48 sps:$4 sm:$0xff]  }
 0x1c5   :  { %1582 = vmatprep.subr.bf16.mxu0 %v6018_v58  ;;  %2295 = vmatprep.subr.bf16.mxu1 %v6021_v59  ;;  %v6102_v58 = vld [vmem:[#allocation6 + $0x674] ss:$48 sps:$4 sm:$0xff]   ;;  %v6105_v59 = vld [vmem:[#allocation6 + $0x37c] ss:$48 sps:$4 sm:$0xff]  }
 0x1c8   :  { %1583 = vmatpush1.bf16.msra.mxu0 %v6016_v60  ;;  %2296 = vmatpush1.bf16.msra.mxu1 %v6019_v61  ;;  %v6100_v60 = vld [vmem:[#allocation6 + $0x670] ss:$48 sps:$4 sm:$0xff]   ;;  %v6103_v61 = vld [vmem:[#allocation6 + $0x378] ss:$48 sps:$4 sm:$0xff]  }
 0x1c9   :  { %1584 = vmatprep.subr.bf16.mxu0 %v6024_v62  ;;  %2297 = vmatprep.subr.bf16.mxu1 %v6027_v63  ;;  %v6108_v62 = vld [vmem:[#allocation6 + $0x6d4] ss:$48 sps:$4 sm:$0xff]   ;;  %v6111_v63 = vld [vmem:[#allocation6 + $0x3dc] ss:$48 sps:$4 sm:$0xff]  }
 0x1cc   :  { %1585 = vmatpush1.bf16.msra.mxu0 %v6022_v0  ;;  %2298 = vmatpush1.bf16.msra.mxu1 %v6025_v1  ;;  %v6106_v0 = vld [vmem:[#allocation6 + $0x6d0] ss:$48 sps:$4 sm:$0xff]   ;;  %v6109_v1 = vld [vmem:[#allocation6 + $0x3d8] ss:$48 sps:$4 sm:$0xff]  }
 0x1cd   :  { %1586 = vmatprep.subr.bf16.mxu0 %v6030_v2  ;;  %2299 = vmatprep.subr.bf16.mxu1 %v6033_v3  ;;  %v6114_v2 = vld [vmem:[#allocation6 + $0x734] ss:$48 sps:$4 sm:$0xff]   ;;  %v6117_v3 = vld [vmem:[#allocation6 + $0x43c] ss:$48 sps:$4 sm:$0xff]  }
 0x1d0   :  { %1587 = vmatpush1.bf16.msra.mxu0 %v6028_v4  ;;  %2300 = vmatpush1.bf16.msra.mxu1 %v6031_v5  ;;  %v6112_v4 = vld [vmem:[#allocation6 + $0x730] ss:$48 sps:$4 sm:$0xff]   ;;  %v6115_v5 = vld [vmem:[#allocation6 + $0x438] ss:$48 sps:$4 sm:$0xff]  }
 0x1d1   :  { %1588 = vmatprep.subr.bf16.mxu0 %v6036_v6  ;;  %2301 = vmatprep.subr.bf16.mxu1 %v6039_v9  ;;  %v6120_v6 = vld [vmem:[#allocation6 + $0x794] ss:$48 sps:$4 sm:$0xff]   ;;  %v6123_v9 = vld [vmem:[#allocation6 + $0x49c] ss:$48 sps:$4 sm:$0xff]  }
 0x1d4   :  { %1589 = vmatpush1.bf16.msra.mxu0 %v6034_v10  ;;  %2302 = vmatpush1.bf16.msra.mxu1 %v6037_v11  ;;  %v6118_v10 = vld [vmem:[#allocation6 + $0x790] ss:$48 sps:$4 sm:$0xff]   ;;  %v6121_v11 = vld [vmem:[#allocation6 + $0x498] ss:$48 sps:$4 sm:$0xff]  }
 0x1d5   :  { %1590 = vmatprep.subr.bf16.mxu0 %v6042_v12  ;;  %2303 = vmatprep.subr.bf16.mxu1 %v6045_v13  ;;  %v6126_v12 = vld [vmem:[#allocation6 + $0x7f4] ss:$48 sps:$4 sm:$0xff]   ;;  %v6129_v13 = vld [vmem:[#allocation6 + $0x4fc] ss:$48 sps:$4 sm:$0xff]  }
 0x1d8   :  { %1591 = vmatpush1.bf16.msra.mxu0 %v6040_v14  ;;  %2304 = vmatpush1.bf16.msra.mxu1 %v6043_v15  ;;  %v6124_v14 = vld [vmem:[#allocation6 + $0x7f0] ss:$48 sps:$4 sm:$0xff]   ;;  %v6127_v15 = vld [vmem:[#allocation6 + $0x4f8] ss:$48 sps:$4 sm:$0xff]  }
 0x1d9   :  { %2305 = vmatprep.subr.bf16.mxu1 %v6048_v17  ;;  %2375 = vmatprep.subr.bf16.mxu0 %v6051_v18  ;;  %v6132_v17 = vld [vmem:[#allocation6 + $0x854] ss:$48 sps:$4 sm:$0xff]   ;;  %v6135_v18 = vld [vmem:[#allocation6 + $0x55c] ss:$48 sps:$4 sm:$0xff]  }
 0x1db   :  { %1593 = vmatmul.mubr.bf16.vlgmr.msra.gmra.mrb[4].mxu0 %v6838_v7  ;;  %v6064_v7 = vld [vmem:[#allocation6 + $0x430] ss:$48 sps:$4 sm:$0xff]  }
 0x1dc   :  { %2306 = vmatpush1.bf16.msra.mxu1 %v6046_v19  ;;  %2376 = vmatpush1.bf16.msra.mxu0 %v6049_v20  ;;  %v6130_v19 = vld [vmem:[#allocation6 + $0x850] ss:$48 sps:$4 sm:$0xff]   ;;  %v6133_v20 = vld [vmem:[#allocation6 + $0x558] ss:$48 sps:$4 sm:$0xff]  }
 0x1dd   :  { %2307 = vmatprep.subr.bf16.mxu1 %v6054_v21  ;;  %2377 = vmatprep.subr.bf16.mxu0 %v6057_v22  ;;  %v6138_v21 = vld [vmem:[#allocation6 + $0x8b4] ss:$48 sps:$4 sm:$0xff]   ;;  %v6141_v22 = vld [vmem:[#allocation6 + $0x5bc] ss:$48 sps:$4 sm:$0xff]  }
 0x1de   :  { %2407 = vmatprep.mubr.bf16.mxu0 %v6812_v50 }
 0x1e0   :  { %2308 = vmatpush1.bf16.msra.mxu1 %v6052_v23  ;;  %2378 = vmatpush1.bf16.msra.mxu0 %v6055_v24  ;;  %v6136_v23 = vld [vmem:[#allocation6 + $0x8b0] ss:$48 sps:$4 sm:$0xff]   ;;  %v6139_v24 = vld [vmem:[#allocation6 + $0x5b8] ss:$48 sps:$4 sm:$0xff]  }
 0x1e1   :  { %2309 = vmatprep.subr.bf16.mxu1 %v6060_v25  ;;  %2379 = vmatprep.subr.bf16.mxu0 %v6063_v26  ;;  %v6144_v25 = vld [vmem:[#allocation6 + $0x61c] ss:$48 sps:$4 sm:$0xff]   ;;  %v6142_v26 = vld [vmem:[#allocation6 + $0x618] ss:$48 sps:$4 sm:$0xff]  }
 0x1e4   :  { %2310 = vmatpush1.bf16.msra.mxu1 %v6058_v27  ;;  %2380 = vmatpush1.bf16.msra.mxu0 %v6061_v28  ;;  %v6147_v27 = vld [vmem:[#allocation6 + $0x67c] ss:$48 sps:$4 sm:$0xff]   ;;  %v6193_v28 = vld [vmem:[#allocation9 + $0x3c8] ss:$12 sps:$4 sm:$0xff]  }
 0x1e5   :  { %2311 = vmatprep.subr.bf16.mxu1 %v6066_v29  ;;  %2381 = vmatprep.subr.bf16.mxu0 %v6069_v30  ;;  %v6194_v29 = vld [vmem:[#allocation9 + $0x308] ss:$12 sps:$4 sm:$0xff]   ;;  %v6198_v30 = vld [vmem:[#allocation9 + $0x3e0] ss:$12 sps:$4 sm:$0xff]  }
 0x1e8   :  { %2312 = vmatpush1.bf16.msra.mxu1 %v6064_v7  ;;  %2382 = vmatpush1.bf16.msra.mxu0 %v6067_v31  ;;  %v6145_v7 = vld [vmem:[#allocation6 + $0x678] ss:$48 sps:$4 sm:$0xff]   ;;  %v6150_v31 = vld [vmem:[#allocation6 + $0x6dc] ss:$48 sps:$4 sm:$0xff]  }
 0x1e9   :  { %2313 = vmatprep.subr.bf16.mxu1 %v6072_v32  ;;  %2383 = vmatprep.subr.bf16.mxu0 %v6075_v34  ;;  %v6199_v32 = vld [vmem:[#allocation9 + $0x320] ss:$12 sps:$4 sm:$0xff]   ;;  %v6203_v34 = vld [vmem:[#allocation9 + $0x3f8] ss:$12 sps:$4 sm:$0xff]  }
 0x1ec   :  { %2314 = vmatpush1.bf16.msra.mxu1 %v6070_v38  ;;  %2384 = vmatpush1.bf16.msra.mxu0 %v6073_v39  ;;  %v6148_v38 = vld [vmem:[#allocation6 + $0x6d8] ss:$48 sps:$4 sm:$0xff]   ;;  %v6153_v39 = vld [vmem:[#allocation6 + $0x73c] ss:$48 sps:$4 sm:$0xff]  }
 0x1ed   :  { %2315 = vmatprep.subr.bf16.mxu1 %v6078_v40  ;;  %2385 = vmatprep.subr.bf16.mxu0 %v6081_v41  ;;  %v6204_v40 = vld [vmem:[#allocation9 + $0x338] ss:$12 sps:$4 sm:$0xff]   ;;  %v6208_v41 = vld [vmem:[#allocation9 + $0x410] ss:$12 sps:$4 sm:$0xff]  }
 0x1f0   :  { %2316 = vmatpush1.bf16.msra.mxu1 %v6076_v42  ;;  %2386 = vmatpush1.bf16.msra.mxu0 %v6079_v43  ;;  %v6151_v42 = vld [vmem:[#allocation6 + $0x738] ss:$48 sps:$4 sm:$0xff]   ;;  %v6156_v43 = vld [vmem:[#allocation6 + $0x79c] ss:$48 sps:$4 sm:$0xff]  }
 0x1f1   :  { %2317 = vmatprep.subr.bf16.mxu1 %v6084_v45  ;;  %2387 = vmatprep.subr.bf16.mxu0 %v6087_v46  ;;  %v6209_v45 = vld [vmem:[#allocation9 + $0x350] ss:$12 sps:$4 sm:$0xff]   ;;  %v6213_v46 = vld [vmem:[#allocation9 + $0x428] ss:$12 sps:$4 sm:$0xff]  }
 0x1f4   :  { %2318 = vmatpush1.bf16.msra.mxu1 %v6082_v47  ;;  %2388 = vmatpush1.bf16.msra.mxu0 %v6085_v48  ;;  %v6154_v47 = vld [vmem:[#allocation6 + $0x798] ss:$48 sps:$4 sm:$0xff]   ;;  %v6159_v48 = vld [vmem:[#allocation6 + $0x7fc] ss:$48 sps:$4 sm:$0xff]  }
 0x1f5   :  { %2319 = vmatprep.subr.bf16.mxu1 %v6090_v49  ;;  %2389 = vmatprep.subr.bf16.mxu0 %v6093_v51  ;;  %v6214_v49 = vld [vmem:[#allocation9 + $0x368] ss:$12 sps:$4 sm:$0xff]   ;;  %v6218_v51 = vld [vmem:[#allocation9 + $0x440] ss:$12 sps:$4 sm:$0xff]  }
 0x1f8   :  { %2320 = vmatpush1.bf16.msra.mxu1 %v6088_v52  ;;  %2390 = vmatpush1.bf16.msra.mxu0 %v6091_v53  ;;  %v6157_v52 = vld [vmem:[#allocation6 + $0x7f8] ss:$48 sps:$4 sm:$0xff]   ;;  %v6162_v53 = vld [vmem:[#allocation6 + $0x85c] ss:$48 sps:$4 sm:$0xff]  }
 0x1f9   :  { %2332 = vmatprep.subr.bf16.mxu1 %v6096_v54  ;;  %2391 = vmatprep.subr.bf16.mxu0 %v6099_v55  ;;  %v6219_v54 = vld [vmem:[#allocation9 + $0x380] ss:$12 sps:$4 sm:$0xff]  }
 0x1fa   :  { %v6160_v55 = vld [vmem:[#allocation6 + $0x858] ss:$48 sps:$4 sm:$0xff]  }
 0x1fb   :  { %2322 = vmatmul.mubr.bf16.vlgmr.msra.gmra.mrb[12].mxu1 %v6816_v8 }
 0x1fc   :  { %2333 = vmatpush1.bf16.msra.mxu1 %v6094_v56  ;;  %2392 = vmatpush1.bf16.msra.mxu0 %v6097_v57  ;;  %v6165_v56 = vld [vmem:[#allocation6 + $0x8bc] ss:$48 sps:$4 sm:$0xff]   ;;  %v6163_v57 = vld [vmem:[#allocation6 + $0x8b8] ss:$48 sps:$4 sm:$0xff]  }
 0x1fd   :  { %2334 = vmatprep.subr.bf16.mxu1 %v6102_v58  ;;  %2393 = vmatprep.subr.bf16.mxu0 %v6105_v59  ;;  %v6168_v58 = vld [vmem:[#allocation9 + $0x304] ss:$12 sps:$4 sm:$0xff]   ;;  %v6166_v59 = vld [vmem:[#allocation9 + $0x300] ss:$12 sps:$4 sm:$0xff]  }
 0x1fe   :  { %2364 = vmatprep.mubr.bf16.mxu1 %v6717_v16 }
 0x200   :  { %2335 = vmatpush1.bf16.msra.mxu1 %v6100_v60  ;;  %2394 = vmatpush1.bf16.msra.mxu0 %v6103_v61  ;;  %v6171_v60 = vld [vmem:[#allocation9 + $0x31c] ss:$12 sps:$4 sm:$0xff]   ;;  %v6169_v61 = vld [vmem:[#allocation9 + $0x318] ss:$12 sps:$4 sm:$0xff]  }
 0x201   :  { %2336 = vmatprep.subr.bf16.mxu1 %v6108_v62  ;;  %2395 = vmatprep.subr.bf16.mxu0 %v6111_v63  ;;  %v6174_v62 = vld [vmem:[#allocation9 + $0x334] ss:$12 sps:$4 sm:$0xff]   ;;  %v6172_v63 = vld [vmem:[#allocation9 + $0x330] ss:$12 sps:$4 sm:$0xff]  }
 0x204   :  { %2337 = vmatpush1.bf16.msra.mxu1 %v6106_v0  ;;  %2396 = vmatpush1.bf16.msra.mxu0 %v6109_v1  ;;  %v6177_v0 = vld [vmem:[#allocation9 + $0x34c] ss:$12 sps:$4 sm:$0xff]   ;;  %v6175_v1 = vld [vmem:[#allocation9 + $0x348] ss:$12 sps:$4 sm:$0xff]  }
 0x205   :  { %2338 = vmatprep.subr.bf16.mxu1 %v6114_v2  ;;  %2397 = vmatprep.subr.bf16.mxu0 %v6117_v3  ;;  %v6180_v2 = vld [vmem:[#allocation9 + $0x364] ss:$12 sps:$4 sm:$0xff]   ;;  %v6178_v3 = vld [vmem:[#allocation9 + $0x360] ss:$12 sps:$4 sm:$0xff]  }
 0x208   :  { %2339 = vmatpush1.bf16.msra.mxu1 %v6112_v4  ;;  %2398 = vmatpush1.bf16.msra.mxu0 %v6115_v5  ;;  %v6183_v4 = vld [vmem:[#allocation9 + $0x37c] ss:$12 sps:$4 sm:$0xff]   ;;  %v6181_v5 = vld [vmem:[#allocation9 + $0x378] ss:$12 sps:$4 sm:$0xff]  }
 0x209   :  { %2340 = vmatprep.subr.bf16.mxu1 %v6120_v6  ;;  %2399 = vmatprep.subr.bf16.mxu0 %v6123_v9  ;;  %v6186_v6 = vld [vmem:[#allocation9 + $0x394] ss:$12 sps:$4 sm:$0xff]   ;;  %v6184_v9 = vld [vmem:[#allocation9 + $0x390] ss:$12 sps:$4 sm:$0xff]  }
 0x20c   :  { %2341 = vmatpush1.bf16.msra.mxu1 %v6118_v10  ;;  %2400 = vmatpush1.bf16.msra.mxu0 %v6121_v11  ;;  %v6189_v10 = vld [vmem:[#allocation9 + $0x3ac] ss:$12 sps:$4 sm:$0xff]   ;;  %v6187_v11 = vld [vmem:[#allocation9 + $0x3a8] ss:$12 sps:$4 sm:$0xff]  }
 0x20d   :  { %2342 = vmatprep.subr.bf16.mxu1 %v6126_v12  ;;  %2401 = vmatprep.subr.bf16.mxu0 %v6129_v13  ;;  %v6192_v12 = vld [vmem:[#allocation9 + $0x3c4] ss:$12 sps:$4 sm:$0xff]   ;;  %v6190_v13 = vld [vmem:[#allocation9 + $0x3c0] ss:$12 sps:$4 sm:$0xff]  }
 0x210   :  { %2343 = vmatpush1.bf16.msra.mxu1 %v6124_v14  ;;  %2402 = vmatpush1.bf16.msra.mxu0 %v6127_v15  ;;  %v6197_v14 = vld [vmem:[#allocation9 + $0x3dc] ss:$12 sps:$4 sm:$0xff]   ;;  %v6195_v15 = vld [vmem:[#allocation9 + $0x3d8] ss:$12 sps:$4 sm:$0xff]  }
 0x211   :  { %2344 = vmatprep.subr.bf16.mxu1 %v6132_v17  ;;  %2403 = vmatprep.subr.bf16.mxu0 %v6135_v18  ;;  %v6202_v17 = vld [vmem:[#allocation9 + $0x3f4] ss:$12 sps:$4 sm:$0xff]   ;;  %v6200_v18 = vld [vmem:[#allocation9 + $0x3f0] ss:$12 sps:$4 sm:$0xff]  }
 0x214   :  { %2345 = vmatpush1.bf16.msra.mxu1 %v6130_v19  ;;  %2404 = vmatpush1.bf16.msra.mxu0 %v6133_v20  ;;  %v6207_v19 = vld [vmem:[#allocation9 + $0x40c] ss:$12 sps:$4 sm:$0xff]   ;;  %v6205_v20 = vld [vmem:[#allocation9 + $0x408] ss:$12 sps:$4 sm:$0xff]  }
 0x215   :  { %2346 = vmatprep.subr.bf16.mxu1 %v6138_v21  ;;  %2405 = vmatprep.subr.bf16.mxu0 %v6141_v22  ;;  %v6212_v21 = vld [vmem:[#allocation9 + $0x424] ss:$12 sps:$4 sm:$0xff]   ;;  %v6210_v22 = vld [vmem:[#allocation9 + $0x420] ss:$12 sps:$4 sm:$0xff]  }
 0x218   :  { %2347 = vmatpush1.bf16.msra.mxu1 %v6136_v23  ;;  %2406 = vmatpush1.bf16.msra.mxu0 %v6139_v24  ;;  %v6217_v23 = vld [vmem:[#allocation9 + $0x43c] ss:$12 sps:$4 sm:$0xff]   ;;  %v6215_v24 = vld [vmem:[#allocation9 + $0x438] ss:$12 sps:$4 sm:$0xff]  }
 0x219   :  { %2418 = vmatprep.subr.bf16.mxu0 %v6144_v25  ;;  %5581 = vmatprep.subr.bf16.mxu1 %v6193_v28 }
 0x21b   :  { %2365 = vmatmul.mubr.bf16.vlgmr.msra.gmra.mrb[12].mxu1 %v6822_v44  ;;  %2408 = vmatmul.mubr.bf16.vlgmr.msra.gmra.mrb[8].mxu0 %v6816_v8 }
 0x21c   :  { %2419 = vmatpush1.bf16.msra.mxu0 %v6142_v26  ;;  %2450 = vmatprep.mubr.bf16.mxu0 %v6717_v16  ;;  %v6222_v26 = vld [vmem:[#allocation9 + $0x454] ss:$12 sps:$4 sm:$0xff]  }
 0x21d   :  { %2420 = vmatprep.subr.bf16.mxu0 %v6147_v27  ;;  %5582 = vmatpush3.bf16.msra.mxu1 %v6194_v29  ;;  %v6223_v27 = vld [vmem:[#allocation9 + $0x458] ss:$12 sps:$4 sm:$0xff]  }
 0x21e   :  { %5583 = vmatprep.subr.bf16.mxu1 %v6198_v30  ;;  %v6224_v29 = vld [vmem:[#allocation9 + $0x398] ss:$12 sps:$4 sm:$0xff]  }
 0x220   :  { %2421 = vmatpush1.bf16.msra.mxu0 %v6145_v7 }
 0x221   :  { %2422 = vmatprep.subr.bf16.mxu0 %v6150_v31  ;;  %5584 = vmatpush3.bf16.msra.mxu1 %v6199_v32  ;;  %v6220_v31 = vld [vmem:[#allocation9 + $0x450] ss:$12 sps:$4 sm:$0xff]  }
 0x222   :  { %5585 = vmatprep.subr.bf16.mxu1 %v6203_v34 }
 0x224   :  { %2423 = vmatpush1.bf16.msra.mxu0 %v6148_v38  ;;  %v6227_v38 = vld [vmem:[#allocation9 + $0x46c] ss:$12 sps:$4 sm:$0xff]  }
 0x225   :  { %2424 = vmatprep.subr.bf16.mxu0 %v6153_v39  ;;  %5586 = vmatpush3.bf16.msra.mxu1 %v6204_v40  ;;  %v6228_v39 = vld [vmem:[#allocation9 + $0x470] ss:$12 sps:$4 sm:$0xff]  }
 0x226   :  { %5587 = vmatprep.subr.bf16.mxu1 %v6208_v41  ;;  %v6229_v40 = vld [vmem:[#allocation9 + $0x3b0] ss:$12 sps:$4 sm:$0xff]   ;;  %v6225_v41 = vld [vmem:[#allocation9 + $0x468] ss:$12 sps:$4 sm:$0xff]  }
 0x228   :  { %2425 = vmatpush1.bf16.msra.mxu0 %v6151_v42  ;;  %v6232_v42 = vld [vmem:[#allocation9 + $0x484] ss:$12 sps:$4 sm:$0xff]  }
 0x229   :  { %2426 = vmatprep.subr.bf16.mxu0 %v6156_v43  ;;  %5588 = vmatpush3.bf16.msra.mxu1 %v6209_v45  ;;  %v6233_v43 = vld [vmem:[#allocation9 + $0x548] ss:$12 sps:$4 sm:$0xff]  }
 0x22a   :  { %5589 = vmatprep.subr.bf16.mxu1 %v6213_v46 }
 0x22c   :  { %2427 = vmatpush1.bf16.msra.mxu0 %v6154_v47 }
 0x22d   :  { %2428 = vmatprep.subr.bf16.mxu0 %v6159_v48  ;;  %5590 = vmatpush3.bf16.msra.mxu1 %v6214_v49 }
 0x22e   :  { %5591 = vmatprep.subr.bf16.mxu1 %v6218_v51 }
 0x230   :  { %2429 = vmatpush1.bf16.msra.mxu0 %v6157_v52 }
 0x231   :  { %2430 = vmatprep.subr.bf16.mxu0 %v6162_v53  ;;  %5592 = vmatpush3.bf16.msra.mxu1 %v6219_v54  ;;  %v6854_v54 = vld [vmem:[#allocation8 + $0x4] sm:$0xf] }
 0x232   :  { %5593 = vmatprep.subr.bf16.mxu1 %v6223_v27  ;;  %v6254_v27 = vld [vmem:[#allocation9 + $0x4e8] ss:$12 sps:$4 sm:$0xff]  }
 0x234   :  { %2431 = vmatpush1.bf16.msra.mxu0 %v6160_v55  ;;  %v1792_v55 = vrot.slane %v6854_v54, %v6826_v33 }
 0x235   :  { %2432 = vmatprep.subr.bf16.mxu0 %v6165_v56  ;;  %5594 = vmatpush3.bf16.msra.mxu1 %v6224_v29  ;;  %v1796_v56 = vrot.slane %v6854_v54, %v6830_v36  ;;  %v6258_v29 = vld [vmem:[#allocation9 + $0x5c0] ss:$12 sps:$4 sm:$0xff]  }
 0x236   :  { %5595 = vmatprep.subr.bf16.mxu1 %v6228_v39 }
 0x238   :  { %2433 = vmatpush1.bf16.msra.mxu0 %v6163_v57 }
 0x239   :  { %3113 = vmatprep.subr.bf16.mxu0 %v6168_v58  ;;  %5596 = vmatpush3.bf16.msra.mxu1 %v6229_v40  ;;  %v6260_v40 = vld [vmem:[#allocation9 + $0x510] ss:$12 sps:$4 sm:$0xff]  }
 0x23a   :  { %5603 = vmatprep.subr.bf16.mxu1 %v6233_v43 }
 0x23b   :  { %2451 = vmatmul.mubr.bf16.vlgmr.msra.gmra.mrb[8].mxu0 %v6822_v44 }
 0x23c   :  { %3114 = vmatpush1.bf16.msra.mxu0 %v6166_v59 }
 0x23d   :  { %3115 = vmatprep.subr.bf16.mxu0 %v6171_v60 }
 0x240   :  { %3116 = vmatpush1.bf16.msra.mxu0 %v6169_v61 }
 0x241   :  { %3117 = vmatprep.subr.bf16.mxu0 %v6174_v62 }
 0x244   :  { %3118 = vmatpush1.bf16.msra.mxu0 %v6172_v63 }
 0x245   :  { %3119 = vmatprep.subr.bf16.mxu0 %v6177_v0 }
 0x248   :  { %3120 = vmatpush1.bf16.msra.mxu0 %v6175_v1 }
 0x249   :  { %3121 = vmatprep.subr.bf16.mxu0 %v6180_v2 }
 0x24c   :  { %3122 = vmatpush1.bf16.msra.mxu0 %v6178_v3 }
 0x24d   :  { %3123 = vmatprep.subr.bf16.mxu0 %v6183_v4 }
 0x250   :  { %3124 = vmatpush1.bf16.msra.mxu0 %v6181_v5 }
 0x251   :  { %3125 = vmatprep.subr.bf16.mxu0 %v6186_v6 }
 0x254   :  { %3126 = vmatpush1.bf16.msra.mxu0 %v6184_v9  ;;  %v6230_v9 = vld [vmem:[#allocation9 + $0x480] ss:$12 sps:$4 sm:$0xff]  }
 0x255   :  { %3127 = vmatprep.subr.bf16.mxu0 %v6189_v10  ;;  %v6234_v10 = vld [vmem:[#allocation9 + $0x488] ss:$12 sps:$4 sm:$0xff]  }
 0x258   :  { %3128 = vmatpush1.bf16.msra.mxu0 %v6187_v11  ;;  %v6237_v11 = vld [vmem:[#allocation9 + $0x49c] ss:$12 sps:$4 sm:$0xff]  }
 0x259   :  { %3129 = vmatprep.subr.bf16.mxu0 %v6192_v12  ;;  %v6238_v12 = vld [vmem:[#allocation9 + $0x560] ss:$12 sps:$4 sm:$0xff]  }
 0x25c   :  { %3130 = vmatpush1.bf16.msra.mxu0 %v6190_v13  ;;  %v6235_v13 = vld [vmem:[#allocation9 + $0x498] ss:$12 sps:$4 sm:$0xff]  }
 0x25d   :  { %3131 = vmatprep.subr.bf16.mxu0 %v6197_v14  ;;  %v6239_v14 = vld [vmem:[#allocation9 + $0x4a0] ss:$12 sps:$4 sm:$0xff]  }
 0x260   :  { %3132 = vmatpush1.bf16.msra.mxu0 %v6195_v15  ;;  %v6242_v15 = vld [vmem:[#allocation9 + $0x4b4] ss:$12 sps:$4 sm:$0xff]  }
 0x261   :  { %3133 = vmatprep.subr.bf16.mxu0 %v6202_v17  ;;  %v6243_v17 = vld [vmem:[#allocation9 + $0x578] ss:$12 sps:$4 sm:$0xff]  }
 0x264   :  { %3134 = vmatpush1.bf16.msra.mxu0 %v6200_v18  ;;  %v6240_v18 = vld [vmem:[#allocation9 + $0x4b0] ss:$12 sps:$4 sm:$0xff]  }
 0x265   :  { %3135 = vmatprep.subr.bf16.mxu0 %v6207_v19  ;;  %v6244_v19 = vld [vmem:[#allocation9 + $0x4b8] ss:$12 sps:$4 sm:$0xff]  }
 0x268   :  { %3136 = vmatpush1.bf16.msra.mxu0 %v6205_v20  ;;  %v6247_v20 = vld [vmem:[#allocation9 + $0x4cc] ss:$12 sps:$4 sm:$0xff]  }
 0x269   :  { %3137 = vmatprep.subr.bf16.mxu0 %v6212_v21  ;;  %v6248_v21 = vld [vmem:[#allocation9 + $0x590] ss:$12 sps:$4 sm:$0xff]  }
 0x26c   :  { %3138 = vmatpush1.bf16.msra.mxu0 %v6210_v22  ;;  %v6245_v22 = vld [vmem:[#allocation9 + $0x4c8] ss:$12 sps:$4 sm:$0xff]  }
 0x26d   :  { %3139 = vmatprep.subr.bf16.mxu0 %v6217_v23  ;;  %v6249_v23 = vld [vmem:[#allocation9 + $0x4d0] ss:$12 sps:$4 sm:$0xff]  }
 0x26e   :  { %v5553_v25 = vpop.f32.mrb[4].mxu1 }
 0x26f   :  { %v5554_v28 = vpop.f32.mrb[5].mxu1 }
 0x270   :  { %v5555_v30 = vadd.f32 %v5554_v28, %v5553_v25  ;;  %v5556_v7 = vpop.f32.mrb[6].mxu1  ;;  %3140 = vmatpush1.bf16.msra.mxu0 %v6215_v24  ;;  %v6252_v24 = vld [vmem:[#allocation9 + $0x4e4] ss:$12 sps:$4 sm:$0xff]   ;;  %v6253_v25 = vld [vmem:[#allocation9 + $0x5a8] ss:$12 sps:$4 sm:$0xff]  }
 0x271   :  { %v5557_v32 = vpop.f32.mrb[7].mxu1  ;;  %3141 = vmatprep.subr.bf16.mxu0 %v6222_v26  ;;  %v6250_v26 = vld [vmem:[#allocation9 + $0x4e0] ss:$12 sps:$4 sm:$0xff]   ;;  %v6257_v28 = vld [vmem:[#allocation9 + $0x4fc] ss:$12 sps:$4 sm:$0xff]  }
 0x272   :  { %v5558_v34 = vadd.f32 %v5557_v32, %v5556_v7  ;;  %v6259_v7 = vld [vmem:[#allocation9 + $0x500] ss:$12 sps:$4 sm:$0xff]  }
 0x273   :  { %v6262_v32 = vld [vmem:[#allocation9 + $0x514] ss:$12 sps:$4 sm:$0xff]  }
 0x274   :  { %3142 = vmatpush1.bf16.msra.mxu0 %v6220_v31  ;;  %v1800_v31 = vrot.slane %v6854_v54, %v6828_v35 }
 0x275   :  { %3143 = vmatprep.subr.bf16.mxu0 %v6227_v38  ;;  %v1804_v38 = vrot.slane %v6854_v54, %v6832_v37  ;;  %v6269_v54 = vld [vmem:[#allocation9 + $0x530] ss:$12 sps:$4 sm:$0xff]  }
 0x278   :  { %3144 = vmatpush1.bf16.msra.mxu0 %v6225_v41  ;;  %v6264_v41 = vld [vmem:[#allocation9 + $0x518] ss:$12 sps:$4 sm:$0xff]  }
 0x279   :  { %3156 = vmatprep.subr.bf16.mxu0 %v6232_v42 }
 0x28e   :  { %v5575_v45 = vpop.f32.mrb[8].mxu1 }
 0x28f   :  { %v5576_v46 = vpop.f32.mrb[9].mxu1 }
 0x290   :  { %v5577_v47 = vadd.f32 %v5576_v46, %v5575_v45  ;;  %v5578_v48 = vpop.f32.mrb[10].mxu1  ;;  %v6267_v45 = vld [vmem:[#allocation9 + $0x52c] ss:$12 sps:$4 sm:$0xff]   ;;  %v6268_v46 = vld [vmem:[#allocation9 + $0x5f0] ss:$12 sps:$4 sm:$0xff]  }
 0x291   :  { %v5579_v49 = vpop.f32.mrb[11].mxu1 }
 0x292   :  { %v6850_v51 = vadd.f32 %v5577_v47, %v5555_v30  ;;  %v5580_v52 = vadd.f32 %v5579_v49, %v5578_v48  ;;  %v6255_v30 = vld [vmem:[#allocation9 + $0x4f8] ss:$12 sps:$4 sm:$0xff]  }
 0x294   :  { %v6852_v53 = vadd.f32 %v5580_v52, %v5558_v34  ;;  %v6263_v34 = vld [vmem:[#allocation9 + $0x5d8] ss:$12 sps:$4 sm:$0xff]  }
 0x2ee   :  { %v2366_v57 = vpop.f32.mrb[12].mxu1 }
 0x2ef   :  { %v5677_v58 = vadd.f32 %v2366_v57, %v1792_v55  ;;  %v2368_v59 = vpop.f32.mrb[13].mxu1 }
 0x2f0   :  { %v5678_v60 = vadd.f32 %v2368_v59, %v1796_v56  ;;  %v2370_v61 = vpop.f32.mrb[14].mxu1  ;;  %v6272_v59 = vld [vmem:[#allocation9 + $0x544] ss:$12 sps:$4 sm:$0xff]  }
 0x2f1   :  { %v5679_v62 = vadd.f32 %v2370_v61, %v1792_v55  ;;  %v2372_v63 = vpop.f32.mrb[15].mxu1  ;;  %v2461_v1 = vmax.f32 %v5677_v58, 0.0 }
 0x2f2   :  { %v5680_v0 = vadd.f32 %v2372_v63, %v1796_v56  ;;  %v2462_v3 = vmax.f32 %v5678_v60, 0.0  ;;  %v6265_v56 = vld [vmem:[#allocation9 + $0x528] ss:$12 sps:$4 sm:$0xff]  }
 0x2f3   :  { %v2465_v2 = vmax.f32 %v5679_v62, 0.0  ;;  %v6275_v60 = vld [vmem:[#allocation6 + $0x24] ss:$48 sps:$4 sm:$0xff]  }
 0x2f4   :  { %v2466_v4 = vmax.f32 %v5680_v0, 0.0 }
 0x2f5   :  { %v2597_v5 = vpack.c.bf16 %v2465_v2, %v2461_v1  ;;  %v6270_v1 = vld [vmem:[#allocation9 + $0x540] ss:$12 sps:$4 sm:$0xff]   ;;  %v6273_v2 = vld [vmem:[#allocation6 + $0x20] ss:$48 sps:$4 sm:$0xff]  }
 0x2f6   :  { %v2598_v6 = vpack.c.bf16 %v2466_v4, %v2462_v3  ;;  %v6278_v3 = vld [vmem:[#allocation9 + $0x55c] ss:$12 sps:$4 sm:$0xff]  }
 0x2f7   :  { %v6281_v4 = vld [vmem:[#allocation6 + $0x84] ss:$48 sps:$4 sm:$0xff]  }
 0x2f8   :  { %3145 = vmatprep.mubr.bf16.mxu0 %v2598_v6  ;;  %3231 = vmatprep.mubr.bf16.mxu1 %v2598_v6  ;;  %v6279_v6 = vld [vmem:[#allocation6 + $0x80] ss:$48 sps:$4 sm:$0xff]  }
 0x2f9   :  { %3146 = vmatmul.mubr.bf16.vlgmr.msra.gmra.mrb[4].mxu0 %v2597_v5  ;;  %3232 = vmatmul.mubr.bf16.vlgmr.msra.gmra.mrb[16].mxu1 %v2597_v5  ;;  %v6276_v5 = vld [vmem:[#allocation9 + $0x558] ss:$12 sps:$4 sm:$0xff]  }
 0x2fa   :  { %3157 = vmatpush1.bf16.msra.mxu0 %v6230_v9  ;;  %5604 = vmatpush3.bf16.msra.mxu1 %v6234_v10  ;;  %v6284_v9 = vld [vmem:[#allocation9 + $0x574] ss:$12 sps:$4 sm:$0xff]   ;;  %v6287_v10 = vld [vmem:[#allocation6 + $0xe4] ss:$48 sps:$4 sm:$0xff]  }
 0x2fb   :  { %3158 = vmatprep.subr.bf16.mxu0 %v6237_v11  ;;  %5605 = vmatprep.subr.bf16.mxu1 %v6238_v12  ;;  %v6282_v11 = vld [vmem:[#allocation9 + $0x570] ss:$12 sps:$4 sm:$0xff]   ;;  %v6285_v12 = vld [vmem:[#allocation6 + $0xe0] ss:$48 sps:$4 sm:$0xff]  }
 0x2fe   :  { %3159 = vmatpush1.bf16.msra.mxu0 %v6235_v13  ;;  %5606 = vmatpush3.bf16.msra.mxu1 %v6239_v14  ;;  %v6290_v13 = vld [vmem:[#allocation9 + $0x58c] ss:$12 sps:$4 sm:$0xff]  }
 0x2ff   :  { %3160 = vmatprep.subr.bf16.mxu0 %v6242_v15  ;;  %5607 = vmatprep.subr.bf16.mxu1 %v6243_v17  ;;  %v6293_v14 = vld [vmem:[#allocation6 + $0x144] ss:$48 sps:$4 sm:$0xff]   ;;  %v6291_v17 = vld [vmem:[#allocation6 + $0x140] ss:$48 sps:$4 sm:$0xff]  }
 0x300   :  { %v6288_v15 = vld [vmem:[#allocation9 + $0x588] ss:$12 sps:$4 sm:$0xff]  }
 0x302   :  { %3161 = vmatpush1.bf16.msra.mxu0 %v6240_v18  ;;  %5608 = vmatpush3.bf16.msra.mxu1 %v6244_v19  ;;  %v6296_v18 = vld [vmem:[#allocation9 + $0x5a4] ss:$12 sps:$4 sm:$0xff]   ;;  %v6299_v19 = vld [vmem:[#allocation6 + $0x1a4] ss:$48 sps:$4 sm:$0xff]  }
 0x303   :  { %3162 = vmatprep.subr.bf16.mxu0 %v6247_v20  ;;  %5609 = vmatprep.subr.bf16.mxu1 %v6248_v21  ;;  %v6294_v20 = vld [vmem:[#allocation9 + $0x5a0] ss:$12 sps:$4 sm:$0xff]   ;;  %v6297_v21 = vld [vmem:[#allocation6 + $0x1a0] ss:$48 sps:$4 sm:$0xff]  }
 0x306   :  { %3163 = vmatpush1.bf16.msra.mxu0 %v6245_v22  ;;  %5610 = vmatpush3.bf16.msra.mxu1 %v6249_v23  ;;  %v6302_v22 = vld [vmem:[#allocation9 + $0x5bc] ss:$12 sps:$4 sm:$0xff]  }
 0x307   :  { %3164 = vmatprep.subr.bf16.mxu0 %v6252_v24  ;;  %5611 = vmatprep.subr.bf16.mxu1 %v6253_v25  ;;  %v6305_v23 = vld [vmem:[#allocation6 + $0x204] ss:$48 sps:$4 sm:$0xff]   ;;  %v6303_v25 = vld [vmem:[#allocation6 + $0x200] ss:$48 sps:$4 sm:$0xff]  }
 0x308   :  { %v6300_v24 = vld [vmem:[#allocation9 + $0x5b8] ss:$12 sps:$4 sm:$0xff]  }
 0x30a   :  { %3165 = vmatpush1.bf16.msra.mxu0 %v6250_v26  ;;  %5612 = vmatpush3.bf16.msra.mxu1 %v6254_v27  ;;  %v6308_v26 = vld [vmem:[#allocation9 + $0x5d4] ss:$12 sps:$4 sm:$0xff]   ;;  %v6311_v27 = vld [vmem:[#allocation6 + $0x264] ss:$48 sps:$4 sm:$0xff]  }
 0x30b   :  { %3166 = vmatprep.subr.bf16.mxu0 %v6257_v28  ;;  %5613 = vmatprep.subr.bf16.mxu1 %v6258_v29  ;;  %v6306_v28 = vld [vmem:[#allocation9 + $0x5d0] ss:$12 sps:$4 sm:$0xff]   ;;  %v6309_v29 = vld [vmem:[#allocation6 + $0x260] ss:$48 sps:$4 sm:$0xff]  }
 0x30e   :  { %3167 = vmatpush1.bf16.msra.mxu0 %v6255_v30  ;;  %5614 = vmatpush3.bf16.msra.mxu1 %v6259_v7  ;;  %v2452_v39 = vpop.f32.mrb[8].mxu0  ;;  %v6314_v30 = vld [vmem:[#allocation9 + $0x5ec] ss:$12 sps:$4 sm:$0xff]  }
 0x30f   :  { %v5681_v42 = vadd.f32 %v2452_v39, %v1800_v31  ;;  %v2454_v43 = vpop.f32.mrb[9].mxu0  ;;  %3168 = vmatprep.subr.bf16.mxu0 %v6262_v32  ;;  %5615 = vmatprep.subr.bf16.mxu1 %v6263_v34  ;;  %v6317_v7 = vld [vmem:[#allocation6 + $0x2c4] ss:$48 sps:$4 sm:$0xff]   ;;  %v6315_v32 = vld [vmem:[#allocation6 + $0x2c0] ss:$48 sps:$4 sm:$0xff]  }
 0x310   :  { %v5682_v47 = vadd.f32 %v2454_v43, %v1804_v38  ;;  %v2456_v48 = vpop.f32.mrb[10].mxu0  ;;  %v6320_v34 = vld [vmem:[#allocation6 + $0x324] ss:$48 sps:$4 sm:$0xff]  }
 0x311   :  { %v5683_v49 = vadd.f32 %v2456_v48, %v1800_v31  ;;  %v2458_v52 = vpop.f32.mrb[11].mxu0  ;;  %v2463_v57 = vmax.f32 %v5681_v42, 0.0  ;;  %v6312_v31 = vld [vmem:[#allocation9 + $0x5e8] ss:$12 sps:$4 sm:$0xff]  }
 0x312   :  { %v5684_v55 = vadd.f32 %v2458_v52, %v1804_v38  ;;  %3169 = vmatpush1.bf16.msra.mxu0 %v6260_v40  ;;  %5616 = vmatpush3.bf16.msra.mxu1 %v6264_v41  ;;  %v2464_v61 = vmax.f32 %v5682_v47, 0.0  ;;  %v6318_v38 = vld [vmem:[#allocation6 + $0x320] ss:$48 sps:$4 sm:$0xff]   ;;  %v6323_v39 = vld [vmem:[#allocation6 + $0x384] ss:$48 sps:$4 sm:$0xff]  }
 0x313   :  { %v2467_v58 = vmax.f32 %v5683_v49, 0.0  ;;  %3170 = vmatprep.subr.bf16.mxu0 %v6267_v45  ;;  %5617 = vmatprep.subr.bf16.mxu1 %v6268_v46  ;;  %v6321_v40 = vld [vmem:[#allocation6 + $0x380] ss:$48 sps:$4 sm:$0xff]   ;;  %v6326_v41 = vld [vmem:[#allocation6 + $0x3e4] ss:$48 sps:$4 sm:$0xff]  }
 0x314   :  { %v2468_v62 = vmax.f32 %v5684_v55, 0.0  ;;  %v6324_v42 = vld [vmem:[#allocation6 + $0x3e0] ss:$48 sps:$4 sm:$0xff]   ;;  %v6329_v43 = vld [vmem:[#allocation6 + $0x444] ss:$48 sps:$4 sm:$0xff]  }
 0x315   :  { %v6864_v63 = vpack.c.bf16 %v2467_v58, %v2463_v57  ;;  %v6327_v45 = vld [vmem:[#allocation6 + $0x440] ss:$48 sps:$4 sm:$0xff]   ;;  %v6332_v46 = vld [vmem:[#allocation6 + $0x4a4] ss:$48 sps:$4 sm:$0xff]  }
 0x316   :  { %v2600_v0 = vpack.c.bf16 %v2468_v62, %v2464_v61  ;;  %3171 = vmatpush1.bf16.msra.mxu0 %v6265_v56  ;;  %5618 = vmatpush3.bf16.msra.mxu1 %v6269_v54  ;;  %v6330_v47 = vld [vmem:[#allocation6 + $0x4a0] ss:$48 sps:$4 sm:$0xff]   ;;  %v6335_v48 = vld [vmem:[#allocation6 + $0x504] ss:$48 sps:$4 sm:$0xff]  }
 0x317   :  { %3172 = vmatprep.subr.bf16.mxu0 %v6272_v59  ;;  %3897 = vmatprep.subr.bf16.mxu1 %v6275_v60  ;;  %v6333_v49 = vld [vmem:[#allocation6 + $0x500] ss:$48 sps:$4 sm:$0xff]   ;;  %v6338_v52 = vld [vmem:[#allocation6 + $0x564] ss:$48 sps:$4 sm:$0xff]  }
 0x318   :  { %3188 = vmatprep.mubr.bf16.mxu0 %v2600_v0  ;;  %3272 = vmatprep.mubr.bf16.mxu1 %v2600_v0  ;;  %v6336_v55 = vld [vmem:[#allocation6 + $0x560] ss:$48 sps:$4 sm:$0xff]   ;;  %v6341_v56 = vld [vmem:[#allocation6 + $0x5c4] ss:$48 sps:$4 sm:$0xff]  }
 0x319   :  { %3273 = vmatmul.mubr.bf16.vlgmr.msra.gmra.mrb[20].mxu1 %v6864_v63  ;;  %v6339_v54 = vld [vmem:[#allocation6 + $0x5c0] ss:$48 sps:$4 sm:$0xff]   ;;  %v6344_v57 = vld [vmem:[#allocation6 + $0x624] ss:$48 sps:$4 sm:$0xff]  }
 0x31a   :  { %3173 = vmatpush1.bf16.msra.mxu0 %v6270_v1  ;;  %3898 = vmatpush1.bf16.msra.mxu1 %v6273_v2  ;;  %v6342_v58 = vld [vmem:[#allocation6 + $0x620] ss:$48 sps:$4 sm:$0xff]   ;;  %v6347_v59 = vld [vmem:[#allocation6 + $0x684] ss:$48 sps:$4 sm:$0xff]  }
 0x31b   :  { %3174 = vmatprep.subr.bf16.mxu0 %v6278_v3  ;;  %3899 = vmatprep.subr.bf16.mxu1 %v6281_v4  ;;  %v6345_v60 = vld [vmem:[#allocation6 + $0x680] ss:$48 sps:$4 sm:$0xff]   ;;  %v6350_v61 = vld [vmem:[#allocation6 + $0x6e4] ss:$48 sps:$4 sm:$0xff]  }
 0x31c   :  { %3929 = vmatprep.mubr.bf16.mxu1 %v6812_v50  ;;  %v6348_v62 = vld [vmem:[#allocation6 + $0x6e0] ss:$48 sps:$4 sm:$0xff]   ;;  %v6356_v1 = vld [vmem:[#allocation6 + $0x7a4] ss:$48 sps:$4 sm:$0xff]  }
 0x31d   :  { %v6351_v0 = vld [vmem:[#allocation6 + $0x740] ss:$48 sps:$4 sm:$0xff]   ;;  %v6359_v3 = vld [vmem:[#allocation6 + $0x804] ss:$48 sps:$4 sm:$0xff]  }
 0x31e   :  { %3175 = vmatpush1.bf16.msra.mxu0 %v6276_v5  ;;  %3900 = vmatpush1.bf16.msra.mxu1 %v6279_v6  ;;  %v6354_v2 = vld [vmem:[#allocation6 + $0x7a0] ss:$48 sps:$4 sm:$0xff]   ;;  %v6362_v5 = vld [vmem:[#allocation6 + $0x864] ss:$48 sps:$4 sm:$0xff]  }
 0x31f   :  { %3176 = vmatprep.subr.bf16.mxu0 %v6284_v9  ;;  %3901 = vmatprep.subr.bf16.mxu1 %v6287_v10  ;;  %v6357_v4 = vld [vmem:[#allocation6 + $0x800] ss:$48 sps:$4 sm:$0xff]   ;;  %v6365_v9 = vld [vmem:[#allocation6 + $0x8c4] ss:$48 sps:$4 sm:$0xff]  }
 0x320   :  { %v6360_v6 = vld [vmem:[#allocation6 + $0x860] ss:$48 sps:$4 sm:$0xff]  }
 0x321   :  { %v6363_v10 = vld [vmem:[#allocation6 + $0x8c0] ss:$48 sps:$4 sm:$0xff]  }
 0x322   :  { %3177 = vmatpush1.bf16.msra.mxu0 %v6282_v11  ;;  %3902 = vmatpush1.bf16.msra.mxu1 %v6285_v12  ;;  %v6368_v11 = vld [vmem:[#allocation6 + $0x2c] ss:$48 sps:$4 sm:$0xff]  }
 0x323   :  { %3178 = vmatprep.subr.bf16.mxu0 %v6290_v13  ;;  %3903 = vmatprep.subr.bf16.mxu1 %v6293_v14  ;;  %v6438_v12 = vld [vmem:[#allocation9 + $0x600] ss:$12 sps:$4 sm:$0xff]   ;;  %v6440_v13 = vld [vmem:[#allocation9 + $0x604] ss:$12 sps:$4 sm:$0xff]   ;;  %v6443_v14 = vld [vmem:[#allocation9 + $0x61c] ss:$12 sps:$4 sm:$0xff]  }
 0x326   :  { %3179 = vmatpush1.bf16.msra.mxu0 %v6288_v15  ;;  %3904 = vmatpush1.bf16.msra.mxu1 %v6291_v17  ;;  %v6366_v15 = vld [vmem:[#allocation6 + $0x28] ss:$48 sps:$4 sm:$0xff]   ;;  %v6371_v17 = vld [vmem:[#allocation6 + $0x8c] ss:$48 sps:$4 sm:$0xff]  }
 0x327   :  { %3180 = vmatprep.subr.bf16.mxu0 %v6296_v18  ;;  %3905 = vmatprep.subr.bf16.mxu1 %v6299_v19  ;;  %v6441_v18 = vld [vmem:[#allocation9 + $0x618] ss:$12 sps:$4 sm:$0xff]   ;;  %v6446_v19 = vld [vmem:[#allocation9 + $0x634] ss:$12 sps:$4 sm:$0xff]  }
 0x32a   :  { %3181 = vmatpush1.bf16.msra.mxu0 %v6294_v20  ;;  %3906 = vmatpush1.bf16.msra.mxu1 %v6297_v21  ;;  %v6369_v20 = vld [vmem:[#allocation6 + $0x88] ss:$48 sps:$4 sm:$0xff]   ;;  %v6374_v21 = vld [vmem:[#allocation6 + $0xec] ss:$48 sps:$4 sm:$0xff]  }
 0x32b   :  { %3182 = vmatprep.subr.bf16.mxu0 %v6302_v22  ;;  %3907 = vmatprep.subr.bf16.mxu1 %v6305_v23  ;;  %v6444_v22 = vld [vmem:[#allocation9 + $0x630] ss:$12 sps:$4 sm:$0xff]   ;;  %v6449_v23 = vld [vmem:[#allocation9 + $0x64c] ss:$12 sps:$4 sm:$0xff]  }
 0x32e   :  { %3183 = vmatpush1.bf16.msra.mxu0 %v6300_v24  ;;  %3908 = vmatpush1.bf16.msra.mxu1 %v6303_v25  ;;  %v6372_v24 = vld [vmem:[#allocation6 + $0xe8] ss:$48 sps:$4 sm:$0xff]   ;;  %v6377_v25 = vld [vmem:[#allocation6 + $0x14c] ss:$48 sps:$4 sm:$0xff]  }
 0x32f   :  { %3184 = vmatprep.subr.bf16.mxu0 %v6308_v26  ;;  %3909 = vmatprep.subr.bf16.mxu1 %v6311_v27  ;;  %v6447_v26 = vld [vmem:[#allocation9 + $0x648] ss:$12 sps:$4 sm:$0xff]   ;;  %v6452_v27 = vld [vmem:[#allocation9 + $0x664] ss:$12 sps:$4 sm:$0xff]  }
 0x332   :  { %3185 = vmatpush1.bf16.msra.mxu0 %v6306_v28  ;;  %3910 = vmatpush1.bf16.msra.mxu1 %v6309_v29  ;;  %v6375_v28 = vld [vmem:[#allocation6 + $0x148] ss:$48 sps:$4 sm:$0xff]   ;;  %v6380_v29 = vld [vmem:[#allocation6 + $0x1ac] ss:$48 sps:$4 sm:$0xff]  }
 0x333   :  { %3186 = vmatprep.subr.bf16.mxu0 %v6314_v30  ;;  %3911 = vmatprep.subr.bf16.mxu1 %v6317_v7  ;;  %v6455_v30 = vld [vmem:[#allocation9 + $0x67c] ss:$12 sps:$4 sm:$0xff]  }
 0x334   :  { %v6378_v7 = vld [vmem:[#allocation6 + $0x1a8] ss:$48 sps:$4 sm:$0xff]  }
 0x336   :  { %3187 = vmatpush1.bf16.msra.mxu0 %v6312_v31  ;;  %3912 = vmatpush1.bf16.msra.mxu1 %v6315_v32  ;;  %v6383_v31 = vld [vmem:[#allocation6 + $0x20c] ss:$48 sps:$4 sm:$0xff]   ;;  %v6453_v32 = vld [vmem:[#allocation9 + $0x678] ss:$12 sps:$4 sm:$0xff]  }
 0x337   :  { %3913 = vmatprep.subr.bf16.mxu1 %v6320_v34  ;;  %4721 = vmatprep.subr.bf16.mxu0 %v6440_v13  ;;  %v6458_v34 = vld [vmem:[#allocation9 + $0x694] ss:$12 sps:$4 sm:$0xff]   ;;  %v6408_v13 = vld [vmem:[#allocation6 + $0x568] ss:$48 sps:$4 sm:$0xff]  }
 0x339   :  { %3189 = vmatmul.mubr.bf16.vlgmr.msra.gmra.mrb[4].mxu0 %v6864_v63  ;;  %v6353_v63 = vld [vmem:[#allocation6 + $0x744] ss:$48 sps:$4 sm:$0xff]  }
 0x33a   :  { %3914 = vmatpush1.bf16.msra.mxu1 %v6318_v38  ;;  %4722 = vmatpush1.bf16.msra.mxu0 %v6438_v12  ;;  %v6381_v38 = vld [vmem:[#allocation6 + $0x208] ss:$48 sps:$4 sm:$0xff]   ;;  %v6410_v12 = vld [vmem:[#allocation6 + $0x56c] ss:$48 sps:$4 sm:$0xff]  }
 0x33b   :  { %3915 = vmatprep.subr.bf16.mxu1 %v6323_v39  ;;  %4723 = vmatprep.subr.bf16.mxu0 %v6443_v14  ;;  %v6386_v39 = vld [vmem:[#allocation6 + $0x26c] ss:$48 sps:$4 sm:$0xff]  }
 0x33c   :  { %v6413_v14 = vld [vmem:[#allocation6 + $0x5cc] ss:$48 sps:$4 sm:$0xff]  }
 0x33e   :  { %3916 = vmatpush1.bf16.msra.mxu1 %v6321_v40  ;;  %4724 = vmatpush1.bf16.msra.mxu0 %v6441_v18  ;;  %v6456_v40 = vld [vmem:[#allocation9 + $0x690] ss:$12 sps:$4 sm:$0xff]  }
 0x33f   :  { %3917 = vmatprep.subr.bf16.mxu1 %v6326_v41  ;;  %4725 = vmatprep.subr.bf16.mxu0 %v6446_v19  ;;  %v6461_v41 = vld [vmem:[#allocation9 + $0x6ac] ss:$12 sps:$4 sm:$0xff]   ;;  %v6419_v19 = vld [vmem:[#allocation6 + $0x68c] ss:$48 sps:$4 sm:$0xff]  }
 0x340   :  { %v6414_v18 = vld [vmem:[#allocation6 + $0x628] ss:$48 sps:$4 sm:$0xff]  }
 0x342   :  { %3918 = vmatpush1.bf16.msra.mxu1 %v6324_v42  ;;  %4726 = vmatpush1.bf16.msra.mxu0 %v6444_v22  ;;  %v6384_v42 = vld [vmem:[#allocation6 + $0x268] ss:$48 sps:$4 sm:$0xff]  }
 0x343   :  { %3919 = vmatprep.subr.bf16.mxu1 %v6329_v43  ;;  %4727 = vmatprep.subr.bf16.mxu0 %v6449_v23  ;;  %v6389_v43 = vld [vmem:[#allocation6 + $0x2cc] ss:$48 sps:$4 sm:$0xff]   ;;  %v6420_v22 = vld [vmem:[#allocation6 + $0x6e8] ss:$48 sps:$4 sm:$0xff]  }
 0x344   :  { %v6425_v23 = vld [vmem:[#allocation6 + $0x74c] ss:$48 sps:$4 sm:$0xff]  }
 0x346   :  { %3920 = vmatpush1.bf16.msra.mxu1 %v6327_v45  ;;  %4728 = vmatpush1.bf16.msra.mxu0 %v6447_v26  ;;  %v6459_v45 = vld [vmem:[#allocation9 + $0x6a8] ss:$12 sps:$4 sm:$0xff]   ;;  %v6426_v26 = vld [vmem:[#allocation6 + $0x7a8] ss:$48 sps:$4 sm:$0xff]  }
 0x347   :  { %3921 = vmatprep.subr.bf16.mxu1 %v6332_v46  ;;  %4729 = vmatprep.subr.bf16.mxu0 %v6452_v27  ;;  %v6464_v46 = vld [vmem:[#allocation9 + $0x6c4] ss:$12 sps:$4 sm:$0xff]  }
 0x348   :  { %v6431_v27 = vld [vmem:[#allocation6 + $0x80c] ss:$48 sps:$4 sm:$0xff]  }
 0x34a   :  { %3922 = vmatpush1.bf16.msra.mxu1 %v6330_v47  ;;  %v6387_v47 = vld [vmem:[#allocation6 + $0x2c8] ss:$48 sps:$4 sm:$0xff]  }
 0x34b   :  { %3923 = vmatprep.subr.bf16.mxu1 %v6335_v48  ;;  %v6392_v48 = vld [vmem:[#allocation6 + $0x32c] ss:$48 sps:$4 sm:$0xff]  }
 0x34e   :  { %3924 = vmatpush1.bf16.msra.mxu1 %v6333_v49  ;;  %v6462_v49 = vld [vmem:[#allocation9 + $0x6c0] ss:$12 sps:$4 sm:$0xff]  }
 0x34f   :  { %3925 = vmatprep.subr.bf16.mxu1 %v6338_v52  ;;  %v6469_v52 = vld [vmem:[#allocation9 + $0x6dc] ss:$12 sps:$4 sm:$0xff]  }
 0x352   :  { %3926 = vmatpush1.bf16.msra.mxu1 %v6336_v55  ;;  %v6390_v55 = vld [vmem:[#allocation6 + $0x328] ss:$48 sps:$4 sm:$0xff]  }
 0x353   :  { %3927 = vmatprep.subr.bf16.mxu1 %v6341_v56  ;;  %v6395_v56 = vld [vmem:[#allocation6 + $0x38c] ss:$48 sps:$4 sm:$0xff]  }
 0x356   :  { %3928 = vmatpush1.bf16.msra.mxu1 %v6339_v54  ;;  %v6467_v54 = vld [vmem:[#allocation9 + $0x6d8] ss:$12 sps:$4 sm:$0xff]  }
 0x357   :  { %3940 = vmatprep.subr.bf16.mxu1 %v6344_v57  ;;  %v6474_v57 = vld [vmem:[#allocation9 + $0x6f4] ss:$12 sps:$4 sm:$0xff]  }
 0x359   :  { %3930 = vmatmul.mubr.bf16.vlgmr.msra.gmra.mrb[24].mxu1 %v6816_v8 }
 0x35a   :  { %3941 = vmatpush1.bf16.msra.mxu1 %v6342_v58  ;;  %3972 = vmatprep.mubr.bf16.mxu1 %v6717_v16  ;;  %v6393_v58 = vld [vmem:[#allocation6 + $0x388] ss:$48 sps:$4 sm:$0xff]  }
 0x35b   :  { %3942 = vmatprep.subr.bf16.mxu1 %v6347_v59  ;;  %v6398_v59 = vld [vmem:[#allocation6 + $0x3ec] ss:$48 sps:$4 sm:$0xff]  }
 0x35e   :  { %3943 = vmatpush1.bf16.msra.mxu1 %v6345_v60  ;;  %v6472_v60 = vld [vmem:[#allocation9 + $0x6f0] ss:$12 sps:$4 sm:$0xff]  }
 0x35f   :  { %3944 = vmatprep.subr.bf16.mxu1 %v6350_v61  ;;  %v6479_v61 = vld [vmem:[#allocation9 + $0x70c] ss:$12 sps:$4 sm:$0xff]  }
 0x362   :  { %3945 = vmatpush1.bf16.msra.mxu1 %v6348_v62  ;;  %v6396_v62 = vld [vmem:[#allocation6 + $0x3e8] ss:$48 sps:$4 sm:$0xff]  }
 0x363   :  { %3946 = vmatprep.subr.bf16.mxu1 %v6353_v63  ;;  %v6401_v63 = vld [vmem:[#allocation6 + $0x44c] ss:$48 sps:$4 sm:$0xff]  }
 0x366   :  { %3947 = vmatpush1.bf16.msra.mxu1 %v6351_v0  ;;  %v6477_v0 = vld [vmem:[#allocation9 + $0x708] ss:$12 sps:$4 sm:$0xff]  }
 0x367   :  { %3948 = vmatprep.subr.bf16.mxu1 %v6356_v1  ;;  %v6484_v1 = vld [vmem:[#allocation9 + $0x724] ss:$12 sps:$4 sm:$0xff]  }
 0x36a   :  { %3949 = vmatpush1.bf16.msra.mxu1 %v6354_v2  ;;  %v6399_v2 = vld [vmem:[#allocation6 + $0x448] ss:$48 sps:$4 sm:$0xff]  }
 0x36b   :  { %3950 = vmatprep.subr.bf16.mxu1 %v6359_v3  ;;  %v6404_v3 = vld [vmem:[#allocation6 + $0x4ac] ss:$48 sps:$4 sm:$0xff]  }
 0x36e   :  { %3951 = vmatpush1.bf16.msra.mxu1 %v6357_v4  ;;  %v6482_v4 = vld [vmem:[#allocation9 + $0x720] ss:$12 sps:$4 sm:$0xff]  }
 0x36f   :  { %3952 = vmatprep.subr.bf16.mxu1 %v6362_v5  ;;  %v6489_v5 = vld [vmem:[#allocation9 + $0x73c] ss:$12 sps:$4 sm:$0xff]  }
 0x372   :  { %3953 = vmatpush1.bf16.msra.mxu1 %v6360_v6  ;;  %v6402_v6 = vld [vmem:[#allocation6 + $0x4a8] ss:$48 sps:$4 sm:$0xff]  }
 0x373   :  { %3954 = vmatprep.subr.bf16.mxu1 %v6365_v9  ;;  %v6407_v9 = vld [vmem:[#allocation6 + $0x50c] ss:$48 sps:$4 sm:$0xff]  }
 0x376   :  { %3955 = vmatpush1.bf16.msra.mxu1 %v6363_v10  ;;  %v6487_v10 = vld [vmem:[#allocation9 + $0x738] ss:$12 sps:$4 sm:$0xff]  }
 0x377   :  { %3983 = vmatprep.subr.bf16.mxu1 %v6368_v11  ;;  %v6405_v11 = vld [vmem:[#allocation6 + $0x508] ss:$48 sps:$4 sm:$0xff]  }
 0x379   :  { %3973 = vmatmul.mubr.bf16.vlgmr.msra.gmra.mrb[24].mxu1 %v6822_v44 }
 0x37a   :  { %3984 = vmatpush1.bf16.msra.mxu1 %v6366_v15  ;;  %4015 = vmatprep.mubr.bf16.mxu1 %v6812_v50  ;;  %v6450_v50 = vld [vmem:[#allocation9 + $0x660] ss:$12 sps:$4 sm:$0xff]  }
 0x37b   :  { %3985 = vmatprep.subr.bf16.mxu1 %v6371_v17  ;;  %4730 = vmatpush1.bf16.msra.mxu0 %v6450_v50  ;;  %v6411_v15 = vld [vmem:[#allocation6 + $0x5c8] ss:$48 sps:$4 sm:$0xff]   ;;  %v6416_v17 = vld [vmem:[#allocation6 + $0x62c] ss:$48 sps:$4 sm:$0xff]  }
 0x37c   :  { %4731 = vmatprep.subr.bf16.mxu0 %v6455_v30  ;;  %v6494_v50 = vld [vmem:[#allocation9 + $0x754] ss:$12 sps:$4 sm:$0xff]  }
 0x37e   :  { %3986 = vmatpush1.bf16.msra.mxu1 %v6369_v20  ;;  %v6417_v20 = vld [vmem:[#allocation6 + $0x688] ss:$48 sps:$4 sm:$0xff]  }
 0x37f   :  { %3987 = vmatprep.subr.bf16.mxu1 %v6374_v21  ;;  %4732 = vmatpush1.bf16.msra.mxu0 %v6453_v32  ;;  %v6422_v21 = vld [vmem:[#allocation6 + $0x6ec] ss:$48 sps:$4 sm:$0xff]  }
 0x380   :  { %4733 = vmatprep.subr.bf16.mxu0 %v6458_v34  ;;  %v6492_v32 = vld [vmem:[#allocation9 + $0x750] ss:$12 sps:$4 sm:$0xff]  }
 0x382   :  { %3988 = vmatpush1.bf16.msra.mxu1 %v6372_v24  ;;  %v6423_v24 = vld [vmem:[#allocation6 + $0x748] ss:$48 sps:$4 sm:$0xff]  }
 0x383   :  { %3989 = vmatprep.subr.bf16.mxu1 %v6377_v25  ;;  %4734 = vmatpush1.bf16.msra.mxu0 %v6456_v40  ;;  %v6428_v25 = vld [vmem:[#allocation6 + $0x7ac] ss:$48 sps:$4 sm:$0xff]   ;;  %v6499_v40 = vld [vmem:[#allocation9 + $0x76c] ss:$12 sps:$4 sm:$0xff]  }
 0x384   :  { %4735 = vmatprep.subr.bf16.mxu0 %v6461_v41  ;;  %v6435_v41 = vld [vmem:[#allocation6 + $0x8c8] ss:$48 sps:$4 sm:$0xff]  }
 0x386   :  { %3990 = vmatpush1.bf16.msra.mxu1 %v6375_v28  ;;  %v6434_v28 = vld [vmem:[#allocation6 + $0x86c] ss:$48 sps:$4 sm:$0xff]  }
 0x387   :  { %3991 = vmatprep.subr.bf16.mxu1 %v6380_v29  ;;  %4736 = vmatpush1.bf16.msra.mxu0 %v6459_v45  ;;  %v6466_v45 = vld [vmem:[#allocation9 + $0x608] ss:$12 sps:$4 sm:$0xff]  }
 0x388   :  { %4737 = vmatprep.subr.bf16.mxu0 %v6464_v46  ;;  %v6470_v46 = vld [vmem:[#allocation9 + $0x6e0] ss:$12 sps:$4 sm:$0xff]  }
 0x38a   :  { %3992 = vmatpush1.bf16.msra.mxu1 %v6378_v7 }
 0x38b   :  { %3993 = vmatprep.subr.bf16.mxu1 %v6383_v31  ;;  %4738 = vmatpush1.bf16.msra.mxu0 %v6462_v49  ;;  %v6432_v31 = vld [vmem:[#allocation6 + $0x868] ss:$48 sps:$4 sm:$0xff]   ;;  %v6475_v49 = vld [vmem:[#allocation9 + $0x6f8] ss:$12 sps:$4 sm:$0xff]  }
 0x38c   :  { %4739 = vmatprep.subr.bf16.mxu0 %v6469_v52  ;;  %v6476_v52 = vld [vmem:[#allocation9 + $0x638] ss:$12 sps:$4 sm:$0xff]  }
 0x38e   :  { %3994 = vmatpush1.bf16.msra.mxu1 %v6381_v38  ;;  %v6437_v38 = vld [vmem:[#allocation6 + $0x8cc] ss:$48 sps:$4 sm:$0xff]  }
 0x38f   :  { %3995 = vmatprep.subr.bf16.mxu1 %v6386_v39  ;;  %4740 = vmatpush1.bf16.msra.mxu0 %v6467_v54  ;;  %v6485_v54 = vld [vmem:[#allocation9 + $0x728] ss:$12 sps:$4 sm:$0xff]  }
 0x390   :  { %4741 = vmatprep.subr.bf16.mxu0 %v6474_v57  ;;  %v6486_v57 = vld [vmem:[#allocation9 + $0x668] ss:$12 sps:$4 sm:$0xff]  }
 0x392   :  { %3996 = vmatpush1.bf16.msra.mxu1 %v6384_v42  ;;  %v6497_v42 = vld [vmem:[#allocation9 + $0x768] ss:$12 sps:$4 sm:$0xff]  }
 0x393   :  { %3997 = vmatprep.subr.bf16.mxu1 %v6389_v43  ;;  %4742 = vmatpush1.bf16.msra.mxu0 %v6472_v60  ;;  %v6465_v43 = vld [vmem:[#allocation9 + $0x6c8] ss:$12 sps:$4 sm:$0xff]  }
 0x394   :  { %4743 = vmatprep.subr.bf16.mxu0 %v6479_v61 }
 0x396   :  { %3998 = vmatpush1.bf16.msra.mxu1 %v6387_v47  ;;  %v6504_v47 = vld [vmem:[#allocation9 + $0x784] ss:$12 sps:$4 sm:$0xff]  }
 0x397   :  { %3999 = vmatprep.subr.bf16.mxu1 %v6392_v48  ;;  %4744 = vmatpush1.bf16.msra.mxu0 %v6477_v0  ;;  %v6471_v48 = vld [vmem:[#allocation9 + $0x620] ss:$12 sps:$4 sm:$0xff]   ;;  %v6496_v0 = vld [vmem:[#allocation9 + $0x698] ss:$12 sps:$4 sm:$0xff]  }
 0x398   :  { %4745 = vmatprep.subr.bf16.mxu0 %v6484_v1 }
 0x39a   :  { %4000 = vmatpush1.bf16.msra.mxu1 %v6390_v55  ;;  %v6480_v55 = vld [vmem:[#allocation9 + $0x710] ss:$12 sps:$4 sm:$0xff]  }
 0x39b   :  { %4001 = vmatprep.subr.bf16.mxu1 %v6395_v56  ;;  %4746 = vmatpush1.bf16.msra.mxu0 %v6482_v4  ;;  %v6481_v56 = vld [vmem:[#allocation9 + $0x650] ss:$12 sps:$4 sm:$0xff]  }
 0x39c   :  { %4747 = vmatprep.subr.bf16.mxu0 %v6489_v5 }
 0x39e   :  { %4002 = vmatpush1.bf16.msra.mxu1 %v6393_v58  ;;  %v6490_v58 = vld [vmem:[#allocation9 + $0x740] ss:$12 sps:$4 sm:$0xff]  }
 0x39f   :  { %4003 = vmatprep.subr.bf16.mxu1 %v6398_v59  ;;  %4748 = vmatpush1.bf16.msra.mxu0 %v6487_v10  ;;  %v6491_v59 = vld [vmem:[#allocation9 + $0x680] ss:$12 sps:$4 sm:$0xff]  }
 0x3a0   :  { %4749 = vmatprep.subr.bf16.mxu0 %v6494_v50  ;;  %v6505_v50 = vld [vmem:[#allocation9 + $0x798] ss:$12 sps:$4 sm:$0xff]  }
 0x3a2   :  { %4004 = vmatpush1.bf16.msra.mxu1 %v6396_v62 }
 0x3a3   :  { %4005 = vmatprep.subr.bf16.mxu1 %v6401_v63  ;;  %4750 = vmatpush1.bf16.msra.mxu0 %v6492_v32  ;;  %v6508_v32 = vld [vmem:[#allocation9 + $0x7b0] ss:$12 sps:$4 sm:$0xff]  }
 0x3a4   :  { %4751 = vmatprep.subr.bf16.mxu0 %v6499_v40  ;;  %v6511_v40 = vld [vmem:[#allocation9 + $0x7c8] ss:$12 sps:$4 sm:$0xff]  }
 0x3a6   :  { %4006 = vmatpush1.bf16.msra.mxu1 %v6399_v2  ;;  %v6500_v2 = vld [vmem:[#allocation9 + $0x770] ss:$12 sps:$4 sm:$0xff]  }
 0x3a7   :  { %4007 = vmatprep.subr.bf16.mxu1 %v6404_v3  ;;  %4752 = vmatpush1.bf16.msra.mxu0 %v6497_v42  ;;  %v6516_v42 = vld [vmem:[#allocation9 + $0x7e4] ss:$12 sps:$4 sm:$0xff]  }
 0x3a8   :  { %4764 = vmatprep.subr.bf16.mxu0 %v6504_v47  ;;  %v6519_v47 = vld [vmem:[#allocation9 + $0x7fc] ss:$12 sps:$4 sm:$0xff]  }
 0x3aa   :  { %4008 = vmatpush1.bf16.msra.mxu1 %v6402_v6 }
 0x3ab   :  { %4009 = vmatprep.subr.bf16.mxu1 %v6407_v9  ;;  %v6501_v9 = vld [vmem:[#allocation9 + $0x6b0] ss:$12 sps:$4 sm:$0xff]  }
 0x3ae   :  { %4010 = vmatpush1.bf16.msra.mxu1 %v6405_v11  ;;  %v6529_v11 = vld [vmem:[#allocation9 + $0x848] ss:$12 sps:$4 sm:$0xff]  }
 0x3af   :  { %4011 = vmatprep.subr.bf16.mxu1 %v6410_v12  ;;  %v6882_v12 = vld [vmem:[#allocation8 + $0x8] sm:$0xf] }
 0x3b2   :  { %4012 = vmatpush1.bf16.msra.mxu1 %v6408_v13  ;;  %v3400_v13 = vrot.slane %v6882_v12, %v6826_v33 }
 0x3b3   :  { %4013 = vmatprep.subr.bf16.mxu1 %v6413_v14  ;;  %v3404_v14 = vrot.slane %v6882_v12, %v6830_v36 }
 0x3b6   :  { %4014 = vmatpush1.bf16.msra.mxu1 %v6411_v15 }
 0x3b7   :  { %4026 = vmatprep.subr.bf16.mxu1 %v6416_v17 }
 0x3b9   :  { %4016 = vmatmul.mubr.bf16.vlgmr.msra.gmra.mrb[28].mxu1 %v6816_v8  ;;  %v6429_v8 = vld [vmem:[#allocation6 + $0x808] ss:$48 sps:$4 sm:$0xff]  }
 0x3ba   :  { %4027 = vmatpush1.bf16.msra.mxu1 %v6414_v18  ;;  %4058 = vmatprep.mubr.bf16.mxu1 %v6717_v16 }
 0x3bb   :  { %4028 = vmatprep.subr.bf16.mxu1 %v6419_v19 }
 0x3be   :  { %4029 = vmatpush1.bf16.msra.mxu1 %v6417_v20 }
 0x3bf   :  { %4030 = vmatprep.subr.bf16.mxu1 %v6422_v21 }
 0x3c2   :  { %4031 = vmatpush1.bf16.msra.mxu1 %v6420_v22 }
 0x3c3   :  { %4032 = vmatprep.subr.bf16.mxu1 %v6425_v23 }
 0x3c6   :  { %4033 = vmatpush1.bf16.msra.mxu1 %v6423_v24 }
 0x3c7   :  { %4034 = vmatprep.subr.bf16.mxu1 %v6428_v25 }
 0x3ca   :  { %4035 = vmatpush1.bf16.msra.mxu1 %v6426_v26 }
 0x3cb   :  { %4036 = vmatprep.subr.bf16.mxu1 %v6431_v27 }
 0x3cc   :  { %v5597_v29 = vpop.f32.mrb[16].mxu1 }
 0x3cd   :  { %v5598_v16 = vpop.f32.mrb[17].mxu1 }
 0x3ce   :  { %v5599_v30 = vadd.f32 %v5598_v16, %v5597_v29  ;;  %4037 = vmatpush1.bf16.msra.mxu1 %v6429_v8  ;;  %v5600_v7 = vpop.f32.mrb[18].mxu1  ;;  %v6502_v8 = vld [vmem:[#allocation9 + $0x780] ss:$12 sps:$4 sm:$0xff]   ;;  %v6507_v29 = vld [vmem:[#allocation9 + $0x79c] ss:$12 sps:$4 sm:$0xff]  }
 0x3cf   :  { %v5601_v34 = vpop.f32.mrb[19].mxu1  ;;  %4038 = vmatprep.subr.bf16.mxu1 %v6434_v28  ;;  %v6530_v28 = vld [vmem:[#allocation9 + $0x788] ss:$12 sps:$4 sm:$0xff]   ;;  %v6534_v16 = vld [vmem:[#allocation9 + $0x860] ss:$12 sps:$4 sm:$0xff]  }
 0x3d0   :  { %v5602_v39 = vadd.f32 %v5601_v34, %v5600_v7  ;;  %v6510_v7 = vld [vmem:[#allocation9 + $0x7b4] ss:$12 sps:$4 sm:$0xff]   ;;  %v6540_v34 = vld [vmem:[#allocation9 + $0x7b8] ss:$12 sps:$4 sm:$0xff]  }
 0x3d2   :  { %4039 = vmatpush1.bf16.msra.mxu1 %v6432_v31  ;;  %v6539_v31 = vld [vmem:[#allocation9 + $0x878] ss:$12 sps:$4 sm:$0xff]  }
 0x3d3   :  { %4040 = vmatprep.subr.bf16.mxu1 %v6437_v38  ;;  %v6513_v38 = vld [vmem:[#allocation9 + $0x7cc] ss:$12 sps:$4 sm:$0xff]  }
 0x3d6   :  { %4041 = vmatpush1.bf16.msra.mxu1 %v6435_v41  ;;  %v6545_v41 = vld [vmem:[#allocation9 + $0x7d0] ss:$12 sps:$4 sm:$0xff]  }
 0x3d7   :  { %5625 = vmatprep.subr.bf16.mxu1 %v6465_v43  ;;  %v6549_v43 = vld [vmem:[#allocation9 + $0x8a8] ss:$12 sps:$4 sm:$0xff]  }
 0x3d9   :  { %4059 = vmatmul.mubr.bf16.vlgmr.msra.gmra.mrb[28].mxu1 %v6822_v44  ;;  %v6495_v44 = vld [vmem:[#allocation9 + $0x758] ss:$12 sps:$4 sm:$0xff]  }
 0x3da   :  { %5626 = vmatpush3.bf16.msra.mxu1 %v6466_v45  ;;  %v6514_v45 = vld [vmem:[#allocation9 + $0x7e0] ss:$12 sps:$4 sm:$0xff]  }
 0x3db   :  { %5627 = vmatprep.subr.bf16.mxu1 %v6470_v46  ;;  %v6550_v46 = vld [vmem:[#allocation9 + $0x7e8] ss:$12 sps:$4 sm:$0xff]  }
 0x3de   :  { %5628 = vmatpush3.bf16.msra.mxu1 %v6471_v48  ;;  %v6554_v48 = vld [vmem:[#allocation9 + $0x8c0] ss:$12 sps:$4 sm:$0xff]  }
 0x3df   :  { %5629 = vmatprep.subr.bf16.mxu1 %v6475_v49  ;;  %v6517_v49 = vld [vmem:[#allocation9 + $0x7f8] ss:$12 sps:$4 sm:$0xff]  }
 0x3e2   :  { %5630 = vmatpush3.bf16.msra.mxu1 %v6476_v52  ;;  %v6555_v52 = vld [vmem:[#allocation9 + $0x800] ss:$12 sps:$4 sm:$0xff]  }
 0x3e3   :  { %5631 = vmatprep.subr.bf16.mxu1 %v6480_v55  ;;  %v6522_v55 = vld [vmem:[#allocation9 + $0x814] ss:$12 sps:$4 sm:$0xff]  }
 0x3e6   :  { %5632 = vmatpush3.bf16.msra.mxu1 %v6481_v56  ;;  %v6559_v56 = vld [vmem:[#allocation9 + $0x8d8] ss:$12 sps:$4 sm:$0xff]  }
 0x3e7   :  { %5633 = vmatprep.subr.bf16.mxu1 %v6485_v54  ;;  %v6520_v54 = vld [vmem:[#allocation9 + $0x810] ss:$12 sps:$4 sm:$0xff]  }
 0x3ea   :  { %5634 = vmatpush3.bf16.msra.mxu1 %v6486_v57  ;;  %v6560_v57 = vld [vmem:[#allocation9 + $0x818] ss:$12 sps:$4 sm:$0xff]  }
 0x3eb   :  { %5635 = vmatprep.subr.bf16.mxu1 %v6490_v58  ;;  %v6525_v58 = vld [vmem:[#allocation9 + $0x82c] ss:$12 sps:$4 sm:$0xff]  }
 0x3ec   :  { %v5619_v60 = vpop.f32.mrb[20].mxu1 }
 0x3ed   :  { %v5620_v61 = vpop.f32.mrb[21].mxu1 }
 0x3ee   :  { %v5621_v62 = vadd.f32 %v5620_v61, %v5619_v60  ;;  %v5622_v63 = vpop.f32.mrb[22].mxu1  ;;  %5636 = vmatpush3.bf16.msra.mxu1 %v6491_v59  ;;  %v6564_v59 = vld [vmem:[#allocation9 + $0x8f0] ss:$12 sps:$4 sm:$0xff]  }
 0x3ef   :  { %v5623_v1 = vpop.f32.mrb[23].mxu1  ;;  %5637 = vmatprep.subr.bf16.mxu1 %v6495_v44  ;;  %v6523_v44 = vld [vmem:[#allocation9 + $0x828] ss:$12 sps:$4 sm:$0xff]   ;;  %v6565_v60 = vld [vmem:[#allocation9 + $0x830] ss:$12 sps:$4 sm:$0xff]  }
 0x3f0   :  { %v3275_v3 = vadd.f32 %v5621_v62, %v5599_v30  ;;  %v5624_v4 = vadd.f32 %v5623_v1, %v5622_v63  ;;  %v6535_v30 = vld [vmem:[#allocation9 + $0x7a0] ss:$12 sps:$4 sm:$0xff]   ;;  %v6528_v61 = vld [vmem:[#allocation9 + $0x844] ss:$12 sps:$4 sm:$0xff]   ;;  %v6533_v63 = vld [vmem:[#allocation9 + $0x85c] ss:$12 sps:$4 sm:$0xff]  }
 0x3f1   :  { %v6526_v62 = vld [vmem:[#allocation9 + $0x840] ss:$12 sps:$4 sm:$0xff]  }
 0x3f2   :  { %v6877_v5 = vadd.f32 %v3275_v3, %v6850_v51  ;;  %v3278_v6 = vadd.f32 %v5624_v4, %v5602_v39  ;;  %5638 = vmatpush3.bf16.msra.mxu1 %v6496_v0  ;;  %v6544_v39 = vld [vmem:[#allocation9 + $0x890] ss:$12 sps:$4 sm:$0xff]   ;;  %v6531_v0 = vld [vmem:[#allocation9 + $0x858] ss:$12 sps:$4 sm:$0xff]   ;;  %v6538_v1 = vld [vmem:[#allocation9 + $0x874] ss:$12 sps:$4 sm:$0xff]  }
 0x3f3   :  { %5639 = vmatprep.subr.bf16.mxu1 %v6500_v2  ;;  %v6536_v2 = vld [vmem:[#allocation9 + $0x870] ss:$12 sps:$4 sm:$0xff]   ;;  %v6543_v3 = vld [vmem:[#allocation9 + $0x88c] ss:$12 sps:$4 sm:$0xff]   ;;  %v6541_v4 = vld [vmem:[#allocation9 + $0x888] ss:$12 sps:$4 sm:$0xff]  }
 0x3f4   :  { %v6880_v10 = vadd.f32 %v3278_v6, %v6852_v53  ;;  %v6548_v6 = vld [vmem:[#allocation9 + $0x8a4] ss:$12 sps:$4 sm:$0xff]  }
 0x3f6   :  { %5640 = vmatpush3.bf16.msra.mxu1 %v6501_v9  ;;  %v6546_v9 = vld [vmem:[#allocation9 + $0x8a0] ss:$12 sps:$4 sm:$0xff]  }
 0x3f7   :  { %5647 = vmatprep.subr.bf16.mxu1 %v6529_v11  ;;  %v6553_v11 = vld [vmem:[#allocation9 + $0x8bc] ss:$12 sps:$4 sm:$0xff]  }
 0x44c   :  { %v3974_v51 = vpop.f32.mrb[24].mxu1 }
 0x44d   :  { %v5685_v15 = vadd.f32 %v3974_v51, %v3400_v13  ;;  %v3976_v17 = vpop.f32.mrb[25].mxu1  ;;  %v6556_v51 = vld [vmem:[#allocation9 + $0x8d0] ss:$12 sps:$4 sm:$0xff]  }
 0x44e   :  { %v5686_v18 = vadd.f32 %v3976_v17, %v3404_v14  ;;  %v3978_v19 = vpop.f32.mrb[26].mxu1  ;;  %v6561_v17 = vld [vmem:[#allocation9 + $0x8e8] ss:$12 sps:$4 sm:$0xff]  }
 0x44f   :  { %v5687_v20 = vadd.f32 %v3978_v19, %v3400_v13  ;;  %v3980_v21 = vpop.f32.mrb[27].mxu1  ;;  %v4069_v22 = vmax.f32 %v5685_v15, 0.0  ;;  %v6551_v13 = vld [vmem:[#allocation9 + $0x8b8] ss:$12 sps:$4 sm:$0xff]   ;;  %v3412_v19 = vrot.slane %v6882_v12, %v6832_v37 }
 0x450   :  { %v5688_v53 = vadd.f32 %v3980_v21, %v3404_v14  ;;  %v4070_v24 = vmax.f32 %v5686_v18, 0.0  ;;  %v6558_v14 = vld [vmem:[#allocation9 + $0x8d4] ss:$12 sps:$4 sm:$0xff]   ;;  %v6563_v15 = vld [vmem:[#allocation9 + $0x8ec] ss:$12 sps:$4 sm:$0xff]   ;;  %v3408_v18 = vrot.slane %v6882_v12, %v6828_v35 }
 0x451   :  { %v4073_v23 = vmax.f32 %v5687_v20, 0.0 }
 0x452   :  { %v4074_v25 = vmax.f32 %v5688_v53, 0.0 }
 0x453   :  { %v4205_v26 = vpack.c.bf16 %v4073_v23, %v4069_v22 }
 0x454   :  { %v4206_v27 = vpack.c.bf16 %v4074_v25, %v4070_v24 }
 0x456   :  { %4753 = vmatprep.mubr.bf16.mxu0 %v4206_v27  ;;  %4839 = vmatprep.mubr.bf16.mxu1 %v4206_v27 }
 0x457   :  { %4754 = vmatmul.mubr.bf16.vlgmr.msra.gmra.mrb[4].mxu0 %v4205_v26  ;;  %4840 = vmatmul.mubr.bf16.vlgmr.msra.gmra.mrb[32].mxu1 %v4205_v26 }
 0x458   :  { %4765 = vmatpush1.bf16.msra.mxu0 %v6502_v8  ;;  %5648 = vmatpush3.bf16.msra.mxu1 %v6530_v28 }
 0x459   :  { %4766 = vmatprep.subr.bf16.mxu0 %v6507_v29  ;;  %5649 = vmatprep.subr.bf16.mxu1 %v6534_v16 }
 0x45c   :  { %4767 = vmatpush1.bf16.msra.mxu0 %v6505_v50  ;;  %5650 = vmatpush3.bf16.msra.mxu1 %v6535_v30 }
 0x45d   :  { %4768 = vmatprep.subr.bf16.mxu0 %v6510_v7  ;;  %5651 = vmatprep.subr.bf16.mxu1 %v6539_v31 }
 0x460   :  { %4769 = vmatpush1.bf16.msra.mxu0 %v6508_v32  ;;  %5652 = vmatpush3.bf16.msra.mxu1 %v6540_v34  ;;  %v4913_v34 = vld [vmem:[#allocation11] sm:$0x7] }
 0x461   :  { %4770 = vmatprep.subr.bf16.mxu0 %v6513_v38  ;;  %5653 = vmatprep.subr.bf16.mxu1 %v6544_v39  ;;  %v4918_v38 = vrot.slane %v4913_v34, %v6826_v33  ;;  %v4922_v39 = vrot.slane %v4913_v34, %v6830_v36 }
 0x464   :  { %4771 = vmatpush1.bf16.msra.mxu0 %v6511_v40  ;;  %5654 = vmatpush3.bf16.msra.mxu1 %v6545_v41 }
 0x465   :  { %4772 = vmatprep.subr.bf16.mxu0 %v6516_v42  ;;  %5655 = vmatprep.subr.bf16.mxu1 %v6549_v43 }
 0x468   :  { %4773 = vmatpush1.bf16.msra.mxu0 %v6514_v45  ;;  %5656 = vmatpush3.bf16.msra.mxu1 %v6550_v46 }
 0x469   :  { %4774 = vmatprep.subr.bf16.mxu0 %v6519_v47  ;;  %5657 = vmatprep.subr.bf16.mxu1 %v6554_v48 }
 0x46c   :  { %4775 = vmatpush1.bf16.msra.mxu0 %v6517_v49  ;;  %5658 = vmatpush3.bf16.msra.mxu1 %v6555_v52 }
 0x46d   :  { %4776 = vmatprep.subr.bf16.mxu0 %v6522_v55  ;;  %5659 = vmatprep.subr.bf16.mxu1 %v6559_v56 }
 0x470   :  { %4777 = vmatpush1.bf16.msra.mxu0 %v6520_v54  ;;  %5660 = vmatpush3.bf16.msra.mxu1 %v6560_v57  ;;  %v4926_v54 = vrot.slane %v4913_v34, %v6828_v35 }
 0x471   :  { %4778 = vmatprep.subr.bf16.mxu0 %v6525_v58  ;;  %5661 = vmatprep.subr.bf16.mxu1 %v6564_v59 }
 0x474   :  { %4779 = vmatpush1.bf16.msra.mxu0 %v6523_v44  ;;  %5662 = vmatpush3.bf16.msra.mxu1 %v6565_v60 }
 0x475   :  { %4780 = vmatprep.subr.bf16.mxu0 %v6528_v61 }
 0x478   :  { %4781 = vmatpush1.bf16.msra.mxu0 %v6526_v62 }
 0x479   :  { %4782 = vmatprep.subr.bf16.mxu0 %v6533_v63 }
 0x47c   :  { %4783 = vmatpush1.bf16.msra.mxu0 %v6531_v0 }
 0x47d   :  { %4784 = vmatprep.subr.bf16.mxu0 %v6538_v1 }
 0x480   :  { %4785 = vmatpush1.bf16.msra.mxu0 %v6536_v2 }
 0x481   :  { %4786 = vmatprep.subr.bf16.mxu0 %v6543_v3 }
 0x484   :  { %4787 = vmatpush1.bf16.msra.mxu0 %v6541_v4 }
 0x485   :  { %4788 = vmatprep.subr.bf16.mxu0 %v6548_v6 }
 0x488   :  { %4789 = vmatpush1.bf16.msra.mxu0 %v6546_v9 }
 0x489   :  { %4790 = vmatprep.subr.bf16.mxu0 %v6553_v11 }
 0x48c   :  { %4791 = vmatpush1.bf16.msra.mxu0 %v6551_v13 }
 0x48d   :  { %4792 = vmatprep.subr.bf16.mxu0 %v6558_v14 }
 0x490   :  { %4793 = vmatpush1.bf16.msra.mxu0 %v6556_v51 }
 0x491   :  { %4794 = vmatprep.subr.bf16.mxu0 %v6563_v15 }
 0x494   :  { %4795 = vmatpush1.bf16.msra.mxu0 %v6561_v17 }
 0x4ac   :  { %v4060_v20 = vpop.f32.mrb[28].mxu1 }
 0x4ad   :  { %v5689_v21 = vadd.f32 %v4060_v20, %v3408_v18  ;;  %v4062_v53 = vpop.f32.mrb[29].mxu1 }
 0x4ae   :  { %v5690_v22 = vadd.f32 %v4062_v53, %v3412_v19  ;;  %v4064_v23 = vpop.f32.mrb[30].mxu1 }
 0x4af   :  { %v5691_v24 = vadd.f32 %v4064_v23, %v3408_v18  ;;  %v4066_v25 = vpop.f32.mrb[31].mxu1  ;;  %v4071_v27 = vmax.f32 %v5689_v21, 0.0 }
 0x4b0   :  { %v5692_v26 = vadd.f32 %v4066_v25, %v3412_v19  ;;  %v4072_v28 = vmax.f32 %v5690_v22, 0.0 }
 0x4b1   :  { %v4075_v8 = vmax.f32 %v5691_v24, 0.0 }
 0x4b2   :  { %v4076_v29 = vmax.f32 %v5692_v26, 0.0 }
 0x4b3   :  { %v4207_v16 = vpack.c.bf16 %v4075_v8, %v4071_v27 }
 0x4b4   :  { %v4208_v50 = vpack.c.bf16 %v4076_v29, %v4072_v28 }
 0x4b6   :  { %4796 = vmatprep.mubr.bf16.mxu0 %v4208_v50  ;;  %4880 = vmatprep.mubr.bf16.mxu1 %v4208_v50 }
 0x4b7   :  { %4797 = vmatmul.mubr.bf16.vlgmr.msra.gmra.mrb[4].mxu0 %v4207_v16  ;;  %4881 = vmatmul.mubr.bf16.vlgmr.msra.gmra.mrb[36].mxu1 %v4207_v16 }
 0x52a   :  { %v5641_v30 = vpop.f32.mrb[32].mxu1 }
 0x52b   :  { %v5642_v37 = vpop.f32.mrb[33].mxu1 }
 0x52c   :  { %v5643_v12 = vadd.f32 %v5642_v37, %v5641_v30  ;;  %v5644_v7 = vpop.f32.mrb[34].mxu1 }
 0x52d   :  { %v5645_v31 = vpop.f32.mrb[35].mxu1 }
 0x52e   :  { %v5646_v32 = vadd.f32 %v5645_v31, %v5644_v7 }
 0x58a   :  { %v4798_v40 = vpop.f32.mrb[4].mxu0  ;;  %v5663_v41 = vpop.f32.mrb[36].mxu1 }
 0x58b   :  { %v4930_v42 = vadd.f32 %v4918_v38, %v4798_v40  ;;  %v4800_v43 = vpop.f32.mrb[5].mxu0  ;;  %v5664_v45 = vpop.f32.mrb[37].mxu1 }
 0x58c   :  { %v4931_v46 = vadd.f32 %v4922_v39, %v4800_v43  ;;  %v5665_v47 = vadd.f32 %v5664_v45, %v5663_v41  ;;  %v4802_v48 = vpop.f32.mrb[6].mxu0  ;;  %v5666_v49 = vpop.f32.mrb[38].mxu1 }
 0x58d   :  { %4936 = vst [vmem:[#allocation12] sm:$0xff] %v4930_v42  ;;  %v4933_v52 = vadd.f32 %v4918_v38, %v4802_v48  ;;  %v4804_v55 = vpop.f32.mrb[7].mxu0  ;;  %v5667_v56 = vpop.f32.mrb[39].mxu1 }
 0x58e   :  { %4937 = vst [vmem:[#allocation12 + $0x8] sm:$0xff] %v4931_v46  ;;  %v4883_v57 = vadd.f32 %v5665_v47, %v5643_v12  ;;  %v4934_v33 = vadd.f32 %v4922_v39, %v4804_v55  ;;  %v5668_v58 = vadd.f32 %v5667_v56, %v5666_v49 }
 0x58f   :  { %4939 = vst [vmem:[#allocation12 + $0x18] sm:$0xff] %v4933_v52 }
 0x590   :  { %v4897_v36 = vadd.f32 %v4883_v57, %v6877_v5  ;;  %4940 = vst [vmem:[#allocation12 + $0x20] sm:$0xff] %v4934_v33  ;;  %v4886_v59 = vadd.f32 %v5668_v58, %v5646_v32 }
 0x592   :  { %v4932_v44 = vadd.f32 %v4926_v54, %v4897_v36  ;;  %v4900_v60 = vadd.f32 %v4886_v59, %v6880_v10 }
 0x594   :  { %4938 = vst [vmem:[#allocation12 + $0x10] sm:$0xff] %v4932_v44  ;;  %v4935_v61 = vadd.f32 %v4926_v54, %v4900_v60 }
 0x596   :  { %4941 = vst [vmem:[#allocation12 + $0x28] sm:$0xff] %v4935_v61 }
 0x597   :  { %6687 = shalt.err (!%p6684_p2)
}
 0x598   :  { %s6688_s10 = scalar_lea.hbm %s6917_s5, 768 }
 0x599   :  { %p6689_p3 = scmp.ne.s32.totalorder %s6917_s5, %s6688_s10  ;;  %p6692_p4 = scmp.lt.u32.totalorder %s6688_s10, %s6917_s5 }
 0x59b   :  { %p6694_p5 = pnand %p6692_p4, %p6689_p3 }
 0x59d   :  { %6697 = shalt.err (!%p6694_p5)
}
 0x59e   :  { %4953 = dma.vmem_to_hbm [thread:$0]  %s4948_s6, 768, %s6917_s5, [#allocation5], %s6713_s3, %s6713_s3, %s6714_s30  }
 0x59f   :  { %6704 = dma.done.wait [#allocation5], 768  }
 0x5a0   :  { %6705 = vsyncadd [#allocation5], 4294966528 }
 0x5a1   :  { %4957 = vsyncpa [#allocation4], 1 }
 0x5a2   :  { %4958 = vsyncpa [#allocation7], 1 }
 0x5a3   :  { %4959 = vsyncpa [#allocation10], 1 }
 0x5a4   :  { %4960 = vsyncpa [#allocation5], 1 }

// kernel: tpu_custom_call.1
= control target key start
LH: loop header
LB: loop body
LE: loop exit
PB: predicated region body
PF: predicated region fallthrough
CT: control target
= control target key end

     0   :  { %10 = vsyncpa [#allocation4], 0  ;;  %s6912_s0 = inlined_call_operand.hbm [shape: f32[16,384], index: 0, kind: input, shape index: {}]   ;;  %s6913_s1 = inlined_call_operand.hbm [shape: bf16[384,1536], index: 1, kind: input, shape index: {}]   ;;  %s6914_s2 = inlined_call_operand.hbm [shape: f32[1,1536], index: 2, kind: input, shape index: {}]   ;;  %s6915_s3 = inlined_call_operand.hbm [shape: bf16[1536,384], index: 3, kind: input, shape index: {}]   ;;  %s6916_s4 = inlined_call_operand.hbm [shape: f32[1,384], index: 4, kind: input, shape index: {}]   ;;  %s6917_s5 = inlined_call_operand.hbm [shape: f32[16,384], index: 5, kind: output, shape index: {}]  }
   0x1   :  { %11 = vsyncpa [#allocation7], 0 }
   0x2   :  { %12 = vsyncpa [#allocation10], 0 }
   0x3   :  { %13 = vsyncpa [#allocation5], 0  ;;  %s6706_s18 = smov [#allocation6]   ;;  %s6566_s22 = scalar_lea.hbm %s6913_s1, 36864 }
   0x4   :  { %s31_s19 = sshll.u32 %s6706_s18, 4  ;;  %p6567_p0 = scmp.ne.s32.totalorder %s6913_s1, %s6566_s22  ;;  %s32_s19 = int_to_ptr.vmem [resolvable:$true] %s31_s19 }
   0x5   :  { %p6570_p1 = scmp.lt.u32.totalorder %s6566_s22, %s6913_s1 }
   0x7   :  { %p6572_p2 = pnand %p6570_p1, %p6567_p0 }
   0x9   :  { %6575 = shalt.err (!%p6572_p2)
}
   0xa   :  { %s6576_s27 = scalar_lea.vmem %s32_s19, 36864  ;;  %p6581_p4 = scmp.lt.s32.totalorder %s32_s19, %s32_s19 }
   0xb   :  { %p6577_p3 = scmp.ne.s32.totalorder %s32_s19, %s6576_s27  ;;  %p6582_p5 = scmp.lt.s32.totalorder %s6576_s27, %s6576_s27 }
   0xd   :  { %p6583_p6 = por %p6582_p5, %p6581_p4 }
   0xf   :  { %p6584_p7 = pnand %p6583_p6, %p6577_p3 }
  0x11   :  { %6587 = shalt.err (!%p6584_p7)
}
  0x12   :  { %s6707_s28 = smov 768   ;;  %s6708_s29 = smov 48  }
  0x13   :  { %37 = dma.hbm_to_vmem [thread:$0]  %s6913_s1, 36864, %s32_s19, [#allocation7], %s6707_s28, %s6707_s28, %s6708_s29  }
  0x14   :  { %s6709_s7 = smov [#allocation9]   ;;  %s6588_s11 = scalar_lea.hbm %s6915_s3, 36864 }
  0x15   :  { %s53_s8 = sshll.u32 %s6709_s7, 4  ;;  %p6589_p8 = scmp.ne.s32.totalorder %s6915_s3, %s6588_s11  ;;  %s54_s8 = int_to_ptr.vmem [resolvable:$true] %s53_s8 }
  0x16   :  { %p6592_p9 = scmp.lt.u32.totalorder %s6588_s11, %s6915_s3 }
  0x18   :  { %p6594_p10 = pnand %p6592_p9, %p6589_p8 }
  0x1a   :  { %6597 = shalt.err (!%p6594_p10)
}
  0x1b   :  { %s6598_s16 = scalar_lea.vmem %s54_s8, 36864  ;;  %p6603_p12 = scmp.lt.s32.totalorder %s54_s8, %s54_s8 }
  0x1c   :  { %p6599_p11 = scmp.ne.s32.totalorder %s54_s8, %s6598_s16  ;;  %p6604_p13 = scmp.lt.s32.totalorder %s6598_s16, %s6598_s16 }
  0x1e   :  { %p6605_p0 = por %p6604_p13, %p6603_p12 }
  0x20   :  { %p6606_p1 = pnand %p6605_p0, %p6599_p11 }
  0x22   :  { %6609 = shalt.err (!%p6606_p1)
}
  0x23   :  { %s6710_s1 = smov 192   ;;  %s6711_s17 = smov 12  }
  0x24   :  { %59 = dma.hbm_to_vmem [thread:$0]  %s6915_s3, 36864, %s54_s8, [#allocation10], %s6710_s1, %s6710_s1, %s6711_s17  }
  0x25   :  { %s6712_s20 = smov [#allocation3]   ;;  %s6610_s24 = scalar_lea.hbm %s6912_s0, 768 }
  0x26   :  { %s19_s21 = sshll.u32 %s6712_s20, 4  ;;  %p6611_p2 = scmp.ne.s32.totalorder %s6912_s0, %s6610_s24  ;;  %s20_s21 = int_to_ptr.vmem [resolvable:$true] %s19_s21 }
  0x27   :  { %p6614_p3 = scmp.lt.u32.totalorder %s6610_s24, %s6912_s0 }
  0x29   :  { %p6616_p4 = pnand %p6614_p3, %p6611_p2 }
  0x2b   :  { %6619 = shalt.err (!%p6616_p4)
}
  0x2c   :  { %s6620_s29 = scalar_lea.vmem %s20_s21, 768  ;;  %p6625_p6 = scmp.lt.s32.totalorder %s20_s21, %s20_s21 }
  0x2d   :  { %p6621_p5 = scmp.ne.s32.totalorder %s20_s21, %s6620_s29  ;;  %p6626_p7 = scmp.lt.s32.totalorder %s6620_s29, %s6620_s29 }
  0x2f   :  { %p6627_p8 = por %p6626_p7, %p6625_p6 }
  0x31   :  { %p6628_p9 = pnand %p6627_p8, %p6621_p5 }
  0x33   :  { %6631 = shalt.err (!%p6628_p9)
}
  0x34   :  { %s6713_s3 = smov 384   ;;  %s6714_s30 = smov 24  }
  0x35   :  { %25 = dma.hbm_to_vmem [thread:$0]  %s6912_s0, 768, %s20_s21, [#allocation4], %s6713_s3, %s6713_s3, %s6714_s30  }
  0x36   :  { %s6715_s8 = smov [#allocation8]   ;;  %s6716_s10 = smov [#allocation11]  }
  0x37   :  { %s44_s9 = sshll.u32 %s6715_s8, 4  ;;  %s66_s11 = sshll.u32 %s6716_s10, 4  ;;  %s45_s9 = int_to_ptr.vmem [resolvable:$true] %s44_s9  ;;  %s67_s11 = int_to_ptr.vmem [resolvable:$true] %s66_s11 }
  0x38   :  { %s6632_s14 = scalar_lea.hbm %s6914_s2, 192 }
  0x39   :  { %p6633_p10 = scmp.ne.s32.totalorder %s6914_s2, %s6632_s14  ;;  %p6636_p11 = scmp.lt.u32.totalorder %s6632_s14, %s6914_s2 }
  0x3b   :  { %p6638_p12 = pnand %p6636_p11, %p6633_p10 }
  0x3d   :  { %6641 = shalt.err (!%p6638_p12)
}
  0x3e   :  { %s6642_s0 = scalar_lea.vmem %s45_s9, 192  ;;  %p6647_p0 = scmp.lt.s32.totalorder %s45_s9, %s45_s9 }
  0x3f   :  { %p6643_p13 = scmp.ne.s32.totalorder %s45_s9, %s6642_s0  ;;  %p6648_p1 = scmp.lt.s32.totalorder %s6642_s0, %s6642_s0 }
  0x41   :  { %p6649_p2 = por %p6648_p1, %p6647_p0 }
  0x43   :  { %p6650_p3 = pnand %p6649_p2, %p6643_p13 }
  0x45   :  { %6653 = shalt.err (!%p6650_p3)
}
  0x46   :  { %47 = dma.hbm_to_vmem [thread:$0]  %s6914_s2, 192, %s45_s9, [#allocation7]  }
  0x47   :  { %s6654_s22 = scalar_lea.hbm %s6916_s4, 48 }
  0x48   :  { %p6655_p4 = scmp.ne.s32.totalorder %s6916_s4, %s6654_s22  ;;  %p6658_p5 = scmp.lt.u32.totalorder %s6654_s22, %s6916_s4 }
  0x4a   :  { %p6660_p6 = pnand %p6658_p5, %p6655_p4 }
  0x4c   :  { %6663 = shalt.err (!%p6660_p6)
}
  0x4d   :  { %s6664_s27 = scalar_lea.vmem %s67_s11, 48  ;;  %s6668_s28 = scalar_lea.vmem %s67_s11, 64 }
  0x4e   :  { %p6665_p7 = scmp.ne.s32.totalorder %s67_s11, %s6664_s27  ;;  %p6669_p8 = scmp.lt.s32.totalorder %s67_s11, %s67_s11 }
  0x4f   :  { %p6670_p9 = scmp.lt.s32.totalorder %s6668_s28, %s6664_s27 }
  0x51   :  { %p6671_p10 = por %p6670_p9, %p6669_p8 }
  0x53   :  { %p6672_p11 = pnand %p6671_p10, %p6665_p7 }
  0x55   :  { %6675 = shalt.err (!%p6672_p11)
}
  0x56   :  { %69 = dma.hbm_to_vmem [thread:$0]  %s6916_s4, 48, %s67_s11, [#allocation10]  }
  0x57   :  { %6698 = dma.done.wait [#allocation4], 768  }
  0x58   :  { %6699 = vsyncadd [#allocation4], 4294966528 }
  0x59   :  { %6700 = dma.done.wait [#allocation7], 37056  }
  0x5a   :  { %6701 = vsyncadd [#allocation7], 4294930240 }
  0x5b   :  { %6702 = dma.done.wait [#allocation10], 36912  }
  0x5c   :  { %6703 = vsyncadd [#allocation10], 4294930384  ;;  %v5750_v0 = vld [vmem:[#allocation6 + $0x4] ss:$48 sps:$4 sm:$0xff]   ;;  %v5752_v1 = vld [vmem:[#allocation6 + $0xc] ss:$48 sps:$4 sm:$0xff]  }
  0x5d   :  { %693 = vmatprep.subr.bf16.mxu0 %v5750_v0  ;;  %v5754_v2 = vld [vmem:[#allocation6] ss:$48 sps:$4 sm:$0xff]   ;;  %v5755_v3 = vld [vmem:[#allocation6 + $0x8] ss:$48 sps:$4 sm:$0xff]   ;;  %779 = vmatprep.subr.bf16.mxu1 %v5752_v1  ;;  %v5756_v4 = vld [vmem:[#allocation6 + $0x64] ss:$48 sps:$4 sm:$0xff]  }
  0x5e   :  { %694 = vmatpush1.bf16.msra.mxu0 %v5754_v2  ;;  %780 = vmatpush1.bf16.msra.mxu1 %v5755_v3  ;;  %v5758_v5 = vld [vmem:[#allocation6 + $0x6c] ss:$48 sps:$4 sm:$0xff]   ;;  %v5760_v6 = vld [vmem:[#allocation6 + $0x60] ss:$48 sps:$4 sm:$0xff]   ;;  %v5761_v7 = vld [vmem:[#allocation6 + $0x68] ss:$48 sps:$4 sm:$0xff]  }
  0x5f   :  { %695 = vmatprep.subr.bf16.mxu0 %v5756_v4  ;;  %781 = vmatprep.subr.bf16.mxu1 %v5758_v5  ;;  %v5762_v8 = vld [vmem:[#allocation6 + $0xc4] ss:$48 sps:$4 sm:$0xff]   ;;  %v5764_v9 = vld [vmem:[#allocation6 + $0xcc] ss:$48 sps:$4 sm:$0xff]   ;;  %v5766_v10 = vld [vmem:[#allocation6 + $0xc0] ss:$48 sps:$4 sm:$0xff]  }
  0x60   :  { %v5767_v11 = vld [vmem:[#allocation6 + $0xc8] ss:$48 sps:$4 sm:$0xff]   ;;  %v5768_v12 = vld [vmem:[#allocation6 + $0x124] ss:$48 sps:$4 sm:$0xff]   ;;  %v5770_v13 = vld [vmem:[#allocation6 + $0x12c] ss:$48 sps:$4 sm:$0xff]  }
  0x61   :  { %v5772_v14 = vld [vmem:[#allocation6 + $0x120] ss:$48 sps:$4 sm:$0xff]   ;;  %v5773_v15 = vld [vmem:[#allocation6 + $0x128] ss:$48 sps:$4 sm:$0xff]   ;;  %v5774_v16 = vld [vmem:[#allocation6 + $0x184] ss:$48 sps:$4 sm:$0xff]  }
  0x62   :  { %696 = vmatpush1.bf16.msra.mxu0 %v5760_v6  ;;  %782 = vmatpush1.bf16.msra.mxu1 %v5761_v7  ;;  %v5776_v17 = vld [vmem:[#allocation6 + $0x18c] ss:$48 sps:$4 sm:$0xff]   ;;  %v5778_v18 = vld [vmem:[#allocation6 + $0x180] ss:$48 sps:$4 sm:$0xff]   ;;  %v5779_v19 = vld [vmem:[#allocation6 + $0x188] ss:$48 sps:$4 sm:$0xff]  }
  0x63   :  { %697 = vmatprep.subr.bf16.mxu0 %v5762_v8  ;;  %783 = vmatprep.subr.bf16.mxu1 %v5764_v9  ;;  %v5780_v20 = vld [vmem:[#allocation6 + $0x1e4] ss:$48 sps:$4 sm:$0xff]   ;;  %v5782_v21 = vld [vmem:[#allocation6 + $0x1ec] ss:$48 sps:$4 sm:$0xff]   ;;  %v5784_v22 = vld [vmem:[#allocation6 + $0x1e0] ss:$48 sps:$4 sm:$0xff]  }
  0x64   :  { %v5785_v23 = vld [vmem:[#allocation6 + $0x1e8] ss:$48 sps:$4 sm:$0xff]   ;;  %v5786_v24 = vld [vmem:[#allocation6 + $0x244] ss:$48 sps:$4 sm:$0xff]   ;;  %v5788_v25 = vld [vmem:[#allocation6 + $0x24c] ss:$48 sps:$4 sm:$0xff]  }
  0x65   :  { %v5790_v26 = vld [vmem:[#allocation6 + $0x240] ss:$48 sps:$4 sm:$0xff]   ;;  %v5791_v27 = vld [vmem:[#allocation6 + $0x248] ss:$48 sps:$4 sm:$0xff]   ;;  %v5792_v28 = vld [vmem:[#allocation6 + $0x2a4] ss:$48 sps:$4 sm:$0xff]  }
  0x66   :  { %698 = vmatpush1.bf16.msra.mxu0 %v5766_v10  ;;  %784 = vmatpush1.bf16.msra.mxu1 %v5767_v11  ;;  %v5794_v29 = vld [vmem:[#allocation6 + $0x2ac] ss:$48 sps:$4 sm:$0xff]   ;;  %v5796_v30 = vld [vmem:[#allocation6 + $0x2a0] ss:$48 sps:$4 sm:$0xff]   ;;  %v5797_v31 = vld [vmem:[#allocation6 + $0x2a8] ss:$48 sps:$4 sm:$0xff]  }
  0x67   :  { %699 = vmatprep.subr.bf16.mxu0 %v5768_v12  ;;  %785 = vmatprep.subr.bf16.mxu1 %v5770_v13  ;;  %v5798_v32 = vld [vmem:[#allocation6 + $0x304] ss:$48 sps:$4 sm:$0xff]   ;;  %v5800_v33 = vld [vmem:[#allocation6 + $0x30c] ss:$48 sps:$4 sm:$0xff]   ;;  %v5802_v34 = vld [vmem:[#allocation6 + $0x300] ss:$48 sps:$4 sm:$0xff]  }
  0x68   :  { %v5803_v35 = vld [vmem:[#allocation6 + $0x308] ss:$48 sps:$4 sm:$0xff]   ;;  %v5804_v36 = vld [vmem:[#allocation6 + $0x364] ss:$48 sps:$4 sm:$0xff]   ;;  %v5806_v37 = vld [vmem:[#allocation6 + $0x36c] ss:$48 sps:$4 sm:$0xff]  }
  0x69   :  { %v5808_v38 = vld [vmem:[#allocation6 + $0x360] ss:$48 sps:$4 sm:$0xff]   ;;  %v5809_v39 = vld [vmem:[#allocation6 + $0x368] ss:$48 sps:$4 sm:$0xff]   ;;  %v5810_v40 = vld [vmem:[#allocation6 + $0x3c4] ss:$48 sps:$4 sm:$0xff]  }
  0x6a   :  { %700 = vmatpush1.bf16.msra.mxu0 %v5772_v14  ;;  %786 = vmatpush1.bf16.msra.mxu1 %v5773_v15  ;;  %v5812_v41 = vld [vmem:[#allocation6 + $0x3cc] ss:$48 sps:$4 sm:$0xff]   ;;  %v5814_v42 = vld [vmem:[#allocation6 + $0x3c0] ss:$48 sps:$4 sm:$0xff]   ;;  %v5815_v43 = vld [vmem:[#allocation6 + $0x3c8] ss:$48 sps:$4 sm:$0xff]  }
  0x6b   :  { %701 = vmatprep.subr.bf16.mxu0 %v5774_v16  ;;  %787 = vmatprep.subr.bf16.mxu1 %v5776_v17  ;;  %v5816_v44 = vld [vmem:[#allocation6 + $0x424] ss:$48 sps:$4 sm:$0xff]   ;;  %v5818_v45 = vld [vmem:[#allocation6 + $0x42c] ss:$48 sps:$4 sm:$0xff]   ;;  %v5820_v48 = vld [vmem:[#allocation6 + $0x420] ss:$48 sps:$4 sm:$0xff]  }
  0x6c   :  { %v87_v46 = vld [vmem:[#allocation3 + $0x8] sm:$0xff]  ;;  %v90_v47 = vld [vmem:[#allocation3 + $0x20] sm:$0xff]  ;;  %v89_v5 = vld [vmem:[#allocation3 + $0x18] sm:$0xff]  ;;  %v6717_v16 = vmov 0   ;;  %s6718_s4 = smov [#allocation12]  }
  0x6d   :  { %v5821_v49 = vld [vmem:[#allocation6 + $0x428] ss:$48 sps:$4 sm:$0xff]   ;;  %v6812_v50 = vpack.c.bf16 %v90_v47, %v87_v46  ;;  %v5822_v51 = vld [vmem:[#allocation6 + $0x484] ss:$48 sps:$4 sm:$0xff]   ;;  %v5824_v52 = vld [vmem:[#allocation6 + $0x48c] ss:$48 sps:$4 sm:$0xff]  }
  0x6e   :  { %702 = vmatpush1.bf16.msra.mxu0 %v5778_v18  ;;  %788 = vmatpush1.bf16.msra.mxu1 %v5779_v19  ;;  %v5826_v53 = vld [vmem:[#allocation6 + $0x480] ss:$48 sps:$4 sm:$0xff]   ;;  %v5827_v54 = vld [vmem:[#allocation6 + $0x488] ss:$48 sps:$4 sm:$0xff]   ;;  %v5828_v55 = vld [vmem:[#allocation6 + $0x4e4] ss:$48 sps:$4 sm:$0xff]  }
  0x6f   :  { %703 = vmatprep.subr.bf16.mxu0 %v5780_v20  ;;  %789 = vmatprep.subr.bf16.mxu1 %v5782_v21  ;;  %v5830_v56 = vld [vmem:[#allocation6 + $0x4ec] ss:$48 sps:$4 sm:$0xff]   ;;  %v5832_v57 = vld [vmem:[#allocation6 + $0x4e0] ss:$48 sps:$4 sm:$0xff]   ;;  %v5833_v58 = vld [vmem:[#allocation6 + $0x4e8] ss:$48 sps:$4 sm:$0xff]  }
  0x70   :  { %725 = vmatprep.mubr.bf16.mxu0 %v6812_v50  ;;  %811 = vmatprep.mubr.bf16.mxu1 %v6812_v50  ;;  %v5834_v59 = vld [vmem:[#allocation6 + $0x544] ss:$48 sps:$4 sm:$0xff]   ;;  %v5836_v60 = vld [vmem:[#allocation6 + $0x54c] ss:$48 sps:$4 sm:$0xff]   ;;  %v5838_v61 = vld [vmem:[#allocation6 + $0x540] ss:$48 sps:$4 sm:$0xff]  }
  0x71   :  { %v5839_v62 = vld [vmem:[#allocation6 + $0x548] ss:$48 sps:$4 sm:$0xff]   ;;  %v5840_v63 = vld [vmem:[#allocation6 + $0x5a4] ss:$48 sps:$4 sm:$0xff]   ;;  %v5842_v0 = vld [vmem:[#allocation6 + $0x5ac] ss:$48 sps:$4 sm:$0xff]  }
  0x72   :  { %704 = vmatpush1.bf16.msra.mxu0 %v5784_v22  ;;  %790 = vmatpush1.bf16.msra.mxu1 %v5785_v23  ;;  %v5844_v1 = vld [vmem:[#allocation6 + $0x5a0] ss:$48 sps:$4 sm:$0xff]   ;;  %v5845_v2 = vld [vmem:[#allocation6 + $0x5a8] ss:$48 sps:$4 sm:$0xff]   ;;  %v5848_v3 = vld [vmem:[#allocation6 + $0x604] ss:$48 sps:$4 sm:$0xff]  }
  0x73   :  { %705 = vmatprep.subr.bf16.mxu0 %v5786_v24  ;;  %791 = vmatprep.subr.bf16.mxu1 %v5788_v25  ;;  %v86_v4 = vld [vmem:[#allocation3] sm:$0xff]  ;;  %v5851_v6 = vld [vmem:[#allocation6 + $0x60c] ss:$48 sps:$4 sm:$0xff]   ;;  %v5849_v9 = vld [vmem:[#allocation6 + $0x608] ss:$48 sps:$4 sm:$0xff]   ;;  %s4947_s6 = sshll.u32 %s6718_s4, 4  ;;  %s4948_s6 = int_to_ptr.vmem [resolvable:$true] %s4947_s6 }
  0x74   :  { %v5846_v7 = vld [vmem:[#allocation6 + $0x600] ss:$48 sps:$4 sm:$0xff]   ;;  %v6816_v8 = vpack.c.bf16 %v89_v5, %v86_v4  ;;  %v5854_v10 = vld [vmem:[#allocation6 + $0x664] ss:$48 sps:$4 sm:$0xff]   ;;  %v5857_v11 = vld [vmem:[#allocation6 + $0x66c] ss:$48 sps:$4 sm:$0xff]   ;;  %p6681_p13 = scmp.lt.s32.totalorder %s4948_s6, %s4948_s6 }
  0x75   :  { %v5852_v12 = vld [vmem:[#allocation6 + $0x660] ss:$48 sps:$4 sm:$0xff]   ;;  %v5855_v13 = vld [vmem:[#allocation6 + $0x668] ss:$48 sps:$4 sm:$0xff]   ;;  %v5860_v14 = vld [vmem:[#allocation6 + $0x6c4] ss:$48 sps:$4 sm:$0xff]  }
  0x76   :  { %706 = vmatpush1.bf16.msra.mxu0 %v5790_v26  ;;  %792 = vmatpush1.bf16.msra.mxu1 %v5791_v27  ;;  %v5863_v15 = vld [vmem:[#allocation6 + $0x6cc] ss:$48 sps:$4 sm:$0xff]   ;;  %v5858_v17 = vld [vmem:[#allocation6 + $0x6c0] ss:$48 sps:$4 sm:$0xff]   ;;  %v5861_v18 = vld [vmem:[#allocation6 + $0x6c8] ss:$48 sps:$4 sm:$0xff]  }
  0x77   :  { %707 = vmatprep.subr.bf16.mxu0 %v5792_v28  ;;  %793 = vmatprep.subr.bf16.mxu1 %v5794_v29  ;;  %v5866_v19 = vld [vmem:[#allocation6 + $0x724] ss:$48 sps:$4 sm:$0xff]   ;;  %v5869_v20 = vld [vmem:[#allocation6 + $0x72c] ss:$48 sps:$4 sm:$0xff]   ;;  %v5864_v21 = vld [vmem:[#allocation6 + $0x720] ss:$48 sps:$4 sm:$0xff]  }
  0x78   :  { %v5867_v22 = vld [vmem:[#allocation6 + $0x728] ss:$48 sps:$4 sm:$0xff]   ;;  %v5872_v23 = vld [vmem:[#allocation6 + $0x784] ss:$48 sps:$4 sm:$0xff]   ;;  %v5875_v24 = vld [vmem:[#allocation6 + $0x78c] ss:$48 sps:$4 sm:$0xff]  }
  0x79   :  { %v5870_v25 = vld [vmem:[#allocation6 + $0x780] ss:$48 sps:$4 sm:$0xff]   ;;  %v5873_v26 = vld [vmem:[#allocation6 + $0x788] ss:$48 sps:$4 sm:$0xff]   ;;  %v5878_v27 = vld [vmem:[#allocation6 + $0x7e4] ss:$48 sps:$4 sm:$0xff]  }
  0x7a   :  { %708 = vmatpush1.bf16.msra.mxu0 %v5796_v30  ;;  %794 = vmatpush1.bf16.msra.mxu1 %v5797_v31  ;;  %v5881_v28 = vld [vmem:[#allocation6 + $0x7ec] ss:$48 sps:$4 sm:$0xff]   ;;  %v5876_v29 = vld [vmem:[#allocation6 + $0x7e0] ss:$48 sps:$4 sm:$0xff]   ;;  %v5879_v30 = vld [vmem:[#allocation6 + $0x7e8] ss:$48 sps:$4 sm:$0xff]  }
  0x7b   :  { %709 = vmatprep.subr.bf16.mxu0 %v5798_v32  ;;  %795 = vmatprep.subr.bf16.mxu1 %v5800_v33  ;;  %v5884_v31 = vld [vmem:[#allocation6 + $0x844] ss:$48 sps:$4 sm:$0xff]   ;;  %v5887_v32 = vld [vmem:[#allocation6 + $0x84c] ss:$48 sps:$4 sm:$0xff]   ;;  %v5882_v33 = vld [vmem:[#allocation6 + $0x840] ss:$48 sps:$4 sm:$0xff]  }
  0x7c   :  { %v5922_v46 = vld [vmem:[#allocation9 + $0x8] ss:$12 sps:$4 sm:$0xff]   ;;  %v5926_v47 = vld [vmem:[#allocation9 + $0xe0] ss:$12 sps:$4 sm:$0xff]   ;;  %v5912_v4 = vld [vmem:[#allocation9 + $0x90] ss:$12 sps:$4 sm:$0xff]  }
  0x7d   :  { %v5917_v5 = vld [vmem:[#allocation9 + $0xac] ss:$12 sps:$4 sm:$0xff]   ;;  %s6676_s7 = scalar_lea.vmem %s4948_s6, 768 }
  0x7e   :  { %710 = vmatpush1.bf16.msra.mxu0 %v5802_v34  ;;  %796 = vmatpush1.bf16.msra.mxu1 %v5803_v35  ;;  %v5885_v34 = vld [vmem:[#allocation6 + $0x848] ss:$48 sps:$4 sm:$0xff]   ;;  %v5890_v35 = vld [vmem:[#allocation6 + $0x8a4] ss:$48 sps:$4 sm:$0xff]   ;;  %p6677_p12 = scmp.ne.s32.totalorder %s4948_s6, %s6676_s7  ;;  %p6682_p0 = scmp.lt.s32.totalorder %s6676_s7, %s6676_s7 }
  0x7f   :  { %711 = vmatprep.subr.bf16.mxu0 %v5804_v36  ;;  %797 = vmatprep.subr.bf16.mxu1 %v5806_v37  ;;  %v5893_v36 = vld [vmem:[#allocation6 + $0x8ac] ss:$48 sps:$4 sm:$0xff]   ;;  %v5888_v37 = vld [vmem:[#allocation6 + $0x8a0] ss:$48 sps:$4 sm:$0xff]  }
  0x80   :  { %p6683_p1 = por %p6682_p0, %p6681_p13 }
  0x82   :  { %712 = vmatpush1.bf16.msra.mxu0 %v5808_v38  ;;  %798 = vmatpush1.bf16.msra.mxu1 %v5809_v39  ;;  %v5891_v38 = vld [vmem:[#allocation6 + $0x8a8] ss:$48 sps:$4 sm:$0xff]   ;;  %v88_v39 = vld [vmem:[#allocation3 + $0x10] sm:$0xff]  ;;  %p6684_p2 = pnand %p6683_p1, %p6677_p12 }
  0x83   :  { %713 = vmatprep.subr.bf16.mxu0 %v5810_v40  ;;  %799 = vmatprep.subr.bf16.mxu1 %v5812_v41  ;;  %v91_v40 = vld [vmem:[#allocation3 + $0x28] sm:$0xff] }
  0x84   :  { %v5896_v41 = vld [vmem:[#allocation9 + $0x4] ss:$12 sps:$4 sm:$0xff]  }
  0x86   :  { %714 = vmatpush1.bf16.msra.mxu0 %v5814_v42  ;;  %800 = vmatpush1.bf16.msra.mxu1 %v5815_v43  ;;  %v5921_v42 = vld [vmem:[#allocation9 + $0xc8] ss:$12 sps:$4 sm:$0xff]   ;;  %v5894_v43 = vld [vmem:[#allocation9] ss:$12 sps:$4 sm:$0xff]  }
  0x87   :  { %715 = vmatprep.subr.bf16.mxu0 %v5816_v44  ;;  %801 = vmatprep.subr.bf16.mxu1 %v5818_v45  ;;  %v6822_v44 = vpack.c.bf16 %v91_v40, %v88_v39  ;;  %v5899_v45 = vld [vmem:[#allocation9 + $0x1c] ss:$12 sps:$4 sm:$0xff]  }
  0x8a   :  { %716 = vmatpush1.bf16.msra.mxu0 %v5820_v48  ;;  %802 = vmatpush1.bf16.msra.mxu1 %v5821_v49  ;;  %v5897_v48 = vld [vmem:[#allocation9 + $0x18] ss:$12 sps:$4 sm:$0xff]   ;;  %v5927_v49 = vld [vmem:[#allocation9 + $0x20] ss:$12 sps:$4 sm:$0xff]  }
  0x8b   :  { %717 = vmatprep.subr.bf16.mxu0 %v5822_v51  ;;  %803 = vmatprep.subr.bf16.mxu1 %v5824_v52  ;;  %v5902_v51 = vld [vmem:[#allocation9 + $0x34] ss:$12 sps:$4 sm:$0xff]   ;;  %v5931_v52 = vld [vmem:[#allocation9 + $0xf8] ss:$12 sps:$4 sm:$0xff]  }
  0x8e   :  { %718 = vmatpush1.bf16.msra.mxu0 %v5826_v53  ;;  %804 = vmatpush1.bf16.msra.mxu1 %v5827_v54  ;;  %v5900_v53 = vld [vmem:[#allocation9 + $0x30] ss:$12 sps:$4 sm:$0xff]   ;;  %v5932_v54 = vld [vmem:[#allocation9 + $0x38] ss:$12 sps:$4 sm:$0xff]  }
  0x8f   :  { %719 = vmatprep.subr.bf16.mxu0 %v5828_v55  ;;  %805 = vmatprep.subr.bf16.mxu1 %v5830_v56  ;;  %v5905_v55 = vld [vmem:[#allocation9 + $0x4c] ss:$12 sps:$4 sm:$0xff]   ;;  %v5936_v56 = vld [vmem:[#allocation9 + $0x110] ss:$12 sps:$4 sm:$0xff]  }
  0x92   :  { %720 = vmatpush1.bf16.msra.mxu0 %v5832_v57  ;;  %806 = vmatpush1.bf16.msra.mxu1 %v5833_v58  ;;  %v5903_v57 = vld [vmem:[#allocation9 + $0x48] ss:$12 sps:$4 sm:$0xff]   ;;  %v5937_v58 = vld [vmem:[#allocation9 + $0x50] ss:$12 sps:$4 sm:$0xff]  }
  0x93   :  { %721 = vmatprep.subr.bf16.mxu0 %v5834_v59  ;;  %807 = vmatprep.subr.bf16.mxu1 %v5836_v60  ;;  %v5908_v59 = vld [vmem:[#allocation9 + $0x64] ss:$12 sps:$4 sm:$0xff]   ;;  %v5941_v60 = vld [vmem:[#allocation9 + $0x128] ss:$12 sps:$4 sm:$0xff]  }
  0x96   :  { %722 = vmatpush1.bf16.msra.mxu0 %v5838_v61  ;;  %808 = vmatpush1.bf16.msra.mxu1 %v5839_v62  ;;  %v5906_v61 = vld [vmem:[#allocation9 + $0x60] ss:$12 sps:$4 sm:$0xff]   ;;  %v5942_v62 = vld [vmem:[#allocation9 + $0x68] ss:$12 sps:$4 sm:$0xff]  }
  0x97   :  { %723 = vmatprep.subr.bf16.mxu0 %v5840_v63  ;;  %809 = vmatprep.subr.bf16.mxu1 %v5842_v0  ;;  %v5911_v63 = vld [vmem:[#allocation9 + $0x7c] ss:$12 sps:$4 sm:$0xff]   ;;  %v5946_v0 = vld [vmem:[#allocation9 + $0x140] ss:$12 sps:$4 sm:$0xff]  }
  0x9a   :  { %724 = vmatpush1.bf16.msra.mxu0 %v5844_v1  ;;  %810 = vmatpush1.bf16.msra.mxu1 %v5845_v2  ;;  %v5909_v1 = vld [vmem:[#allocation9 + $0x78] ss:$12 sps:$4 sm:$0xff]   ;;  %v5947_v2 = vld [vmem:[#allocation9 + $0x80] ss:$12 sps:$4 sm:$0xff]  }
  0x9b   :  { %736 = vmatprep.subr.bf16.mxu0 %v5848_v3  ;;  %822 = vmatprep.subr.bf16.mxu1 %v5851_v6  ;;  %v5914_v3 = vld [vmem:[#allocation9 + $0x94] ss:$12 sps:$4 sm:$0xff]  }
  0x9c   :  { %v5915_v6 = vld [vmem:[#allocation9 + $0xa8] ss:$12 sps:$4 sm:$0xff]  }
  0x9d   :  { %726 = vmatmul.mubr.bf16.vlgmr.msra.gmra.mrb[0].mxu0 %v6816_v8  ;;  %812 = vmatmul.mubr.bf16.vlgmr.msra.gmra.mrb[0].mxu1 %v6816_v8 }
  0x9e   :  { %737 = vmatpush1.bf16.msra.mxu0 %v5846_v7  ;;  %823 = vmatpush1.bf16.msra.mxu1 %v5849_v9  ;;  %v5920_v7 = vld [vmem:[#allocation9 + $0xc4] ss:$12 sps:$4 sm:$0xff]   ;;  %v5918_v9 = vld [vmem:[#allocation9 + $0xc0] ss:$12 sps:$4 sm:$0xff]  }
  0x9f   :  { %738 = vmatprep.subr.bf16.mxu0 %v5854_v10  ;;  %824 = vmatprep.subr.bf16.mxu1 %v5857_v11  ;;  %v5925_v10 = vld [vmem:[#allocation9 + $0xdc] ss:$12 sps:$4 sm:$0xff]   ;;  %v5923_v11 = vld [vmem:[#allocation9 + $0xd8] ss:$12 sps:$4 sm:$0xff]  }
  0xa0   :  { %768 = vmatprep.mubr.bf16.mxu0 %v6717_v16  ;;  %854 = vmatprep.mubr.bf16.mxu1 %v6717_v16 }
  0xa2   :  { %739 = vmatpush1.bf16.msra.mxu0 %v5852_v12  ;;  %825 = vmatpush1.bf16.msra.mxu1 %v5855_v13  ;;  %v5930_v12 = vld [vmem:[#allocation9 + $0xf4] ss:$12 sps:$4 sm:$0xff]   ;;  %v5928_v13 = vld [vmem:[#allocation9 + $0xf0] ss:$12 sps:$4 sm:$0xff]  }
  0xa3   :  { %740 = vmatprep.subr.bf16.mxu0 %v5860_v14  ;;  %826 = vmatprep.subr.bf16.mxu1 %v5863_v15  ;;  %v5935_v14 = vld [vmem:[#allocation9 + $0x10c] ss:$12 sps:$4 sm:$0xff]   ;;  %v5933_v15 = vld [vmem:[#allocation9 + $0x108] ss:$12 sps:$4 sm:$0xff]  }
  0xa6   :  { %741 = vmatpush1.bf16.msra.mxu0 %v5858_v17  ;;  %827 = vmatpush1.bf16.msra.mxu1 %v5861_v18  ;;  %v5940_v17 = vld [vmem:[#allocation9 + $0x124] ss:$12 sps:$4 sm:$0xff]   ;;  %v5938_v18 = vld [vmem:[#allocation9 + $0x120] ss:$12 sps:$4 sm:$0xff]  }
  0xa7   :  { %742 = vmatprep.subr.bf16.mxu0 %v5866_v19  ;;  %828 = vmatprep.subr.bf16.mxu1 %v5869_v20  ;;  %v5945_v19 = vld [vmem:[#allocation9 + $0x13c] ss:$12 sps:$4 sm:$0xff]   ;;  %v5943_v20 = vld [vmem:[#allocation9 + $0x138] ss:$12 sps:$4 sm:$0xff]  }
  0xaa   :  { %743 = vmatpush1.bf16.msra.mxu0 %v5864_v21  ;;  %829 = vmatpush1.bf16.msra.mxu1 %v5867_v22  ;;  %v5950_v21 = vld [vmem:[#allocation9 + $0x154] ss:$12 sps:$4 sm:$0xff]   ;;  %v5951_v22 = vld [vmem:[#allocation9 + $0x158] ss:$12 sps:$4 sm:$0xff]  }
  0xab   :  { %744 = vmatprep.subr.bf16.mxu0 %v5872_v23  ;;  %830 = vmatprep.subr.bf16.mxu1 %v5875_v24  ;;  %v5948_v23 = vld [vmem:[#allocation9 + $0x150] ss:$12 sps:$4 sm:$0xff]   ;;  %v5952_v24 = vld [vmem:[#allocation9 + $0x98] ss:$12 sps:$4 sm:$0xff]  }
  0xae   :  { %745 = vmatpush1.bf16.msra.mxu0 %v5870_v25  ;;  %831 = vmatpush1.bf16.msra.mxu1 %v5873_v26  ;;  %v5955_v25 = vld [vmem:[#allocation9 + $0x16c] ss:$12 sps:$4 sm:$0xff]   ;;  %v5956_v26 = vld [vmem:[#allocation9 + $0x170] ss:$12 sps:$4 sm:$0xff]  }
  0xaf   :  { %746 = vmatprep.subr.bf16.mxu0 %v5878_v27  ;;  %832 = vmatprep.subr.bf16.mxu1 %v5881_v28  ;;  %v5953_v27 = vld [vmem:[#allocation9 + $0x168] ss:$12 sps:$4 sm:$0xff]   ;;  %v5957_v28 = vld [vmem:[#allocation9 + $0xb0] ss:$12 sps:$4 sm:$0xff]  }
  0xb2   :  { %747 = vmatpush1.bf16.msra.mxu0 %v5876_v29  ;;  %833 = vmatpush1.bf16.msra.mxu1 %v5879_v30  ;;  %v5960_v29 = vld [vmem:[#allocation9 + $0x184] ss:$12 sps:$4 sm:$0xff]   ;;  %v5961_v30 = vld [vmem:[#allocation9 + $0x248] ss:$12 sps:$4 sm:$0xff]  }
  0xb3   :  { %748 = vmatprep.subr.bf16.mxu0 %v5884_v31  ;;  %834 = vmatprep.subr.bf16.mxu1 %v5887_v32  ;;  %v193_v31 = vlaneseq }
  0xb5   :  { %v194_v32 = vshrl.u32 %v193_v31, 7  ;;  %v5987_v31 = vld [vmem:[#allocation9 + $0x200] ss:$12 sps:$4 sm:$0xff]  }
  0xb6   :  { %749 = vmatpush1.bf16.msra.mxu0 %v5882_v33  ;;  %835 = vmatpush1.bf16.msra.mxu1 %v5885_v34  ;;  %v191_v34 = vld [vmem:[#allocation8] sm:$0xf] }
  0xb7   :  { %750 = vmatprep.subr.bf16.mxu0 %v5890_v35  ;;  %836 = vmatprep.subr.bf16.mxu1 %v5893_v36  ;;  %v6826_v33 = vsub.s32 0, %v194_v32  ;;  %v6828_v35 = vsub.s32 2, %v194_v32  ;;  %v6830_v36 = vsub.s32 1, %v194_v32 }
  0xb9   :  { %v204_v39 = vrot.slane %v191_v34, %v6828_v35  ;;  %v200_v40 = vrot.slane %v191_v34, %v6830_v36 }
  0xba   :  { %751 = vmatpush1.bf16.msra.mxu0 %v5888_v37  ;;  %837 = vmatpush1.bf16.msra.mxu1 %v5891_v38  ;;  %v6832_v37 = vsub.s32 3, %v194_v32  ;;  %v196_v38 = vrot.slane %v191_v34, %v6826_v33  ;;  %v5990_v32 = vld [vmem:[#allocation9 + $0x214] ss:$12 sps:$4 sm:$0xff]  }
  0xbb   :  { %1517 = vmatprep.subr.bf16.mxu0 %v5896_v41  ;;  %5537 = vmatprep.subr.bf16.mxu1 %v5921_v42 }
  0xbc   :  { %v208_v41 = vrot.slane %v191_v34, %v6832_v37  ;;  %v5991_v34 = vld [vmem:[#allocation9 + $0x2d8] ss:$12 sps:$4 sm:$0xff]  }
  0xbd   :  { %769 = vmatmul.mubr.bf16.vlgmr.msra.gmra.mrb[0].mxu0 %v6822_v44  ;;  %855 = vmatmul.mubr.bf16.vlgmr.msra.gmra.mrb[0].mxu1 %v6822_v44 }
  0xbe   :  { %1518 = vmatpush1.bf16.msra.mxu0 %v5894_v43  ;;  %5538 = vmatpush3.bf16.msra.mxu1 %v5922_v46 }
  0xbf   :  { %1519 = vmatprep.subr.bf16.mxu0 %v5899_v45  ;;  %5539 = vmatprep.subr.bf16.mxu1 %v5926_v47 }
  0xc2   :  { %1520 = vmatpush1.bf16.msra.mxu0 %v5897_v48  ;;  %5540 = vmatpush3.bf16.msra.mxu1 %v5927_v49 }
  0xc3   :  { %1521 = vmatprep.subr.bf16.mxu0 %v5902_v51  ;;  %5541 = vmatprep.subr.bf16.mxu1 %v5931_v52 }
  0xc6   :  { %1522 = vmatpush1.bf16.msra.mxu0 %v5900_v53  ;;  %5542 = vmatpush3.bf16.msra.mxu1 %v5932_v54 }
  0xc7   :  { %1523 = vmatprep.subr.bf16.mxu0 %v5905_v55  ;;  %5543 = vmatprep.subr.bf16.mxu1 %v5936_v56 }
  0xca   :  { %1524 = vmatpush1.bf16.msra.mxu0 %v5903_v57  ;;  %5544 = vmatpush3.bf16.msra.mxu1 %v5937_v58 }
  0xcb   :  { %1525 = vmatprep.subr.bf16.mxu0 %v5908_v59  ;;  %5545 = vmatprep.subr.bf16.mxu1 %v5941_v60 }
  0xce   :  { %1526 = vmatpush1.bf16.msra.mxu0 %v5906_v61  ;;  %5546 = vmatpush3.bf16.msra.mxu1 %v5942_v62 }
  0xcf   :  { %1527 = vmatprep.subr.bf16.mxu0 %v5911_v63  ;;  %5547 = vmatprep.subr.bf16.mxu1 %v5946_v0 }
  0xd2   :  { %1528 = vmatpush1.bf16.msra.mxu0 %v5909_v1  ;;  %5548 = vmatpush3.bf16.msra.mxu1 %v5947_v2 }
  0xd3   :  { %1529 = vmatprep.subr.bf16.mxu0 %v5914_v3  ;;  %5549 = vmatprep.subr.bf16.mxu1 %v5951_v22  ;;  %v5973_v22 = vld [vmem:[#allocation9 + $0x1c8] ss:$12 sps:$4 sm:$0xff]  }
  0xd6   :  { %1530 = vmatpush1.bf16.msra.mxu0 %v5912_v4  ;;  %5550 = vmatpush3.bf16.msra.mxu1 %v5952_v24  ;;  %v5958_v4 = vld [vmem:[#allocation9 + $0x180] ss:$12 sps:$4 sm:$0xff]   ;;  %v5980_v24 = vld [vmem:[#allocation9 + $0x1e4] ss:$12 sps:$4 sm:$0xff]  }
  0xd7   :  { %1531 = vmatprep.subr.bf16.mxu0 %v5917_v5  ;;  %5551 = vmatprep.subr.bf16.mxu1 %v5956_v26  ;;  %v5962_v5 = vld [vmem:[#allocation9 + $0x188] ss:$12 sps:$4 sm:$0xff]   ;;  %v5978_v26 = vld [vmem:[#allocation9 + $0x1e0] ss:$12 sps:$4 sm:$0xff]  }
  0xda   :  { %1532 = vmatpush1.bf16.msra.mxu0 %v5915_v6  ;;  %5552 = vmatpush3.bf16.msra.mxu1 %v5957_v28  ;;  %v5985_v28 = vld [vmem:[#allocation9 + $0x1fc] ss:$12 sps:$4 sm:$0xff]  }
  0xdb   :  { %1533 = vmatprep.subr.bf16.mxu0 %v5920_v7  ;;  %5559 = vmatprep.subr.bf16.mxu1 %v5961_v30  ;;  %v5983_v30 = vld [vmem:[#allocation9 + $0x1f8] ss:$12 sps:$4 sm:$0xff]  }
  0xde   :  { %1534 = vmatpush1.bf16.msra.mxu0 %v5918_v9 }
  0xdf   :  { %1535 = vmatprep.subr.bf16.mxu0 %v5925_v10 }
  0xe2   :  { %1536 = vmatpush1.bf16.msra.mxu0 %v5923_v11  ;;  %v5965_v11 = vld [vmem:[#allocation9 + $0x19c] ss:$12 sps:$4 sm:$0xff]  }
  0xe3   :  { %1537 = vmatprep.subr.bf16.mxu0 %v5930_v12  ;;  %v5966_v12 = vld [vmem:[#allocation9 + $0x260] ss:$12 sps:$4 sm:$0xff]  }
  0xe6   :  { %1538 = vmatpush1.bf16.msra.mxu0 %v5928_v13  ;;  %v5963_v13 = vld [vmem:[#allocation9 + $0x198] ss:$12 sps:$4 sm:$0xff]  }
  0xe7   :  { %1539 = vmatprep.subr.bf16.mxu0 %v5935_v14  ;;  %v5967_v14 = vld [vmem:[#allocation9 + $0x1a0] ss:$12 sps:$4 sm:$0xff]  }
  0xea   :  { %1540 = vmatpush1.bf16.msra.mxu0 %v5933_v15  ;;  %v5970_v15 = vld [vmem:[#allocation9 + $0x1b4] ss:$12 sps:$4 sm:$0xff]  }
  0xeb   :  { %1541 = vmatprep.subr.bf16.mxu0 %v5940_v17  ;;  %v5971_v17 = vld [vmem:[#allocation9 + $0x278] ss:$12 sps:$4 sm:$0xff]  }
  0xee   :  { %1542 = vmatpush1.bf16.msra.mxu0 %v5938_v18  ;;  %v5968_v18 = vld [vmem:[#allocation9 + $0x1b0] ss:$12 sps:$4 sm:$0xff]  }
  0xef   :  { %1543 = vmatprep.subr.bf16.mxu0 %v5945_v19  ;;  %v5972_v19 = vld [vmem:[#allocation9 + $0x1b8] ss:$12 sps:$4 sm:$0xff]  }
  0xf2   :  { %1544 = vmatpush1.bf16.msra.mxu0 %v5943_v20  ;;  %v5975_v20 = vld [vmem:[#allocation9 + $0x1cc] ss:$12 sps:$4 sm:$0xff]  }
  0xf3   :  { %1545 = vmatprep.subr.bf16.mxu0 %v5950_v21  ;;  %v5976_v21 = vld [vmem:[#allocation9 + $0x290] ss:$12 sps:$4 sm:$0xff]  }
  0xf6   :  { %1546 = vmatpush1.bf16.msra.mxu0 %v5948_v23  ;;  %v5977_v23 = vld [vmem:[#allocation9 + $0x1d0] ss:$12 sps:$4 sm:$0xff]  }
  0xf7   :  { %1547 = vmatprep.subr.bf16.mxu0 %v5955_v25  ;;  %v5981_v25 = vld [vmem:[#allocation9 + $0x2a8] ss:$12 sps:$4 sm:$0xff]  }
  0xfa   :  { %1548 = vmatpush1.bf16.msra.mxu0 %v5953_v27  ;;  %v5982_v27 = vld [vmem:[#allocation9 + $0x1e8] ss:$12 sps:$4 sm:$0xff]  }
  0xfb   :  { %1560 = vmatprep.subr.bf16.mxu0 %v5960_v29  ;;  %v5986_v29 = vld [vmem:[#allocation9 + $0x2c0] ss:$12 sps:$4 sm:$0xff]  }
 0x190   :  { %v770_v42 = vpop.f32.mrb[0].mxu0  ;;  %v856_v43 = vpop.f32.mrb[0].mxu1 }
 0x191   :  { %v5669_v45 = vadd.f32 %v770_v42, %v196_v38  ;;  %v5673_v46 = vadd.f32 %v856_v43, %v204_v39  ;;  %v772_v47 = vpop.f32.mrb[1].mxu0  ;;  %v858_v48 = vpop.f32.mrb[1].mxu1  ;;  %v5993_v42 = vld [vmem:[#allocation9 + $0x228] ss:$12 sps:$4 sm:$0xff]   ;;  %v5997_v43 = vld [vmem:[#allocation9 + $0x230] ss:$12 sps:$4 sm:$0xff]  }
 0x192   :  { %v5670_v49 = vadd.f32 %v772_v47, %v200_v40  ;;  %v5674_v51 = vadd.f32 %v858_v48, %v208_v41  ;;  %v774_v52 = vpop.f32.mrb[2].mxu0  ;;  %v860_v53 = vpop.f32.mrb[2].mxu1  ;;  %v5998_v47 = vld [vmem:[#allocation9 + $0x240] ss:$12 sps:$4 sm:$0xff]   ;;  %v6001_v48 = vld [vmem:[#allocation6 + $0x10] ss:$48 sps:$4 sm:$0xff]  }
 0x193   :  { %v867_v54 = vmax.f32 %v5673_v46, 0.0  ;;  %v5671_v55 = vadd.f32 %v774_v52, %v196_v38  ;;  %v5675_v56 = vadd.f32 %v860_v53, %v204_v39  ;;  %v776_v57 = vpop.f32.mrb[3].mxu0  ;;  %v862_v58 = vpop.f32.mrb[3].mxu1  ;;  %v865_v59 = vmax.f32 %v5669_v45, 0.0  ;;  %v5988_v38 = vld [vmem:[#allocation9 + $0x210] ss:$12 sps:$4 sm:$0xff]  }
 0x194   :  { %v5672_v60 = vadd.f32 %v776_v57, %v200_v40  ;;  %v5676_v61 = vadd.f32 %v862_v58, %v208_v41  ;;  %v866_v62 = vmax.f32 %v5670_v49, 0.0  ;;  %v868_v63 = vmax.f32 %v5674_v51, 0.0  ;;  %v5992_v39 = vld [vmem:[#allocation9 + $0x218] ss:$12 sps:$4 sm:$0xff]   ;;  %v5996_v41 = vld [vmem:[#allocation9 + $0x2f0] ss:$12 sps:$4 sm:$0xff]  }
 0x195   :  { %v869_v0 = vmax.f32 %v5671_v55, 0.0  ;;  %v871_v1 = vmax.f32 %v5675_v56, 0.0  ;;  %v5995_v40 = vld [vmem:[#allocation9 + $0x22c] ss:$12 sps:$4 sm:$0xff]   ;;  %v6000_v45 = vld [vmem:[#allocation9 + $0x244] ss:$12 sps:$4 sm:$0xff]  }
 0x196   :  { %v870_v2 = vmax.f32 %v5672_v60, 0.0  ;;  %v872_v3 = vmax.f32 %v5676_v61, 0.0  ;;  %v6003_v46 = vld [vmem:[#allocation6 + $0x14] ss:$48 sps:$4 sm:$0xff]   ;;  %v6007_v53 = vld [vmem:[#allocation6 + $0x70] ss:$48 sps:$4 sm:$0xff]  }
 0x197   :  { %v1001_v6 = vpack.c.bf16 %v869_v0, %v865_v59  ;;  %v6838_v7 = vpack.c.bf16 %v871_v1, %v867_v54  ;;  %v6006_v49 = vld [vmem:[#allocation9 + $0x25c] ss:$12 sps:$4 sm:$0xff]   ;;  %v6004_v52 = vld [vmem:[#allocation9 + $0x258] ss:$12 sps:$4 sm:$0xff]   ;;  %v6012_v54 = vld [vmem:[#allocation9 + $0x274] ss:$12 sps:$4 sm:$0xff]  }
 0x198   :  { %v1002_v9 = vpack.c.bf16 %v870_v2, %v866_v62  ;;  %v1004_v10 = vpack.c.bf16 %v872_v3, %v868_v63  ;;  %v6009_v51 = vld [vmem:[#allocation6 + $0x74] ss:$48 sps:$4 sm:$0xff]   ;;  %v6010_v56 = vld [vmem:[#allocation9 + $0x270] ss:$12 sps:$4 sm:$0xff]   ;;  %v6013_v57 = vld [vmem:[#allocation6 + $0xd0] ss:$48 sps:$4 sm:$0xff]  }
 0x199   :  { %v6015_v55 = vld [vmem:[#allocation6 + $0xd4] ss:$48 sps:$4 sm:$0xff]   ;;  %v6019_v61 = vld [vmem:[#allocation6 + $0x130] ss:$48 sps:$4 sm:$0xff]   ;;  %v6022_v0 = vld [vmem:[#allocation9 + $0x2a0] ss:$12 sps:$4 sm:$0xff]  }
 0x19a   :  { %1549 = vmatprep.mubr.bf16.mxu0 %v1002_v9  ;;  %1635 = vmatprep.mubr.bf16.mxu1 %v1002_v9  ;;  %v6018_v58 = vld [vmem:[#allocation9 + $0x28c] ss:$12 sps:$4 sm:$0xff]   ;;  %v6016_v60 = vld [vmem:[#allocation9 + $0x288] ss:$12 sps:$4 sm:$0xff]   ;;  %v6024_v62 = vld [vmem:[#allocation9 + $0x2a4] ss:$12 sps:$4 sm:$0xff]  }
 0x19b   :  { %1550 = vmatmul.mubr.bf16.vlgmr.msra.gmra.mrb[4].mxu0 %v1001_v6  ;;  %1636 = vmatmul.mubr.bf16.vlgmr.msra.gmra.mrb[4].mxu1 %v1001_v6  ;;  %v6021_v59 = vld [vmem:[#allocation6 + $0x134] ss:$48 sps:$4 sm:$0xff]   ;;  %v6025_v1 = vld [vmem:[#allocation6 + $0x190] ss:$48 sps:$4 sm:$0xff]  }
 0x19c   :  { %1561 = vmatpush1.bf16.msra.mxu0 %v5958_v4  ;;  %5560 = vmatpush3.bf16.msra.mxu1 %v5962_v5  ;;  %v6027_v63 = vld [vmem:[#allocation6 + $0x194] ss:$48 sps:$4 sm:$0xff]   ;;  %v6031_v5 = vld [vmem:[#allocation6 + $0x1f0] ss:$48 sps:$4 sm:$0xff]  }
 0x19d   :  { %1592 = vmatprep.mubr.bf16.mxu0 %v1004_v10  ;;  %1676 = vmatprep.mubr.bf16.mxu1 %v1004_v10  ;;  %v6030_v2 = vld [vmem:[#allocation9 + $0x2bc] ss:$12 sps:$4 sm:$0xff]   ;;  %v6028_v4 = vld [vmem:[#allocation9 + $0x2b8] ss:$12 sps:$4 sm:$0xff]   ;;  %v6036_v6 = vld [vmem:[#allocation9 + $0x2d4] ss:$12 sps:$4 sm:$0xff]  }
 0x19e   :  { %1562 = vmatprep.subr.bf16.mxu0 %v5965_v11  ;;  %5561 = vmatprep.subr.bf16.mxu1 %v5966_v12  ;;  %v6033_v3 = vld [vmem:[#allocation6 + $0x1f4] ss:$48 sps:$4 sm:$0xff]   ;;  %v6034_v10 = vld [vmem:[#allocation9 + $0x2d0] ss:$12 sps:$4 sm:$0xff]   ;;  %v6037_v11 = vld [vmem:[#allocation6 + $0x250] ss:$48 sps:$4 sm:$0xff]  }
 0x19f   :  { %v6039_v9 = vld [vmem:[#allocation6 + $0x254] ss:$48 sps:$4 sm:$0xff]  }
 0x1a0   :  { %1563 = vmatpush1.bf16.msra.mxu0 %v5963_v13  ;;  %5562 = vmatpush3.bf16.msra.mxu1 %v5967_v14  ;;  %v6042_v12 = vld [vmem:[#allocation9 + $0x2ec] ss:$12 sps:$4 sm:$0xff]   ;;  %v6040_v14 = vld [vmem:[#allocation9 + $0x2e8] ss:$12 sps:$4 sm:$0xff]  }
 0x1a1   :  { %1564 = vmatprep.subr.bf16.mxu0 %v5970_v15  ;;  %5563 = vmatprep.subr.bf16.mxu1 %v5971_v17  ;;  %v6045_v13 = vld [vmem:[#allocation6 + $0x2b4] ss:$48 sps:$4 sm:$0xff]   ;;  %v6043_v15 = vld [vmem:[#allocation6 + $0x2b0] ss:$48 sps:$4 sm:$0xff]  }
 0x1a2   :  { %v6048_v17 = vld [vmem:[#allocation6 + $0x314] ss:$48 sps:$4 sm:$0xff]  }
 0x1a4   :  { %1565 = vmatpush1.bf16.msra.mxu0 %v5968_v18  ;;  %5564 = vmatpush3.bf16.msra.mxu1 %v5972_v19  ;;  %v6051_v18 = vld [vmem:[#allocation6 + $0x1c] ss:$48 sps:$4 sm:$0xff]   ;;  %v6046_v19 = vld [vmem:[#allocation6 + $0x310] ss:$48 sps:$4 sm:$0xff]  }
 0x1a5   :  { %1566 = vmatprep.subr.bf16.mxu0 %v5975_v20  ;;  %5565 = vmatprep.subr.bf16.mxu1 %v5976_v21  ;;  %v6049_v20 = vld [vmem:[#allocation6 + $0x18] ss:$48 sps:$4 sm:$0xff]   ;;  %v6054_v21 = vld [vmem:[#allocation6 + $0x374] ss:$48 sps:$4 sm:$0xff]  }
 0x1a8   :  { %1567 = vmatpush1.bf16.msra.mxu0 %v5973_v22  ;;  %5566 = vmatpush3.bf16.msra.mxu1 %v5977_v23  ;;  %v6057_v22 = vld [vmem:[#allocation6 + $0x7c] ss:$48 sps:$4 sm:$0xff]   ;;  %v6052_v23 = vld [vmem:[#allocation6 + $0x370] ss:$48 sps:$4 sm:$0xff]  }
 0x1a9   :  { %1568 = vmatprep.subr.bf16.mxu0 %v5980_v24  ;;  %5567 = vmatprep.subr.bf16.mxu1 %v5981_v25  ;;  %v6055_v24 = vld [vmem:[#allocation6 + $0x78] ss:$48 sps:$4 sm:$0xff]   ;;  %v6060_v25 = vld [vmem:[#allocation6 + $0x3d4] ss:$48 sps:$4 sm:$0xff]  }
 0x1ac   :  { %1569 = vmatpush1.bf16.msra.mxu0 %v5978_v26  ;;  %5568 = vmatpush3.bf16.msra.mxu1 %v5982_v27  ;;  %v6063_v26 = vld [vmem:[#allocation6 + $0xdc] ss:$48 sps:$4 sm:$0xff]   ;;  %v6058_v27 = vld [vmem:[#allocation6 + $0x3d0] ss:$48 sps:$4 sm:$0xff]  }
 0x1ad   :  { %1570 = vmatprep.subr.bf16.mxu0 %v5985_v28  ;;  %5569 = vmatprep.subr.bf16.mxu1 %v5986_v29  ;;  %v6061_v28 = vld [vmem:[#allocation6 + $0xd8] ss:$48 sps:$4 sm:$0xff]   ;;  %v6066_v29 = vld [vmem:[#allocation6 + $0x434] ss:$48 sps:$4 sm:$0xff]  }
 0x1b0   :  { %1571 = vmatpush1.bf16.msra.mxu0 %v5983_v30  ;;  %5570 = vmatpush3.bf16.msra.mxu1 %v5987_v31  ;;  %v6069_v30 = vld [vmem:[#allocation6 + $0x13c] ss:$48 sps:$4 sm:$0xff]   ;;  %v6067_v31 = vld [vmem:[#allocation6 + $0x138] ss:$48 sps:$4 sm:$0xff]  }
 0x1b1   :  { %1572 = vmatprep.subr.bf16.mxu0 %v5990_v32  ;;  %5571 = vmatprep.subr.bf16.mxu1 %v5991_v34  ;;  %v6072_v32 = vld [vmem:[#allocation6 + $0x494] ss:$48 sps:$4 sm:$0xff]   ;;  %v6075_v34 = vld [vmem:[#allocation6 + $0x19c] ss:$48 sps:$4 sm:$0xff]  }
 0x1b4   :  { %1573 = vmatpush1.bf16.msra.mxu0 %v5988_v38  ;;  %5572 = vmatpush3.bf16.msra.mxu1 %v5992_v39  ;;  %v6070_v38 = vld [vmem:[#allocation6 + $0x490] ss:$48 sps:$4 sm:$0xff]   ;;  %v6073_v39 = vld [vmem:[#allocation6 + $0x198] ss:$48 sps:$4 sm:$0xff]  }
 0x1b5   :  { %1574 = vmatprep.subr.bf16.mxu0 %v5995_v40  ;;  %5573 = vmatprep.subr.bf16.mxu1 %v5996_v41  ;;  %v6078_v40 = vld [vmem:[#allocation6 + $0x4f4] ss:$48 sps:$4 sm:$0xff]   ;;  %v6081_v41 = vld [vmem:[#allocation6 + $0x1fc] ss:$48 sps:$4 sm:$0xff]  }
 0x1b8   :  { %1575 = vmatpush1.bf16.msra.mxu0 %v5993_v42  ;;  %5574 = vmatpush3.bf16.msra.mxu1 %v5997_v43  ;;  %v6076_v42 = vld [vmem:[#allocation6 + $0x4f0] ss:$48 sps:$4 sm:$0xff]   ;;  %v6079_v43 = vld [vmem:[#allocation6 + $0x1f8] ss:$48 sps:$4 sm:$0xff]  }
 0x1b9   :  { %1576 = vmatprep.subr.bf16.mxu0 %v6000_v45  ;;  %2289 = vmatprep.subr.bf16.mxu1 %v6003_v46  ;;  %v6084_v45 = vld [vmem:[#allocation6 + $0x554] ss:$48 sps:$4 sm:$0xff]   ;;  %v6087_v46 = vld [vmem:[#allocation6 + $0x25c] ss:$48 sps:$4 sm:$0xff]  }
 0x1bb   :  { %1677 = vmatmul.mubr.bf16.vlgmr.msra.gmra.mrb[8].mxu1 %v6838_v7 }
 0x1bc   :  { %1577 = vmatpush1.bf16.msra.mxu0 %v5998_v47  ;;  %2290 = vmatpush1.bf16.msra.mxu1 %v6001_v48  ;;  %v6082_v47 = vld [vmem:[#allocation6 + $0x550] ss:$48 sps:$4 sm:$0xff]   ;;  %v6085_v48 = vld [vmem:[#allocation6 + $0x258] ss:$48 sps:$4 sm:$0xff]  }
 0x1bd   :  { %1578 = vmatprep.subr.bf16.mxu0 %v6006_v49  ;;  %2291 = vmatprep.subr.bf16.mxu1 %v6009_v51  ;;  %v6090_v49 = vld [vmem:[#allocation6 + $0x5b4] ss:$48 sps:$4 sm:$0xff]   ;;  %v6093_v51 = vld [vmem:[#allocation6 + $0x2bc] ss:$48 sps:$4 sm:$0xff]  }
 0x1be   :  { %2321 = vmatprep.mubr.bf16.mxu1 %v6812_v50 }
 0x1c0   :  { %1579 = vmatpush1.bf16.msra.mxu0 %v6004_v52  ;;  %2292 = vmatpush1.bf16.msra.mxu1 %v6007_v53  ;;  %v6088_v52 = vld [vmem:[#allocation6 + $0x5b0] ss:$48 sps:$4 sm:$0xff]   ;;  %v6091_v53 = vld [vmem:[#allocation6 + $0x2b8] ss:$48 sps:$4 sm:$0xff]  }
 0x1c1   :  { %1580 = vmatprep.subr.bf16.mxu0 %v6012_v54  ;;  %2293 = vmatprep.subr.bf16.mxu1 %v6015_v55  ;;  %v6096_v54 = vld [vmem:[#allocation6 + $0x614] ss:$48 sps:$4 sm:$0xff]   ;;  %v6099_v55 = vld [vmem:[#allocation6 + $0x31c] ss:$48 sps:$4 sm:$0xff]  }
 0x1c4   :  { %1581 = vmatpush1.bf16.msra.mxu0 %v6010_v56  ;;  %2294 = vmatpush1.bf16.msra.mxu1 %v6013_v57  ;;  %v6094_v56 = vld [vmem:[#allocation6 + $0x610] ss:$48 sps:$4 sm:$0xff]   ;;  %v6097_v57 = vld [vmem:[#allocation6 + $0x318] ss:$48 sps:$4 sm:$0xff]  }
 0x1c5   :  { %1582 = vmatprep.subr.bf16.mxu0 %v6018_v58  ;;  %2295 = vmatprep.subr.bf16.mxu1 %v6021_v59  ;;  %v6102_v58 = vld [vmem:[#allocation6 + $0x674] ss:$48 sps:$4 sm:$0xff]   ;;  %v6105_v59 = vld [vmem:[#allocation6 + $0x37c] ss:$48 sps:$4 sm:$0xff]  }
 0x1c8   :  { %1583 = vmatpush1.bf16.msra.mxu0 %v6016_v60  ;;  %2296 = vmatpush1.bf16.msra.mxu1 %v6019_v61  ;;  %v6100_v60 = vld [vmem:[#allocation6 + $0x670] ss:$48 sps:$4 sm:$0xff]   ;;  %v6103_v61 = vld [vmem:[#allocation6 + $0x378] ss:$48 sps:$4 sm:$0xff]  }
 0x1c9   :  { %1584 = vmatprep.subr.bf16.mxu0 %v6024_v62  ;;  %2297 = vmatprep.subr.bf16.mxu1 %v6027_v63  ;;  %v6108_v62 = vld [vmem:[#allocation6 + $0x6d4] ss:$48 sps:$4 sm:$0xff]   ;;  %v6111_v63 = vld [vmem:[#allocation6 + $0x3dc] ss:$48 sps:$4 sm:$0xff]  }
 0x1cc   :  { %1585 = vmatpush1.bf16.msra.mxu0 %v6022_v0  ;;  %2298 = vmatpush1.bf16.msra.mxu1 %v6025_v1  ;;  %v6106_v0 = vld [vmem:[#allocation6 + $0x6d0] ss:$48 sps:$4 sm:$0xff]   ;;  %v6109_v1 = vld [vmem:[#allocation6 + $0x3d8] ss:$48 sps:$4 sm:$0xff]  }
 0x1cd   :  { %1586 = vmatprep.subr.bf16.mxu0 %v6030_v2  ;;  %2299 = vmatprep.subr.bf16.mxu1 %v6033_v3  ;;  %v6114_v2 = vld [vmem:[#allocation6 + $0x734] ss:$48 sps:$4 sm:$0xff]   ;;  %v6117_v3 = vld [vmem:[#allocation6 + $0x43c] ss:$48 sps:$4 sm:$0xff]  }
 0x1d0   :  { %1587 = vmatpush1.bf16.msra.mxu0 %v6028_v4  ;;  %2300 = vmatpush1.bf16.msra.mxu1 %v6031_v5  ;;  %v6112_v4 = vld [vmem:[#allocation6 + $0x730] ss:$48 sps:$4 sm:$0xff]   ;;  %v6115_v5 = vld [vmem:[#allocation6 + $0x438] ss:$48 sps:$4 sm:$0xff]  }
 0x1d1   :  { %1588 = vmatprep.subr.bf16.mxu0 %v6036_v6  ;;  %2301 = vmatprep.subr.bf16.mxu1 %v6039_v9  ;;  %v6120_v6 = vld [vmem:[#allocation6 + $0x794] ss:$48 sps:$4 sm:$0xff]   ;;  %v6123_v9 = vld [vmem:[#allocation6 + $0x49c] ss:$48 sps:$4 sm:$0xff]  }
 0x1d4   :  { %1589 = vmatpush1.bf16.msra.mxu0 %v6034_v10  ;;  %2302 = vmatpush1.bf16.msra.mxu1 %v6037_v11  ;;  %v6118_v10 = vld [vmem:[#allocation6 + $0x790] ss:$48 sps:$4 sm:$0xff]   ;;  %v6121_v11 = vld [vmem:[#allocation6 + $0x498] ss:$48 sps:$4 sm:$0xff]  }
 0x1d5   :  { %1590 = vmatprep.subr.bf16.mxu0 %v6042_v12  ;;  %2303 = vmatprep.subr.bf16.mxu1 %v6045_v13  ;;  %v6126_v12 = vld [vmem:[#allocation6 + $0x7f4] ss:$48 sps:$4 sm:$0xff]   ;;  %v6129_v13 = vld [vmem:[#allocation6 + $0x4fc] ss:$48 sps:$4 sm:$0xff]  }
 0x1d8   :  { %1591 = vmatpush1.bf16.msra.mxu0 %v6040_v14  ;;  %2304 = vmatpush1.bf16.msra.mxu1 %v6043_v15  ;;  %v6124_v14 = vld [vmem:[#allocation6 + $0x7f0] ss:$48 sps:$4 sm:$0xff]   ;;  %v6127_v15 = vld [vmem:[#allocation6 + $0x4f8] ss:$48 sps:$4 sm:$0xff]  }
 0x1d9   :  { %2305 = vmatprep.subr.bf16.mxu1 %v6048_v17  ;;  %2375 = vmatprep.subr.bf16.mxu0 %v6051_v18  ;;  %v6132_v17 = vld [vmem:[#allocation6 + $0x854] ss:$48 sps:$4 sm:$0xff]   ;;  %v6135_v18 = vld [vmem:[#allocation6 + $0x55c] ss:$48 sps:$4 sm:$0xff]  }
 0x1db   :  { %1593 = vmatmul.mubr.bf16.vlgmr.msra.gmra.mrb[4].mxu0 %v6838_v7  ;;  %v6064_v7 = vld [vmem:[#allocation6 + $0x430] ss:$48 sps:$4 sm:$0xff]  }
 0x1dc   :  { %2306 = vmatpush1.bf16.msra.mxu1 %v6046_v19  ;;  %2376 = vmatpush1.bf16.msra.mxu0 %v6049_v20  ;;  %v6130_v19 = vld [vmem:[#allocation6 + $0x850] ss:$48 sps:$4 sm:$0xff]   ;;  %v6133_v20 = vld [vmem:[#allocation6 + $0x558] ss:$48 sps:$4 sm:$0xff]  }
 0x1dd   :  { %2307 = vmatprep.subr.bf16.mxu1 %v6054_v21  ;;  %2377 = vmatprep.subr.bf16.mxu0 %v6057_v22  ;;  %v6138_v21 = vld [vmem:[#allocation6 + $0x8b4] ss:$48 sps:$4 sm:$0xff]   ;;  %v6141_v22 = vld [vmem:[#allocation6 + $0x5bc] ss:$48 sps:$4 sm:$0xff]  }
 0x1de   :  { %2407 = vmatprep.mubr.bf16.mxu0 %v6812_v50 }
 0x1e0   :  { %2308 = vmatpush1.bf16.msra.mxu1 %v6052_v23  ;;  %2378 = vmatpush1.bf16.msra.mxu0 %v6055_v24  ;;  %v6136_v23 = vld [vmem:[#allocation6 + $0x8b0] ss:$48 sps:$4 sm:$0xff]   ;;  %v6139_v24 = vld [vmem:[#allocation6 + $0x5b8] ss:$48 sps:$4 sm:$0xff]  }
 0x1e1   :  { %2309 = vmatprep.subr.bf16.mxu1 %v6060_v25  ;;  %2379 = vmatprep.subr.bf16.mxu0 %v6063_v26  ;;  %v6144_v25 = vld [vmem:[#allocation6 + $0x61c] ss:$48 sps:$4 sm:$0xff]   ;;  %v6142_v26 = vld [vmem:[#allocation6 + $0x618] ss:$48 sps:$4 sm:$0xff]  }
 0x1e4   :  { %2310 = vmatpush1.bf16.msra.mxu1 %v6058_v27  ;;  %2380 = vmatpush1.bf16.msra.mxu0 %v6061_v28  ;;  %v6147_v27 = vld [vmem:[#allocation6 + $0x67c] ss:$48 sps:$4 sm:$0xff]   ;;  %v6193_v28 = vld [vmem:[#allocation9 + $0x3c8] ss:$12 sps:$4 sm:$0xff]  }
 0x1e5   :  { %2311 = vmatprep.subr.bf16.mxu1 %v6066_v29  ;;  %2381 = vmatprep.subr.bf16.mxu0 %v6069_v30  ;;  %v6194_v29 = vld [vmem:[#allocation9 + $0x308] ss:$12 sps:$4 sm:$0xff]   ;;  %v6198_v30 = vld [vmem:[#allocation9 + $0x3e0] ss:$12 sps:$4 sm:$0xff]  }
 0x1e8   :  { %2312 = vmatpush1.bf16.msra.mxu1 %v6064_v7  ;;  %2382 = vmatpush1.bf16.msra.mxu0 %v6067_v31  ;;  %v6145_v7 = vld [vmem:[#allocation6 + $0x678] ss:$48 sps:$4 sm:$0xff]   ;;  %v6150_v31 = vld [vmem:[#allocation6 + $0x6dc] ss:$48 sps:$4 sm:$0xff]  }
 0x1e9   :  { %2313 = vmatprep.subr.bf16.mxu1 %v6072_v32  ;;  %2383 = vmatprep.subr.bf16.mxu0 %v6075_v34  ;;  %v6199_v32 = vld [vmem:[#allocation9 + $0x320] ss:$12 sps:$4 sm:$0xff]   ;;  %v6203_v34 = vld [vmem:[#allocation9 + $0x3f8] ss:$12 sps:$4 sm:$0xff]  }
 0x1ec   :  { %2314 = vmatpush1.bf16.msra.mxu1 %v6070_v38  ;;  %2384 = vmatpush1.bf16.msra.mxu0 %v6073_v39  ;;  %v6148_v38 = vld [vmem:[#allocation6 + $0x6d8] ss:$48 sps:$4 sm:$0xff]   ;;  %v6153_v39 = vld [vmem:[#allocation6 + $0x73c] ss:$48 sps:$4 sm:$0xff]  }
 0x1ed   :  { %2315 = vmatprep.subr.bf16.mxu1 %v6078_v40  ;;  %2385 = vmatprep.subr.bf16.mxu0 %v6081_v41  ;;  %v6204_v40 = vld [vmem:[#allocation9 + $0x338] ss:$12 sps:$4 sm:$0xff]   ;;  %v6208_v41 = vld [vmem:[#allocation9 + $0x410] ss:$12 sps:$4 sm:$0xff]  }
 0x1f0   :  { %2316 = vmatpush1.bf16.msra.mxu1 %v6076_v42  ;;  %2386 = vmatpush1.bf16.msra.mxu0 %v6079_v43  ;;  %v6151_v42 = vld [vmem:[#allocation6 + $0x738] ss:$48 sps:$4 sm:$0xff]   ;;  %v6156_v43 = vld [vmem:[#allocation6 + $0x79c] ss:$48 sps:$4 sm:$0xff]  }
 0x1f1   :  { %2317 = vmatprep.subr.bf16.mxu1 %v6084_v45  ;;  %2387 = vmatprep.subr.bf16.mxu0 %v6087_v46  ;;  %v6209_v45 = vld [vmem:[#allocation9 + $0x350] ss:$12 sps:$4 sm:$0xff]   ;;  %v6213_v46 = vld [vmem:[#allocation9 + $0x428] ss:$12 sps:$4 sm:$0xff]  }
 0x1f4   :  { %2318 = vmatpush1.bf16.msra.mxu1 %v6082_v47  ;;  %2388 = vmatpush1.bf16.msra.mxu0 %v6085_v48  ;;  %v6154_v47 = vld [vmem:[#allocation6 + $0x798] ss:$48 sps:$4 sm:$0xff]   ;;  %v6159_v48 = vld [vmem:[#allocation6 + $0x7fc] ss:$48 sps:$4 sm:$0xff]  }
 0x1f5   :  { %2319 = vmatprep.subr.bf16.mxu1 %v6090_v49  ;;  %2389 = vmatprep.subr.bf16.mxu0 %v6093_v51  ;;  %v6214_v49 = vld [vmem:[#allocation9 + $0x368] ss:$12 sps:$4 sm:$0xff]   ;;  %v6218_v51 = vld [vmem:[#allocation9 + $0x440] ss:$12 sps:$4 sm:$0xff]  }
 0x1f8   :  { %2320 = vmatpush1.bf16.msra.mxu1 %v6088_v52  ;;  %2390 = vmatpush1.bf16.msra.mxu0 %v6091_v53  ;;  %v6157_v52 = vld [vmem:[#allocation6 + $0x7f8] ss:$48 sps:$4 sm:$0xff]   ;;  %v6162_v53 = vld [vmem:[#allocation6 + $0x85c] ss:$48 sps:$4 sm:$0xff]  }
 0x1f9   :  { %2332 = vmatprep.subr.bf16.mxu1 %v6096_v54  ;;  %2391 = vmatprep.subr.bf16.mxu0 %v6099_v55  ;;  %v6219_v54 = vld [vmem:[#allocation9 + $0x380] ss:$12 sps:$4 sm:$0xff]  }
 0x1fa   :  { %v6160_v55 = vld [vmem:[#allocation6 + $0x858] ss:$48 sps:$4 sm:$0xff]  }
 0x1fb   :  { %2322 = vmatmul.mubr.bf16.vlgmr.msra.gmra.mrb[12].mxu1 %v6816_v8 }
 0x1fc   :  { %2333 = vmatpush1.bf16.msra.mxu1 %v6094_v56  ;;  %2392 = vmatpush1.bf16.msra.mxu0 %v6097_v57  ;;  %v6165_v56 = vld [vmem:[#allocation6 + $0x8bc] ss:$48 sps:$4 sm:$0xff]   ;;  %v6163_v57 = vld [vmem:[#allocation6 + $0x8b8] ss:$48 sps:$4 sm:$0xff]  }
 0x1fd   :  { %2334 = vmatprep.subr.bf16.mxu1 %v6102_v58  ;;  %2393 = vmatprep.subr.bf16.mxu0 %v6105_v59  ;;  %v6168_v58 = vld [vmem:[#allocation9 + $0x304] ss:$12 sps:$4 sm:$0xff]   ;;  %v6166_v59 = vld [vmem:[#allocation9 + $0x300] ss:$12 sps:$4 sm:$0xff]  }
 0x1fe   :  { %2364 = vmatprep.mubr.bf16.mxu1 %v6717_v16 }
 0x200   :  { %2335 = vmatpush1.bf16.msra.mxu1 %v6100_v60  ;;  %2394 = vmatpush1.bf16.msra.mxu0 %v6103_v61  ;;  %v6171_v60 = vld [vmem:[#allocation9 + $0x31c] ss:$12 sps:$4 sm:$0xff]   ;;  %v6169_v61 = vld [vmem:[#allocation9 + $0x318] ss:$12 sps:$4 sm:$0xff]  }
 0x201   :  { %2336 = vmatprep.subr.bf16.mxu1 %v6108_v62  ;;  %2395 = vmatprep.subr.bf16.mxu0 %v6111_v63  ;;  %v6174_v62 = vld [vmem:[#allocation9 + $0x334] ss:$12 sps:$4 sm:$0xff]   ;;  %v6172_v63 = vld [vmem:[#allocation9 + $0x330] ss:$12 sps:$4 sm:$0xff]  }
 0x204   :  { %2337 = vmatpush1.bf16.msra.mxu1 %v6106_v0  ;;  %2396 = vmatpush1.bf16.msra.mxu0 %v6109_v1  ;;  %v6177_v0 = vld [vmem:[#allocation9 + $0x34c] ss:$12 sps:$4 sm:$0xff]   ;;  %v6175_v1 = vld [vmem:[#allocation9 + $0x348] ss:$12 sps:$4 sm:$0xff]  }
 0x205   :  { %2338 = vmatprep.subr.bf16.mxu1 %v6114_v2  ;;  %2397 = vmatprep.subr.bf16.mxu0 %v6117_v3  ;;  %v6180_v2 = vld [vmem:[#allocation9 + $0x364] ss:$12 sps:$4 sm:$0xff]   ;;  %v6178_v3 = vld [vmem:[#allocation9 + $0x360] ss:$12 sps:$4 sm:$0xff]  }
 0x208   :  { %2339 = vmatpush1.bf16.msra.mxu1 %v6112_v4  ;;  %2398 = vmatpush1.bf16.msra.mxu0 %v6115_v5  ;;  %v6183_v4 = vld [vmem:[#allocation9 + $0x37c] ss:$12 sps:$4 sm:$0xff]   ;;  %v6181_v5 = vld [vmem:[#allocation9 + $0x378] ss:$12 sps:$4 sm:$0xff]  }
 0x209   :  { %2340 = vmatprep.subr.bf16.mxu1 %v6120_v6  ;;  %2399 = vmatprep.subr.bf16.mxu0 %v6123_v9  ;;  %v6186_v6 = vld [vmem:[#allocation9 + $0x394] ss:$12 sps:$4 sm:$0xff]   ;;  %v6184_v9 = vld [vmem:[#allocation9 + $0x390] ss:$12 sps:$4 sm:$0xff]  }
 0x20c   :  { %2341 = vmatpush1.bf16.msra.mxu1 %v6118_v10  ;;  %2400 = vmatpush1.bf16.msra.mxu0 %v6121_v11  ;;  %v6189_v10 = vld [vmem:[#allocation9 + $0x3ac] ss:$12 sps:$4 sm:$0xff]   ;;  %v6187_v11 = vld [vmem:[#allocation9 + $0x3a8] ss:$12 sps:$4 sm:$0xff]  }
 0x20d   :  { %2342 = vmatprep.subr.bf16.mxu1 %v6126_v12  ;;  %2401 = vmatprep.subr.bf16.mxu0 %v6129_v13  ;;  %v6192_v12 = vld [vmem:[#allocation9 + $0x3c4] ss:$12 sps:$4 sm:$0xff]   ;;  %v6190_v13 = vld [vmem:[#allocation9 + $0x3c0] ss:$12 sps:$4 sm:$0xff]  }
 0x210   :  { %2343 = vmatpush1.bf16.msra.mxu1 %v6124_v14  ;;  %2402 = vmatpush1.bf16.msra.mxu0 %v6127_v15  ;;  %v6197_v14 = vld [vmem:[#allocation9 + $0x3dc] ss:$12 sps:$4 sm:$0xff]   ;;  %v6195_v15 = vld [vmem:[#allocation9 + $0x3d8] ss:$12 sps:$4 sm:$0xff]  }
 0x211   :  { %2344 = vmatprep.subr.bf16.mxu1 %v6132_v17  ;;  %2403 = vmatprep.subr.bf16.mxu0 %v6135_v18  ;;  %v6202_v17 = vld [vmem:[#allocation9 + $0x3f4] ss:$12 sps:$4 sm:$0xff]   ;;  %v6200_v18 = vld [vmem:[#allocation9 + $0x3f0] ss:$12 sps:$4 sm:$0xff]  }
 0x214   :  { %2345 = vmatpush1.bf16.msra.mxu1 %v6130_v19  ;;  %2404 = vmatpush1.bf16.msra.mxu0 %v6133_v20  ;;  %v6207_v19 = vld [vmem:[#allocation9 + $0x40c] ss:$12 sps:$4 sm:$0xff]   ;;  %v6205_v20 = vld [vmem:[#allocation9 + $0x408] ss:$12 sps:$4 sm:$0xff]  }
 0x215   :  { %2346 = vmatprep.subr.bf16.mxu1 %v6138_v21  ;;  %2405 = vmatprep.subr.bf16.mxu0 %v6141_v22  ;;  %v6212_v21 = vld [vmem:[#allocation9 + $0x424] ss:$12 sps:$4 sm:$0xff]   ;;  %v6210_v22 = vld [vmem:[#allocation9 + $0x420] ss:$12 sps:$4 sm:$0xff]  }
 0x218   :  { %2347 = vmatpush1.bf16.msra.mxu1 %v6136_v23  ;;  %2406 = vmatpush1.bf16.msra.mxu0 %v6139_v24  ;;  %v6217_v23 = vld [vmem:[#allocation9 + $0x43c] ss:$12 sps:$4 sm:$0xff]   ;;  %v6215_v24 = vld [vmem:[#allocation9 + $0x438] ss:$12 sps:$4 sm:$0xff]  }
 0x219   :  { %2418 = vmatprep.subr.bf16.mxu0 %v6144_v25  ;;  %5581 = vmatprep.subr.bf16.mxu1 %v6193_v28 }
 0x21b   :  { %2365 = vmatmul.mubr.bf16.vlgmr.msra.gmra.mrb[12].mxu1 %v6822_v44  ;;  %2408 = vmatmul.mubr.bf16.vlgmr.msra.gmra.mrb[8].mxu0 %v6816_v8 }
 0x21c   :  { %2419 = vmatpush1.bf16.msra.mxu0 %v6142_v26  ;;  %2450 = vmatprep.mubr.bf16.mxu0 %v6717_v16  ;;  %v6222_v26 = vld [vmem:[#allocation9 + $0x454] ss:$12 sps:$4 sm:$0xff]  }
 0x21d   :  { %2420 = vmatprep.subr.bf16.mxu0 %v6147_v27  ;;  %5582 = vmatpush3.bf16.msra.mxu1 %v6194_v29  ;;  %v6223_v27 = vld [vmem:[#allocation9 + $0x458] ss:$12 sps:$4 sm:$0xff]  }
 0x21e   :  { %5583 = vmatprep.subr.bf16.mxu1 %v6198_v30  ;;  %v6224_v29 = vld [vmem:[#allocation9 + $0x398] ss:$12 sps:$4 sm:$0xff]  }
 0x220   :  { %2421 = vmatpush1.bf16.msra.mxu0 %v6145_v7 }
 0x221   :  { %2422 = vmatprep.subr.bf16.mxu0 %v6150_v31  ;;  %5584 = vmatpush3.bf16.msra.mxu1 %v6199_v32  ;;  %v6220_v31 = vld [vmem:[#allocation9 + $0x450] ss:$12 sps:$4 sm:$0xff]  }
 0x222   :  { %5585 = vmatprep.subr.bf16.mxu1 %v6203_v34 }
 0x224   :  { %2423 = vmatpush1.bf16.msra.mxu0 %v6148_v38  ;;  %v6227_v38 = vld [vmem:[#allocation9 + $0x46c] ss:$12 sps:$4 sm:$0xff]  }
 0x225   :  { %2424 = vmatprep.subr.bf16.mxu0 %v6153_v39  ;;  %5586 = vmatpush3.bf16.msra.mxu1 %v6204_v40  ;;  %v6228_v39 = vld [vmem:[#allocation9 + $0x470] ss:$12 sps:$4 sm:$0xff]  }
 0x226   :  { %5587 = vmatprep.subr.bf16.mxu1 %v6208_v41  ;;  %v6229_v40 = vld [vmem:[#allocation9 + $0x3b0] ss:$12 sps:$4 sm:$0xff]   ;;  %v6225_v41 = vld [vmem:[#allocation9 + $0x468] ss:$12 sps:$4 sm:$0xff]  }
 0x228   :  { %2425 = vmatpush1.bf16.msra.mxu0 %v6151_v42  ;;  %v6232_v42 = vld [vmem:[#allocation9 + $0x484] ss:$12 sps:$4 sm:$0xff]  }
 0x229   :  { %2426 = vmatprep.subr.bf16.mxu0 %v6156_v43  ;;  %5588 = vmatpush3.bf16.msra.mxu1 %v6209_v45  ;;  %v6233_v43 = vld [vmem:[#allocation9 + $0x548] ss:$12 sps:$4 sm:$0xff]  }
 0x22a   :  { %5589 = vmatprep.subr.bf16.mxu1 %v6213_v46 }
 0x22c   :  { %2427 = vmatpush1.bf16.msra.mxu0 %v6154_v47 }
 0x22d   :  { %2428 = vmatprep.subr.bf16.mxu0 %v6159_v48  ;;  %5590 = vmatpush3.bf16.msra.mxu1 %v6214_v49 }
 0x22e   :  { %5591 = vmatprep.subr.bf16.mxu1 %v6218_v51 }
 0x230   :  { %2429 = vmatpush1.bf16.msra.mxu0 %v6157_v52 }
 0x231   :  { %2430 = vmatprep.subr.bf16.mxu0 %v6162_v53  ;;  %5592 = vmatpush3.bf16.msra.mxu1 %v6219_v54  ;;  %v6854_v54 = vld [vmem:[#allocation8 + $0x4] sm:$0xf] }
 0x232   :  { %5593 = vmatprep.subr.bf16.mxu1 %v6223_v27  ;;  %v6254_v27 = vld [vmem:[#allocation9 + $0x4e8] ss:$12 sps:$4 sm:$0xff]  }
 0x234   :  { %2431 = vmatpush1.bf16.msra.mxu0 %v6160_v55  ;;  %v1792_v55 = vrot.slane %v6854_v54, %v6826_v33 }
 0x235   :  { %2432 = vmatprep.subr.bf16.mxu0 %v6165_v56  ;;  %5594 = vmatpush3.bf16.msra.mxu1 %v6224_v29  ;;  %v1796_v56 = vrot.slane %v6854_v54, %v6830_v36  ;;  %v6258_v29 = vld [vmem:[#allocation9 + $0x5c0] ss:$12 sps:$4 sm:$0xff]  }
 0x236   :  { %5595 = vmatprep.subr.bf16.mxu1 %v6228_v39 }
 0x238   :  { %2433 = vmatpush1.bf16.msra.mxu0 %v6163_v57 }
 0x239   :  { %3113 = vmatprep.subr.bf16.mxu0 %v6168_v58  ;;  %5596 = vmatpush3.bf16.msra.mxu1 %v6229_v40  ;;  %v6260_v40 = vld [vmem:[#allocation9 + $0x510] ss:$12 sps:$4 sm:$0xff]  }
 0x23a   :  { %5603 = vmatprep.subr.bf16.mxu1 %v6233_v43 }
 0x23b   :  { %2451 = vmatmul.mubr.bf16.vlgmr.msra.gmra.mrb[8].mxu0 %v6822_v44 }
 0x23c   :  { %3114 = vmatpush1.bf16.msra.mxu0 %v6166_v59 }
 0x23d   :  { %3115 = vmatprep.subr.bf16.mxu0 %v6171_v60 }
 0x240   :  { %3116 = vmatpush1.bf16.msra.mxu0 %v6169_v61 }
 0x241   :  { %3117 = vmatprep.subr.bf16.mxu0 %v6174_v62 }
 0x244   :  { %3118 = vmatpush1.bf16.msra.mxu0 %v6172_v63 }
 0x245   :  { %3119 = vmatprep.subr.bf16.mxu0 %v6177_v0 }
 0x248   :  { %3120 = vmatpush1.bf16.msra.mxu0 %v6175_v1 }
 0x249   :  { %3121 = vmatprep.subr.bf16.mxu0 %v6180_v2 }
 0x24c   :  { %3122 = vmatpush1.bf16.msra.mxu0 %v6178_v3 }
 0x24d   :  { %3123 = vmatprep.subr.bf16.mxu0 %v6183_v4 }
 0x250   :  { %3124 = vmatpush1.bf16.msra.mxu0 %v6181_v5 }
 0x251   :  { %3125 = vmatprep.subr.bf16.mxu0 %v6186_v6 }
 0x254   :  { %3126 = vmatpush1.bf16.msra.mxu0 %v6184_v9  ;;  %v6230_v9 = vld [vmem:[#allocation9 + $0x480] ss:$12 sps:$4 sm:$0xff]  }
 0x255   :  { %3127 = vmatprep.subr.bf16.mxu0 %v6189_v10  ;;  %v6234_v10 = vld [vmem:[#allocation9 + $0x488] ss:$12 sps:$4 sm:$0xff]  }
 0x258   :  { %3128 = vmatpush1.bf16.msra.mxu0 %v6187_v11  ;;  %v6237_v11 = vld [vmem:[#allocation9 + $0x49c] ss:$12 sps:$4 sm:$0xff]  }
 0x259   :  { %3129 = vmatprep.subr.bf16.mxu0 %v6192_v12  ;;  %v6238_v12 = vld [vmem:[#allocation9 + $0x560] ss:$12 sps:$4 sm:$0xff]  }
 0x25c   :  { %3130 = vmatpush1.bf16.msra.mxu0 %v6190_v13  ;;  %v6235_v13 = vld [vmem:[#allocation9 + $0x498] ss:$12 sps:$4 sm:$0xff]  }
 0x25d   :  { %3131 = vmatprep.subr.bf16.mxu0 %v6197_v14  ;;  %v6239_v14 = vld [vmem:[#allocation9 + $0x4a0] ss:$12 sps:$4 sm:$0xff]  }
 0x260   :  { %3132 = vmatpush1.bf16.msra.mxu0 %v6195_v15  ;;  %v6242_v15 = vld [vmem:[#allocation9 + $0x4b4] ss:$12 sps:$4 sm:$0xff]  }
 0x261   :  { %3133 = vmatprep.subr.bf16.mxu0 %v6202_v17  ;;  %v6243_v17 = vld [vmem:[#allocation9 + $0x578] ss:$12 sps:$4 sm:$0xff]  }
 0x264   :  { %3134 = vmatpush1.bf16.msra.mxu0 %v6200_v18  ;;  %v6240_v18 = vld [vmem:[#allocation9 + $0x4b0] ss:$12 sps:$4 sm:$0xff]  }
 0x265   :  { %3135 = vmatprep.subr.bf16.mxu0 %v6207_v19  ;;  %v6244_v19 = vld [vmem:[#allocation9 + $0x4b8] ss:$12 sps:$4 sm:$0xff]  }
 0x268   :  { %3136 = vmatpush1.bf16.msra.mxu0 %v6205_v20  ;;  %v6247_v20 = vld [vmem:[#allocation9 + $0x4cc] ss:$12 sps:$4 sm:$0xff]  }
 0x269   :  { %3137 = vmatprep.subr.bf16.mxu0 %v6212_v21  ;;  %v6248_v21 = vld [vmem:[#allocation9 + $0x590] ss:$12 sps:$4 sm:$0xff]  }
 0x26c   :  { %3138 = vmatpush1.bf16.msra.mxu0 %v6210_v22  ;;  %v6245_v22 = vld [vmem:[#allocation9 + $0x4c8] ss:$12 sps:$4 sm:$0xff]  }
 0x26d   :  { %3139 = vmatprep.subr.bf16.mxu0 %v6217_v23  ;;  %v6249_v23 = vld [vmem:[#allocation9 + $0x4d0] ss:$12 sps:$4 sm:$0xff]  }
 0x26e   :  { %v5553_v25 = vpop.f32.mrb[4].mxu1 }
 0x26f   :  { %v5554_v28 = vpop.f32.mrb[5].mxu1 }
 0x270   :  { %v5555_v30 = vadd.f32 %v5554_v28, %v5553_v25  ;;  %v5556_v7 = vpop.f32.mrb[6].mxu1  ;;  %3140 = vmatpush1.bf16.msra.mxu0 %v6215_v24  ;;  %v6252_v24 = vld [vmem:[#allocation9 + $0x4e4] ss:$12 sps:$4 sm:$0xff]   ;;  %v6253_v25 = vld [vmem:[#allocation9 + $0x5a8] ss:$12 sps:$4 sm:$0xff]  }
 0x271   :  { %v5557_v32 = vpop.f32.mrb[7].mxu1  ;;  %3141 = vmatprep.subr.bf16.mxu0 %v6222_v26  ;;  %v6250_v26 = vld [vmem:[#allocation9 + $0x4e0] ss:$12 sps:$4 sm:$0xff]   ;;  %v6257_v28 = vld [vmem:[#allocation9 + $0x4fc] ss:$12 sps:$4 sm:$0xff]  }
 0x272   :  { %v5558_v34 = vadd.f32 %v5557_v32, %v5556_v7  ;;  %v6259_v7 = vld [vmem:[#allocation9 + $0x500] ss:$12 sps:$4 sm:$0xff]  }
 0x273   :  { %v6262_v32 = vld [vmem:[#allocation9 + $0x514] ss:$12 sps:$4 sm:$0xff]  }
 0x274   :  { %3142 = vmatpush1.bf16.msra.mxu0 %v6220_v31  ;;  %v1800_v31 = vrot.slane %v6854_v54, %v6828_v35 }
 0x275   :  { %3143 = vmatprep.subr.bf16.mxu0 %v6227_v38  ;;  %v1804_v38 = vrot.slane %v6854_v54, %v6832_v37  ;;  %v6269_v54 = vld [vmem:[#allocation9 + $0x530] ss:$12 sps:$4 sm:$0xff]  }
 0x278   :  { %3144 = vmatpush1.bf16.msra.mxu0 %v6225_v41  ;;  %v6264_v41 = vld [vmem:[#allocation9 + $0x518] ss:$12 sps:$4 sm:$0xff]  }
 0x279   :  { %3156 = vmatprep.subr.bf16.mxu0 %v6232_v42 }
 0x28e   :  { %v5575_v45 = vpop.f32.mrb[8].mxu1 }
 0x28f   :  { %v5576_v46 = vpop.f32.mrb[9].mxu1 }
 0x290   :  { %v5577_v47 = vadd.f32 %v5576_v46, %v5575_v45  ;;  %v5578_v48 = vpop.f32.mrb[10].mxu1  ;;  %v6267_v45 = vld [vmem:[#allocation9 + $0x52c] ss:$12 sps:$4 sm:$0xff]   ;;  %v6268_v46 = vld [vmem:[#allocation9 + $0x5f0] ss:$12 sps:$4 sm:$0xff]  }
 0x291   :  { %v5579_v49 = vpop.f32.mrb[11].mxu1 }
 0x292   :  { %v6850_v51 = vadd.f32 %v5577_v47, %v5555_v30  ;;  %v5580_v52 = vadd.f32 %v5579_v49, %v5578_v48  ;;  %v6255_v30 = vld [vmem:[#allocation9 + $0x4f8] ss:$12 sps:$4 sm:$0xff]  }
 0x294   :  { %v6852_v53 = vadd.f32 %v5580_v52, %v5558_v34  ;;  %v6263_v34 = vld [vmem:[#allocation9 + $0x5d8] ss:$12 sps:$4 sm:$0xff]  }
 0x2ee   :  { %v2366_v57 = vpop.f32.mrb[12].mxu1 }
 0x2ef   :  { %v5677_v58 = vadd.f32 %v2366_v57, %v1792_v55  ;;  %v2368_v59 = vpop.f32.mrb[13].mxu1 }
 0x2f0   :  { %v5678_v60 = vadd.f32 %v2368_v59, %v1796_v56  ;;  %v2370_v61 = vpop.f32.mrb[14].mxu1  ;;  %v6272_v59 = vld [vmem:[#allocation9 + $0x544] ss:$12 sps:$4 sm:$0xff]  }
 0x2f1   :  { %v5679_v62 = vadd.f32 %v2370_v61, %v1792_v55  ;;  %v2372_v63 = vpop.f32.mrb[15].mxu1  ;;  %v2461_v1 = vmax.f32 %v5677_v58, 0.0 }
 0x2f2   :  { %v5680_v0 = vadd.f32 %v2372_v63, %v1796_v56  ;;  %v2462_v3 = vmax.f32 %v5678_v60, 0.0  ;;  %v6265_v56 = vld [vmem:[#allocation9 + $0x528] ss:$12 sps:$4 sm:$0xff]  }
 0x2f3   :  { %v2465_v2 = vmax.f32 %v5679_v62, 0.0  ;;  %v6275_v60 = vld [vmem:[#allocation6 + $0x24] ss:$48 sps:$4 sm:$0xff]  }
 0x2f4   :  { %v2466_v4 = vmax.f32 %v5680_v0, 0.0 }
 0x2f5   :  { %v2597_v5 = vpack.c.bf16 %v2465_v2, %v2461_v1  ;;  %v6270_v1 = vld [vmem:[#allocation9 + $0x540] ss:$12 sps:$4 sm:$0xff]   ;;  %v6273_v2 = vld [vmem:[#allocation6 + $0x20] ss:$48 sps:$4 sm:$0xff]  }
 0x2f6   :  { %v2598_v6 = vpack.c.bf16 %v2466_v4, %v2462_v3  ;;  %v6278_v3 = vld [vmem:[#allocation9 + $0x55c] ss:$12 sps:$4 sm:$0xff]  }
 0x2f7   :  { %v6281_v4 = vld [vmem:[#allocation6 + $0x84] ss:$48 sps:$4 sm:$0xff]  }
 0x2f8   :  { %3145 = vmatprep.mubr.bf16.mxu0 %v2598_v6  ;;  %3231 = vmatprep.mubr.bf16.mxu1 %v2598_v6  ;;  %v6279_v6 = vld [vmem:[#allocation6 + $0x80] ss:$48 sps:$4 sm:$0xff]  }
 0x2f9   :  { %3146 = vmatmul.mubr.bf16.vlgmr.msra.gmra.mrb[4].mxu0 %v2597_v5  ;;  %3232 = vmatmul.mubr.bf16.vlgmr.msra.gmra.mrb[16].mxu1 %v2597_v5  ;;  %v6276_v5 = vld [vmem:[#allocation9 + $0x558] ss:$12 sps:$4 sm:$0xff]  }
 0x2fa   :  { %3157 = vmatpush1.bf16.msra.mxu0 %v6230_v9  ;;  %5604 = vmatpush3.bf16.msra.mxu1 %v6234_v10  ;;  %v6284_v9 = vld [vmem:[#allocation9 + $0x574] ss:$12 sps:$4 sm:$0xff]   ;;  %v6287_v10 = vld [vmem:[#allocation6 + $0xe4] ss:$48 sps:$4 sm:$0xff]  }
 0x2fb   :  { %3158 = vmatprep.subr.bf16.mxu0 %v6237_v11  ;;  %5605 = vmatprep.subr.bf16.mxu1 %v6238_v12  ;;  %v6282_v11 = vld [vmem:[#allocation9 + $0x570] ss:$12 sps:$4 sm:$0xff]   ;;  %v6285_v12 = vld [vmem:[#allocation6 + $0xe0] ss:$48 sps:$4 sm:$0xff]  }
 0x2fe   :  { %3159 = vmatpush1.bf16.msra.mxu0 %v6235_v13  ;;  %5606 = vmatpush3.bf16.msra.mxu1 %v6239_v14  ;;  %v6290_v13 = vld [vmem:[#allocation9 + $0x58c] ss:$12 sps:$4 sm:$0xff]  }
 0x2ff   :  { %3160 = vmatprep.subr.bf16.mxu0 %v6242_v15  ;;  %5607 = vmatprep.subr.bf16.mxu1 %v6243_v17  ;;  %v6293_v14 = vld [vmem:[#allocation6 + $0x144] ss:$48 sps:$4 sm:$0xff]   ;;  %v6291_v17 = vld [vmem:[#allocation6 + $0x140] ss:$48 sps:$4 sm:$0xff]  }
 0x300   :  { %v6288_v15 = vld [vmem:[#allocation9 + $0x588] ss:$12 sps:$4 sm:$0xff]  }
 0x302   :  { %3161 = vmatpush1.bf16.msra.mxu0 %v6240_v18  ;;  %5608 = vmatpush3.bf16.msra.mxu1 %v6244_v19  ;;  %v6296_v18 = vld [vmem:[#allocation9 + $0x5a4] ss:$12 sps:$4 sm:$0xff]   ;;  %v6299_v19 = vld [vmem:[#allocation6 + $0x1a4] ss:$48 sps:$4 sm:$0xff]  }
 0x303   :  { %3162 = vmatprep.subr.bf16.mxu0 %v6247_v20  ;;  %5609 = vmatprep.subr.bf16.mxu1 %v6248_v21  ;;  %v6294_v20 = vld [vmem:[#allocation9 + $0x5a0] ss:$12 sps:$4 sm:$0xff]   ;;  %v6297_v21 = vld [vmem:[#allocation6 + $0x1a0] ss:$48 sps:$4 sm:$0xff]  }
 0x306   :  { %3163 = vmatpush1.bf16.msra.mxu0 %v6245_v22  ;;  %5610 = vmatpush3.bf16.msra.mxu1 %v6249_v23  ;;  %v6302_v22 = vld [vmem:[#allocation9 + $0x5bc] ss:$12 sps:$4 sm:$0xff]  }
 0x307   :  { %3164 = vmatprep.subr.bf16.mxu0 %v6252_v24  ;;  %5611 = vmatprep.subr.bf16.mxu1 %v6253_v25  ;;  %v6305_v23 = vld [vmem:[#allocation6 + $0x204] ss:$48 sps:$4 sm:$0xff]   ;;  %v6303_v25 = vld [vmem:[#allocation6 + $0x200] ss:$48 sps:$4 sm:$0xff]  }
 0x308   :  { %v6300_v24 = vld [vmem:[#allocation9 + $0x5b8] ss:$12 sps:$4 sm:$0xff]  }
 0x30a   :  { %3165 = vmatpush1.bf16.msra.mxu0 %v6250_v26  ;;  %5612 = vmatpush3.bf16.msra.mxu1 %v6254_v27  ;;  %v6308_v26 = vld [vmem:[#allocation9 + $0x5d4] ss:$12 sps:$4 sm:$0xff]   ;;  %v6311_v27 = vld [vmem:[#allocation6 + $0x264] ss:$48 sps:$4 sm:$0xff]  }
 0x30b   :  { %3166 = vmatprep.subr.bf16.mxu0 %v6257_v28  ;;  %5613 = vmatprep.subr.bf16.mxu1 %v6258_v29  ;;  %v6306_v28 = vld [vmem:[#allocation9 + $0x5d0] ss:$12 sps:$4 sm:$0xff]   ;;  %v6309_v29 = vld [vmem:[#allocation6 + $0x260] ss:$48 sps:$4 sm:$0xff]  }
 0x30e   :  { %3167 = vmatpush1.bf16.msra.mxu0 %v6255_v30  ;;  %5614 = vmatpush3.bf16.msra.mxu1 %v6259_v7  ;;  %v2452_v39 = vpop.f32.mrb[8].mxu0  ;;  %v6314_v30 = vld [vmem:[#allocation9 + $0x5ec] ss:$12 sps:$4 sm:$0xff]  }
 0x30f   :  { %v5681_v42 = vadd.f32 %v2452_v39, %v1800_v31  ;;  %v2454_v43 = vpop.f32.mrb[9].mxu0  ;;  %3168 = vmatprep.subr.bf16.mxu0 %v6262_v32  ;;  %5615 = vmatprep.subr.bf16.mxu1 %v6263_v34  ;;  %v6317_v7 = vld [vmem:[#allocation6 + $0x2c4] ss:$48 sps:$4 sm:$0xff]   ;;  %v6315_v32 = vld [vmem:[#allocation6 + $0x2c0] ss:$48 sps:$4 sm:$0xff]  }
 0x310   :  { %v5682_v47 = vadd.f32 %v2454_v43, %v1804_v38  ;;  %v2456_v48 = vpop.f32.mrb[10].mxu0  ;;  %v6320_v34 = vld [vmem:[#allocation6 + $0x324] ss:$48 sps:$4 sm:$0xff]  }
 0x311   :  { %v5683_v49 = vadd.f32 %v2456_v48, %v1800_v31  ;;  %v2458_v52 = vpop.f32.mrb[11].mxu0  ;;  %v2463_v57 = vmax.f32 %v5681_v42, 0.0  ;;  %v6312_v31 = vld [vmem:[#allocation9 + $0x5e8] ss:$12 sps:$4 sm:$0xff]  }
 0x312   :  { %v5684_v55 = vadd.f32 %v2458_v52, %v1804_v38  ;;  %3169 = vmatpush1.bf16.msra.mxu0 %v6260_v40  ;;  %5616 = vmatpush3.bf16.msra.mxu1 %v6264_v41  ;;  %v2464_v61 = vmax.f32 %v5682_v47, 0.0  ;;  %v6318_v38 = vld [vmem:[#allocation6 + $0x320] ss:$48 sps:$4 sm:$0xff]   ;;  %v6323_v39 = vld [vmem:[#allocation6 + $0x384] ss:$48 sps:$4 sm:$0xff]  }
 0x313   :  { %v2467_v58 = vmax.f32 %v5683_v49, 0.0  ;;  %3170 = vmatprep.subr.bf16.mxu0 %v6267_v45  ;;  %5617 = vmatprep.subr.bf16.mxu1 %v6268_v46  ;;  %v6321_v40 = vld [vmem:[#allocation6 + $0x380] ss:$48 sps:$4 sm:$0xff]   ;;  %v6326_v41 = vld [vmem:[#allocation6 + $0x3e4] ss:$48 sps:$4 sm:$0xff]  }
 0x314   :  { %v2468_v62 = vmax.f32 %v5684_v55, 0.0  ;;  %v6324_v42 = vld [vmem:[#allocation6 + $0x3e0] ss:$48 sps:$4 sm:$0xff]   ;;  %v6329_v43 = vld [vmem:[#allocation6 + $0x444] ss:$48 sps:$4 sm:$0xff]  }
 0x315   :  { %v6864_v63 = vpack.c.bf16 %v2467_v58, %v2463_v57  ;;  %v6327_v45 = vld [vmem:[#allocation6 + $0x440] ss:$48 sps:$4 sm:$0xff]   ;;  %v6332_v46 = vld [vmem:[#allocation6 + $0x4a4] ss:$48 sps:$4 sm:$0xff]  }
 0x316   :  { %v2600_v0 = vpack.c.bf16 %v2468_v62, %v2464_v61  ;;  %3171 = vmatpush1.bf16.msra.mxu0 %v6265_v56  ;;  %5618 = vmatpush3.bf16.msra.mxu1 %v6269_v54  ;;  %v6330_v47 = vld [vmem:[#allocation6 + $0x4a0] ss:$48 sps:$4 sm:$0xff]   ;;  %v6335_v48 = vld [vmem:[#allocation6 + $0x504] ss:$48 sps:$4 sm:$0xff]  }
 0x317   :  { %3172 = vmatprep.subr.bf16.mxu0 %v6272_v59  ;;  %3897 = vmatprep.subr.bf16.mxu1 %v6275_v60  ;;  %v6333_v49 = vld [vmem:[#allocation6 + $0x500] ss:$48 sps:$4 sm:$0xff]   ;;  %v6338_v52 = vld [vmem:[#allocation6 + $0x564] ss:$48 sps:$4 sm:$0xff]  }
 0x318   :  { %3188 = vmatprep.mubr.bf16.mxu0 %v2600_v0  ;;  %3272 = vmatprep.mubr.bf16.mxu1 %v2600_v0  ;;  %v6336_v55 = vld [vmem:[#allocation6 + $0x560] ss:$48 sps:$4 sm:$0xff]   ;;  %v6341_v56 = vld [vmem:[#allocation6 + $0x5c4] ss:$48 sps:$4 sm:$0xff]  }
 0x319   :  { %3273 = vmatmul.mubr.bf16.vlgmr.msra.gmra.mrb[20].mxu1 %v6864_v63  ;;  %v6339_v54 = vld [vmem:[#allocation6 + $0x5c0] ss:$48 sps:$4 sm:$0xff]   ;;  %v6344_v57 = vld [vmem:[#allocation6 + $0x624] ss:$48 sps:$4 sm:$0xff]  }
 0x31a   :  { %3173 = vmatpush1.bf16.msra.mxu0 %v6270_v1  ;;  %3898 = vmatpush1.bf16.msra.mxu1 %v6273_v2  ;;  %v6342_v58 = vld [vmem:[#allocation6 + $0x620] ss:$48 sps:$4 sm:$0xff]   ;;  %v6347_v59 = vld [vmem:[#allocation6 + $0x684] ss:$48 sps:$4 sm:$0xff]  }
 0x31b   :  { %3174 = vmatprep.subr.bf16.mxu0 %v6278_v3  ;;  %3899 = vmatprep.subr.bf16.mxu1 %v6281_v4  ;;  %v6345_v60 = vld [vmem:[#allocation6 + $0x680] ss:$48 sps:$4 sm:$0xff]   ;;  %v6350_v61 = vld [vmem:[#allocation6 + $0x6e4] ss:$48 sps:$4 sm:$0xff]  }
 0x31c   :  { %3929 = vmatprep.mubr.bf16.mxu1 %v6812_v50  ;;  %v6348_v62 = vld [vmem:[#allocation6 + $0x6e0] ss:$48 sps:$4 sm:$0xff]   ;;  %v6356_v1 = vld [vmem:[#allocation6 + $0x7a4] ss:$48 sps:$4 sm:$0xff]  }
 0x31d   :  { %v6351_v0 = vld [vmem:[#allocation6 + $0x740] ss:$48 sps:$4 sm:$0xff]   ;;  %v6359_v3 = vld [vmem:[#allocation6 + $0x804] ss:$48 sps:$4 sm:$0xff]  }
 0x31e   :  { %3175 = vmatpush1.bf16.msra.mxu0 %v6276_v5  ;;  %3900 = vmatpush1.bf16.msra.mxu1 %v6279_v6  ;;  %v6354_v2 = vld [vmem:[#allocation6 + $0x7a0] ss:$48 sps:$4 sm:$0xff]   ;;  %v6362_v5 = vld [vmem:[#allocation6 + $0x864] ss:$48 sps:$4 sm:$0xff]  }
 0x31f   :  { %3176 = vmatprep.subr.bf16.mxu0 %v6284_v9  ;;  %3901 = vmatprep.subr.bf16.mxu1 %v6287_v10  ;;  %v6357_v4 = vld [vmem:[#allocation6 + $0x800] ss:$48 sps:$4 sm:$0xff]   ;;  %v6365_v9 = vld [vmem:[#allocation6 + $0x8c4] ss:$48 sps:$4 sm:$0xff]  }
 0x320   :  { %v6360_v6 = vld [vmem:[#allocation6 + $0x860] ss:$48 sps:$4 sm:$0xff]  }
 0x321   :  { %v6363_v10 = vld [vmem:[#allocation6 + $0x8c0] ss:$48 sps:$4 sm:$0xff]  }
 0x322   :  { %3177 = vmatpush1.bf16.msra.mxu0 %v6282_v11  ;;  %3902 = vmatpush1.bf16.msra.mxu1 %v6285_v12  ;;  %v6368_v11 = vld [vmem:[#allocation6 + $0x2c] ss:$48 sps:$4 sm:$0xff]  }
 0x323   :  { %3178 = vmatprep.subr.bf16.mxu0 %v6290_v13  ;;  %3903 = vmatprep.subr.bf16.mxu1 %v6293_v14  ;;  %v6438_v12 = vld [vmem:[#allocation9 + $0x600] ss:$12 sps:$4 sm:$0xff]   ;;  %v6440_v13 = vld [vmem:[#allocation9 + $0x604] ss:$12 sps:$4 sm:$0xff]   ;;  %v6443_v14 = vld [vmem:[#allocation9 + $0x61c] ss:$12 sps:$4 sm:$0xff]  }
 0x326   :  { %3179 = vmatpush1.bf16.msra.mxu0 %v6288_v15  ;;  %3904 = vmatpush1.bf16.msra.mxu1 %v6291_v17  ;;  %v6366_v15 = vld [vmem:[#allocation6 + $0x28] ss:$48 sps:$4 sm:$0xff]   ;;  %v6371_v17 = vld [vmem:[#allocation6 + $0x8c] ss:$48 sps:$4 sm:$0xff]  }
 0x327   :  { %3180 = vmatprep.subr.bf16.mxu0 %v6296_v18  ;;  %3905 = vmatprep.subr.bf16.mxu1 %v6299_v19  ;;  %v6441_v18 = vld [vmem:[#allocation9 + $0x618] ss:$12 sps:$4 sm:$0xff]   ;;  %v6446_v19 = vld [vmem:[#allocation9 + $0x634] ss:$12 sps:$4 sm:$0xff]  }
 0x32a   :  { %3181 = vmatpush1.bf16.msra.mxu0 %v6294_v20  ;;  %3906 = vmatpush1.bf16.msra.mxu1 %v6297_v21  ;;  %v6369_v20 = vld [vmem:[#allocation6 + $0x88] ss:$48 sps:$4 sm:$0xff]   ;;  %v6374_v21 = vld [vmem:[#allocation6 + $0xec] ss:$48 sps:$4 sm:$0xff]  }
 0x32b   :  { %3182 = vmatprep.subr.bf16.mxu0 %v6302_v22  ;;  %3907 = vmatprep.subr.bf16.mxu1 %v6305_v23  ;;  %v6444_v22 = vld [vmem:[#allocation9 + $0x630] ss:$12 sps:$4 sm:$0xff]   ;;  %v6449_v23 = vld [vmem:[#allocation9 + $0x64c] ss:$12 sps:$4 sm:$0xff]  }
 0x32e   :  { %3183 = vmatpush1.bf16.msra.mxu0 %v6300_v24  ;;  %3908 = vmatpush1.bf16.msra.mxu1 %v6303_v25  ;;  %v6372_v24 = vld [vmem:[#allocation6 + $0xe8] ss:$48 sps:$4 sm:$0xff]   ;;  %v6377_v25 = vld [vmem:[#allocation6 + $0x14c] ss:$48 sps:$4 sm:$0xff]  }
 0x32f   :  { %3184 = vmatprep.subr.bf16.mxu0 %v6308_v26  ;;  %3909 = vmatprep.subr.bf16.mxu1 %v6311_v27  ;;  %v6447_v26 = vld [vmem:[#allocation9 + $0x648] ss:$12 sps:$4 sm:$0xff]   ;;  %v6452_v27 = vld [vmem:[#allocation9 + $0x664] ss:$12 sps:$4 sm:$0xff]  }
 0x332   :  { %3185 = vmatpush1.bf16.msra.mxu0 %v6306_v28  ;;  %3910 = vmatpush1.bf16.msra.mxu1 %v6309_v29  ;;  %v6375_v28 = vld [vmem:[#allocation6 + $0x148] ss:$48 sps:$4 sm:$0xff]   ;;  %v6380_v29 = vld [vmem:[#allocation6 + $0x1ac] ss:$48 sps:$4 sm:$0xff]  }
 0x333   :  { %3186 = vmatprep.subr.bf16.mxu0 %v6314_v30  ;;  %3911 = vmatprep.subr.bf16.mxu1 %v6317_v7  ;;  %v6455_v30 = vld [vmem:[#allocation9 + $0x67c] ss:$12 sps:$4 sm:$0xff]  }
 0x334   :  { %v6378_v7 = vld [vmem:[#allocation6 + $0x1a8] ss:$48 sps:$4 sm:$0xff]  }
 0x336   :  { %3187 = vmatpush1.bf16.msra.mxu0 %v6312_v31  ;;  %3912 = vmatpush1.bf16.msra.mxu1 %v6315_v32  ;;  %v6383_v31 = vld [vmem:[#allocation6 + $0x20c] ss:$48 sps:$4 sm:$0xff]   ;;  %v6453_v32 = vld [vmem:[#allocation9 + $0x678] ss:$12 sps:$4 sm:$0xff]  }
 0x337   :  { %3913 = vmatprep.subr.bf16.mxu1 %v6320_v34  ;;  %4721 = vmatprep.subr.bf16.mxu0 %v6440_v13  ;;  %v6458_v34 = vld [vmem:[#allocation9 + $0x694] ss:$12 sps:$4 sm:$0xff]   ;;  %v6408_v13 = vld [vmem:[#allocation6 + $0x568] ss:$48 sps:$4 sm:$0xff]  }
 0x339   :  { %3189 = vmatmul.mubr.bf16.vlgmr.msra.gmra.mrb[4].mxu0 %v6864_v63  ;;  %v6353_v63 = vld [vmem:[#allocation6 + $0x744] ss:$48 sps:$4 sm:$0xff]  }
 0x33a   :  { %3914 = vmatpush1.bf16.msra.mxu1 %v6318_v38  ;;  %4722 = vmatpush1.bf16.msra.mxu0 %v6438_v12  ;;  %v6381_v38 = vld [vmem:[#allocation6 + $0x208] ss:$48 sps:$4 sm:$0xff]   ;;  %v6410_v12 = vld [vmem:[#allocation6 + $0x56c] ss:$48 sps:$4 sm:$0xff]  }
 0x33b   :  { %3915 = vmatprep.subr.bf16.mxu1 %v6323_v39  ;;  %4723 = vmatprep.subr.bf16.mxu0 %v6443_v14  ;;  %v6386_v39 = vld [vmem:[#allocation6 + $0x26c] ss:$48 sps:$4 sm:$0xff]  }
 0x33c   :  { %v6413_v14 = vld [vmem:[#allocation6 + $0x5cc] ss:$48 sps:$4 sm:$0xff]  }
 0x33e   :  { %3916 = vmatpush1.bf16.msra.mxu1 %v6321_v40  ;;  %4724 = vmatpush1.bf16.msra.mxu0 %v6441_v18  ;;  %v6456_v40 = vld [vmem:[#allocation9 + $0x690] ss:$12 sps:$4 sm:$0xff]  }
 0x33f   :  { %3917 = vmatprep.subr.bf16.mxu1 %v6326_v41  ;;  %4725 = vmatprep.subr.bf16.mxu0 %v6446_v19  ;;  %v6461_v41 = vld [vmem:[#allocation9 + $0x6ac] ss:$12 sps:$4 sm:$0xff]   ;;  %v6419_v19 = vld [vmem:[#allocation6 + $0x68c] ss:$48 sps:$4 sm:$0xff]  }
 0x340   :  { %v6414_v18 = vld [vmem:[#allocation6 + $0x628] ss:$48 sps:$4 sm:$0xff]  }
 0x342   :  { %3918 = vmatpush1.bf16.msra.mxu1 %v6324_v42  ;;  %4726 = vmatpush1.bf16.msra.mxu0 %v6444_v22  ;;  %v6384_v42 = vld [vmem:[#allocation6 + $0x268] ss:$48 sps:$4 sm:$0xff]  }
 0x343   :  { %3919 = vmatprep.subr.bf16.mxu1 %v6329_v43  ;;  %4727 = vmatprep.subr.bf16.mxu0 %v6449_v23  ;;  %v6389_v43 = vld [vmem:[#allocation6 + $0x2cc] ss:$48 sps:$4 sm:$0xff]   ;;  %v6420_v22 = vld [vmem:[#allocation6 + $0x6e8] ss:$48 sps:$4 sm:$0xff]  }
 0x344   :  { %v6425_v23 = vld [vmem:[#allocation6 + $0x74c] ss:$48 sps:$4 sm:$0xff]  }
 0x346   :  { %3920 = vmatpush1.bf16.msra.mxu1 %v6327_v45  ;;  %4728 = vmatpush1.bf16.msra.mxu0 %v6447_v26  ;;  %v6459_v45 = vld [vmem:[#allocation9 + $0x6a8] ss:$12 sps:$4 sm:$0xff]   ;;  %v6426_v26 = vld [vmem:[#allocation6 + $0x7a8] ss:$48 sps:$4 sm:$0xff]  }
 0x347   :  { %3921 = vmatprep.subr.bf16.mxu1 %v6332_v46  ;;  %4729 = vmatprep.subr.bf16.mxu0 %v6452_v27  ;;  %v6464_v46 = vld [vmem:[#allocation9 + $0x6c4] ss:$12 sps:$4 sm:$0xff]  }
 0x348   :  { %v6431_v27 = vld [vmem:[#allocation6 + $0x80c] ss:$48 sps:$4 sm:$0xff]  }
 0x34a   :  { %3922 = vmatpush1.bf16.msra.mxu1 %v6330_v47  ;;  %v6387_v47 = vld [vmem:[#allocation6 + $0x2c8] ss:$48 sps:$4 sm:$0xff]  }
 0x34b   :  { %3923 = vmatprep.subr.bf16.mxu1 %v6335_v48  ;;  %v6392_v48 = vld [vmem:[#allocation6 + $0x32c] ss:$48 sps:$4 sm:$0xff]  }
 0x34e   :  { %3924 = vmatpush1.bf16.msra.mxu1 %v6333_v49  ;;  %v6462_v49 = vld [vmem:[#allocation9 + $0x6c0] ss:$12 sps:$4 sm:$0xff]  }
 0x34f   :  { %3925 = vmatprep.subr.bf16.mxu1 %v6338_v52  ;;  %v6469_v52 = vld [vmem:[#allocation9 + $0x6dc] ss:$12 sps:$4 sm:$0xff]  }
 0x352   :  { %3926 = vmatpush1.bf16.msra.mxu1 %v6336_v55  ;;  %v6390_v55 = vld [vmem:[#allocation6 + $0x328] ss:$48 sps:$4 sm:$0xff]  }
 0x353   :  { %3927 = vmatprep.subr.bf16.mxu1 %v6341_v56  ;;  %v6395_v56 = vld [vmem:[#allocation6 + $0x38c] ss:$48 sps:$4 sm:$0xff]  }
 0x356   :  { %3928 = vmatpush1.bf16.msra.mxu1 %v6339_v54  ;;  %v6467_v54 = vld [vmem:[#allocation9 + $0x6d8] ss:$12 sps:$4 sm:$0xff]  }
 0x357   :  { %3940 = vmatprep.subr.bf16.mxu1 %v6344_v57  ;;  %v6474_v57 = vld [vmem:[#allocation9 + $0x6f4] ss:$12 sps:$4 sm:$0xff]  }
 0x359   :  { %3930 = vmatmul.mubr.bf16.vlgmr.msra.gmra.mrb[24].mxu1 %v6816_v8 }
 0x35a   :  { %3941 = vmatpush1.bf16.msra.mxu1 %v6342_v58  ;;  %3972 = vmatprep.mubr.bf16.mxu1 %v6717_v16  ;;  %v6393_v58 = vld [vmem:[#allocation6 + $0x388] ss:$48 sps:$4 sm:$0xff]  }
 0x35b   :  { %3942 = vmatprep.subr.bf16.mxu1 %v6347_v59  ;;  %v6398_v59 = vld [vmem:[#allocation6 + $0x3ec] ss:$48 sps:$4 sm:$0xff]  }
 0x35e   :  { %3943 = vmatpush1.bf16.msra.mxu1 %v6345_v60  ;;  %v6472_v60 = vld [vmem:[#allocation9 + $0x6f0] ss:$12 sps:$4 sm:$0xff]  }
 0x35f   :  { %3944 = vmatprep.subr.bf16.mxu1 %v6350_v61  ;;  %v6479_v61 = vld [vmem:[#allocation9 + $0x70c] ss:$12 sps:$4 sm:$0xff]  }
 0x362   :  { %3945 = vmatpush1.bf16.msra.mxu1 %v6348_v62  ;;  %v6396_v62 = vld [vmem:[#allocation6 + $0x3e8] ss:$48 sps:$4 sm:$0xff]  }
 0x363   :  { %3946 = vmatprep.subr.bf16.mxu1 %v6353_v63  ;;  %v6401_v63 = vld [vmem:[#allocation6 + $0x44c] ss:$48 sps:$4 sm:$0xff]  }
 0x366   :  { %3947 = vmatpush1.bf16.msra.mxu1 %v6351_v0  ;;  %v6477_v0 = vld [vmem:[#allocation9 + $0x708] ss:$12 sps:$4 sm:$0xff]  }
 0x367   :  { %3948 = vmatprep.subr.bf16.mxu1 %v6356_v1  ;;  %v6484_v1 = vld [vmem:[#allocation9 + $0x724] ss:$12 sps:$4 sm:$0xff]  }
 0x36a   :  { %3949 = vmatpush1.bf16.msra.mxu1 %v6354_v2  ;;  %v6399_v2 = vld [vmem:[#allocation6 + $0x448] ss:$48 sps:$4 sm:$0xff]  }
 0x36b   :  { %3950 = vmatprep.subr.bf16.mxu1 %v6359_v3  ;;  %v6404_v3 = vld [vmem:[#allocation6 + $0x4ac] ss:$48 sps:$4 sm:$0xff]  }
 0x36e   :  { %3951 = vmatpush1.bf16.msra.mxu1 %v6357_v4  ;;  %v6482_v4 = vld [vmem:[#allocation9 + $0x720] ss:$12 sps:$4 sm:$0xff]  }
 0x36f   :  { %3952 = vmatprep.subr.bf16.mxu1 %v6362_v5  ;;  %v6489_v5 = vld [vmem:[#allocation9 + $0x73c] ss:$12 sps:$4 sm:$0xff]  }
 0x372   :  { %3953 = vmatpush1.bf16.msra.mxu1 %v6360_v6  ;;  %v6402_v6 = vld [vmem:[#allocation6 + $0x4a8] ss:$48 sps:$4 sm:$0xff]  }
 0x373   :  { %3954 = vmatprep.subr.bf16.mxu1 %v6365_v9  ;;  %v6407_v9 = vld [vmem:[#allocation6 + $0x50c] ss:$48 sps:$4 sm:$0xff]  }
 0x376   :  { %3955 = vmatpush1.bf16.msra.mxu1 %v6363_v10  ;;  %v6487_v10 = vld [vmem:[#allocation9 + $0x738] ss:$12 sps:$4 sm:$0xff]  }
 0x377   :  { %3983 = vmatprep.subr.bf16.mxu1 %v6368_v11  ;;  %v6405_v11 = vld [vmem:[#allocation6 + $0x508] ss:$48 sps:$4 sm:$0xff]  }
 0x379   :  { %3973 = vmatmul.mubr.bf16.vlgmr.msra.gmra.mrb[24].mxu1 %v6822_v44 }
 0x37a   :  { %3984 = vmatpush1.bf16.msra.mxu1 %v6366_v15  ;;  %4015 = vmatprep.mubr.bf16.mxu1 %v6812_v50  ;;  %v6450_v50 = vld [vmem:[#allocation9 + $0x660] ss:$12 sps:$4 sm:$0xff]  }
 0x37b   :  { %3985 = vmatprep.subr.bf16.mxu1 %v6371_v17  ;;  %4730 = vmatpush1.bf16.msra.mxu0 %v6450_v50  ;;  %v6411_v15 = vld [vmem:[#allocation6 + $0x5c8] ss:$48 sps:$4 sm:$0xff]   ;;  %v6416_v17 = vld [vmem:[#allocation6 + $0x62c] ss:$48 sps:$4 sm:$0xff]  }
 0x37c   :  { %4731 = vmatprep.subr.bf16.mxu0 %v6455_v30  ;;  %v6494_v50 = vld [vmem:[#allocation9 + $0x754] ss:$12 sps:$4 sm:$0xff]  }
 0x37e   :  { %3986 = vmatpush1.bf16.msra.mxu1 %v6369_v20  ;;  %v6417_v20 = vld [vmem:[#allocation6 + $0x688] ss:$48 sps:$4 sm:$0xff]  }
 0x37f   :  { %3987 = vmatprep.subr.bf16.mxu1 %v6374_v21  ;;  %4732 = vmatpush1.bf16.msra.mxu0 %v6453_v32  ;;  %v6422_v21 = vld [vmem:[#allocation6 + $0x6ec] ss:$48 sps:$4 sm:$0xff]  }
 0x380   :  { %4733 = vmatprep.subr.bf16.mxu0 %v6458_v34  ;;  %v6492_v32 = vld [vmem:[#allocation9 + $0x750] ss:$12 sps:$4 sm:$0xff]  }
 0x382   :  { %3988 = vmatpush1.bf16.msra.mxu1 %v6372_v24  ;;  %v6423_v24 = vld [vmem:[#allocation6 + $0x748] ss:$48 sps:$4 sm:$0xff]  }
 0x383   :  { %3989 = vmatprep.subr.bf16.mxu1 %v6377_v25  ;;  %4734 = vmatpush1.bf16.msra.mxu0 %v6456_v40  ;;  %v6428_v25 = vld [vmem:[#allocation6 + $0x7ac] ss:$48 sps:$4 sm:$0xff]   ;;  %v6499_v40 = vld [vmem:[#allocation9 + $0x76c] ss:$12 sps:$4 sm:$0xff]  }
 0x384   :  { %4735 = vmatprep.subr.bf16.mxu0 %v6461_v41  ;;  %v6435_v41 = vld [vmem:[#allocation6 + $0x8c8] ss:$48 sps:$4 sm:$0xff]  }
 0x386   :  { %3990 = vmatpush1.bf16.msra.mxu1 %v6375_v28  ;;  %v6434_v28 = vld [vmem:[#allocation6 + $0x86c] ss:$48 sps:$4 sm:$0xff]  }
 0x387   :  { %3991 = vmatprep.subr.bf16.mxu1 %v6380_v29  ;;  %4736 = vmatpush1.bf16.msra.mxu0 %v6459_v45  ;;  %v6466_v45 = vld [vmem:[#allocation9 + $0x608] ss:$12 sps:$4 sm:$0xff]  }
 0x388   :  { %4737 = vmatprep.subr.bf16.mxu0 %v6464_v46  ;;  %v6470_v46 = vld [vmem:[#allocation9 + $0x6e0] ss:$12 sps:$4 sm:$0xff]  }
 0x38a   :  { %3992 = vmatpush1.bf16.msra.mxu1 %v6378_v7 }
 0x38b   :  { %3993 = vmatprep.subr.bf16.mxu1 %v6383_v31  ;;  %4738 = vmatpush1.bf16.msra.mxu0 %v6462_v49  ;;  %v6432_v31 = vld [vmem:[#allocation6 + $0x868] ss:$48 sps:$4 sm:$0xff]   ;;  %v6475_v49 = vld [vmem:[#allocation9 + $0x6f8] ss:$12 sps:$4 sm:$0xff]  }
 0x38c   :  { %4739 = vmatprep.subr.bf16.mxu0 %v6469_v52  ;;  %v6476_v52 = vld [vmem:[#allocation9 + $0x638] ss:$12 sps:$4 sm:$0xff]  }
 0x38e   :  { %3994 = vmatpush1.bf16.msra.mxu1 %v6381_v38  ;;  %v6437_v38 = vld [vmem:[#allocation6 + $0x8cc] ss:$48 sps:$4 sm:$0xff]  }
 0x38f   :  { %3995 = vmatprep.subr.bf16.mxu1 %v6386_v39  ;;  %4740 = vmatpush1.bf16.msra.mxu0 %v6467_v54  ;;  %v6485_v54 = vld [vmem:[#allocation9 + $0x728] ss:$12 sps:$4 sm:$0xff]  }
 0x390   :  { %4741 = vmatprep.subr.bf16.mxu0 %v6474_v57  ;;  %v6486_v57 = vld [vmem:[#allocation9 + $0x668] ss:$12 sps:$4 sm:$0xff]  }
 0x392   :  { %3996 = vmatpush1.bf16.msra.mxu1 %v6384_v42  ;;  %v6497_v42 = vld [vmem:[#allocation9 + $0x768] ss:$12 sps:$4 sm:$0xff]  }
 0x393   :  { %3997 = vmatprep.subr.bf16.mxu1 %v6389_v43  ;;  %4742 = vmatpush1.bf16.msra.mxu0 %v6472_v60  ;;  %v6465_v43 = vld [vmem:[#allocation9 + $0x6c8] ss:$12 sps:$4 sm:$0xff]  }
 0x394   :  { %4743 = vmatprep.subr.bf16.mxu0 %v6479_v61 }
 0x396   :  { %3998 = vmatpush1.bf16.msra.mxu1 %v6387_v47  ;;  %v6504_v47 = vld [vmem:[#allocation9 + $0x784] ss:$12 sps:$4 sm:$0xff]  }
 0x397   :  { %3999 = vmatprep.subr.bf16.mxu1 %v6392_v48  ;;  %4744 = vmatpush1.bf16.msra.mxu0 %v6477_v0  ;;  %v6471_v48 = vld [vmem:[#allocation9 + $0x620] ss:$12 sps:$4 sm:$0xff]   ;;  %v6496_v0 = vld [vmem:[#allocation9 + $0x698] ss:$12 sps:$4 sm:$0xff]  }
 0x398   :  { %4745 = vmatprep.subr.bf16.mxu0 %v6484_v1 }
 0x39a   :  { %4000 = vmatpush1.bf16.msra.mxu1 %v6390_v55  ;;  %v6480_v55 = vld [vmem:[#allocation9 + $0x710] ss:$12 sps:$4 sm:$0xff]  }
 0x39b   :  { %4001 = vmatprep.subr.bf16.mxu1 %v6395_v56  ;;  %4746 = vmatpush1.bf16.msra.mxu0 %v6482_v4  ;;  %v6481_v56 = vld [vmem:[#allocation9 + $0x650] ss:$12 sps:$4 sm:$0xff]  }
 0x39c   :  { %4747 = vmatprep.subr.bf16.mxu0 %v6489_v5 }
 0x39e   :  { %4002 = vmatpush1.bf16.msra.mxu1 %v6393_v58  ;;  %v6490_v58 = vld [vmem:[#allocation9 + $0x740] ss:$12 sps:$4 sm:$0xff]  }
 0x39f   :  { %4003 = vmatprep.subr.bf16.mxu1 %v6398_v59  ;;  %4748 = vmatpush1.bf16.msra.mxu0 %v6487_v10  ;;  %v6491_v59 = vld [vmem:[#allocation9 + $0x680] ss:$12 sps:$4 sm:$0xff]  }
 0x3a0   :  { %4749 = vmatprep.subr.bf16.mxu0 %v6494_v50  ;;  %v6505_v50 = vld [vmem:[#allocation9 + $0x798] ss:$12 sps:$4 sm:$0xff]  }
 0x3a2   :  { %4004 = vmatpush1.bf16.msra.mxu1 %v6396_v62 }
 0x3a3   :  { %4005 = vmatprep.subr.bf16.mxu1 %v6401_v63  ;;  %4750 = vmatpush1.bf16.msra.mxu0 %v6492_v32  ;;  %v6508_v32 = vld [vmem:[#allocation9 + $0x7b0] ss:$12 sps:$4 sm:$0xff]  }
 0x3a4   :  { %4751 = vmatprep.subr.bf16.mxu0 %v6499_v40  ;;  %v6511_v40 = vld [vmem:[#allocation9 + $0x7c8] ss:$12 sps:$4 sm:$0xff]  }
 0x3a6   :  { %4006 = vmatpush1.bf16.msra.mxu1 %v6399_v2  ;;  %v6500_v2 = vld [vmem:[#allocation9 + $0x770] ss:$12 sps:$4 sm:$0xff]  }
 0x3a7   :  { %4007 = vmatprep.subr.bf16.mxu1 %v6404_v3  ;;  %4752 = vmatpush1.bf16.msra.mxu0 %v6497_v42  ;;  %v6516_v42 = vld [vmem:[#allocation9 + $0x7e4] ss:$12 sps:$4 sm:$0xff]  }
 0x3a8   :  { %4764 = vmatprep.subr.bf16.mxu0 %v6504_v47  ;;  %v6519_v47 = vld [vmem:[#allocation9 + $0x7fc] ss:$12 sps:$4 sm:$0xff]  }
 0x3aa   :  { %4008 = vmatpush1.bf16.msra.mxu1 %v6402_v6 }
 0x3ab   :  { %4009 = vmatprep.subr.bf16.mxu1 %v6407_v9  ;;  %v6501_v9 = vld [vmem:[#allocation9 + $0x6b0] ss:$12 sps:$4 sm:$0xff]  }
 0x3ae   :  { %4010 = vmatpush1.bf16.msra.mxu1 %v6405_v11  ;;  %v6529_v11 = vld [vmem:[#allocation9 + $0x848] ss:$12 sps:$4 sm:$0xff]  }
 0x3af   :  { %4011 = vmatprep.subr.bf16.mxu1 %v6410_v12  ;;  %v6882_v12 = vld [vmem:[#allocation8 + $0x8] sm:$0xf] }
 0x3b2   :  { %4012 = vmatpush1.bf16.msra.mxu1 %v6408_v13  ;;  %v3400_v13 = vrot.slane %v6882_v12, %v6826_v33 }
 0x3b3   :  { %4013 = vmatprep.subr.bf16.mxu1 %v6413_v14  ;;  %v3404_v14 = vrot.slane %v6882_v12, %v6830_v36 }
 0x3b6   :  { %4014 = vmatpush1.bf16.msra.mxu1 %v6411_v15 }
 0x3b7   :  { %4026 = vmatprep.subr.bf16.mxu1 %v6416_v17 }
 0x3b9   :  { %4016 = vmatmul.mubr.bf16.vlgmr.msra.gmra.mrb[28].mxu1 %v6816_v8  ;;  %v6429_v8 = vld [vmem:[#allocation6 + $0x808] ss:$48 sps:$4 sm:$0xff]  }
 0x3ba   :  { %4027 = vmatpush1.bf16.msra.mxu1 %v6414_v18  ;;  %4058 = vmatprep.mubr.bf16.mxu1 %v6717_v16 }
 0x3bb   :  { %4028 = vmatprep.subr.bf16.mxu1 %v6419_v19 }
 0x3be   :  { %4029 = vmatpush1.bf16.msra.mxu1 %v6417_v20 }
 0x3bf   :  { %4030 = vmatprep.subr.bf16.mxu1 %v6422_v21 }
 0x3c2   :  { %4031 = vmatpush1.bf16.msra.mxu1 %v6420_v22 }
 0x3c3   :  { %4032 = vmatprep.subr.bf16.mxu1 %v6425_v23 }
 0x3c6   :  { %4033 = vmatpush1.bf16.msra.mxu1 %v6423_v24 }
 0x3c7   :  { %4034 = vmatprep.subr.bf16.mxu1 %v6428_v25 }
 0x3ca   :  { %4035 = vmatpush1.bf16.msra.mxu1 %v6426_v26 }
 0x3cb   :  { %4036 = vmatprep.subr.bf16.mxu1 %v6431_v27 }
 0x3cc   :  { %v5597_v29 = vpop.f32.mrb[16].mxu1 }
 0x3cd   :  { %v5598_v16 = vpop.f32.mrb[17].mxu1 }
 0x3ce   :  { %v5599_v30 = vadd.f32 %v5598_v16, %v5597_v29  ;;  %4037 = vmatpush1.bf16.msra.mxu1 %v6429_v8  ;;  %v5600_v7 = vpop.f32.mrb[18].mxu1  ;;  %v6502_v8 = vld [vmem:[#allocation9 + $0x780] ss:$12 sps:$4 sm:$0xff]   ;;  %v6507_v29 = vld [vmem:[#allocation9 + $0x79c] ss:$12 sps:$4 sm:$0xff]  }
 0x3cf   :  { %v5601_v34 = vpop.f32.mrb[19].mxu1  ;;  %4038 = vmatprep.subr.bf16.mxu1 %v6434_v28  ;;  %v6530_v28 = vld [vmem:[#allocation9 + $0x788] ss:$12 sps:$4 sm:$0xff]   ;;  %v6534_v16 = vld [vmem:[#allocation9 + $0x860] ss:$12 sps:$4 sm:$0xff]  }
 0x3d0   :  { %v5602_v39 = vadd.f32 %v5601_v34, %v5600_v7  ;;  %v6510_v7 = vld [vmem:[#allocation9 + $0x7b4] ss:$12 sps:$4 sm:$0xff]   ;;  %v6540_v34 = vld [vmem:[#allocation9 + $0x7b8] ss:$12 sps:$4 sm:$0xff]  }
 0x3d2   :  { %4039 = vmatpush1.bf16.msra.mxu1 %v6432_v31  ;;  %v6539_v31 = vld [vmem:[#allocation9 + $0x878] ss:$12 sps:$4 sm:$0xff]  }
 0x3d3   :  { %4040 = vmatprep.subr.bf16.mxu1 %v6437_v38  ;;  %v6513_v38 = vld [vmem:[#allocation9 + $0x7cc] ss:$12 sps:$4 sm:$0xff]  }
 0x3d6   :  { %4041 = vmatpush1.bf16.msra.mxu1 %v6435_v41  ;;  %v6545_v41 = vld [vmem:[#allocation9 + $0x7d0] ss:$12 sps:$4 sm:$0xff]  }
 0x3d7   :  { %5625 = vmatprep.subr.bf16.mxu1 %v6465_v43  ;;  %v6549_v43 = vld [vmem:[#allocation9 + $0x8a8] ss:$12 sps:$4 sm:$0xff]  }
 0x3d9   :  { %4059 = vmatmul.mubr.bf16.vlgmr.msra.gmra.mrb[28].mxu1 %v6822_v44  ;;  %v6495_v44 = vld [vmem:[#allocation9 + $0x758] ss:$12 sps:$4 sm:$0xff]  }
 0x3da   :  { %5626 = vmatpush3.bf16.msra.mxu1 %v6466_v45  ;;  %v6514_v45 = vld [vmem:[#allocation9 + $0x7e0] ss:$12 sps:$4 sm:$0xff]  }
 0x3db   :  { %5627 = vmatprep.subr.bf16.mxu1 %v6470_v46  ;;  %v6550_v46 = vld [vmem:[#allocation9 + $0x7e8] ss:$12 sps:$4 sm:$0xff]  }
 0x3de   :  { %5628 = vmatpush3.bf16.msra.mxu1 %v6471_v48  ;;  %v6554_v48 = vld [vmem:[#allocation9 + $0x8c0] ss:$12 sps:$4 sm:$0xff]  }
 0x3df   :  { %5629 = vmatprep.subr.bf16.mxu1 %v6475_v49  ;;  %v6517_v49 = vld [vmem:[#allocation9 + $0x7f8] ss:$12 sps:$4 sm:$0xff]  }
 0x3e2   :  { %5630 = vmatpush3.bf16.msra.mxu1 %v6476_v52  ;;  %v6555_v52 = vld [vmem:[#allocation9 + $0x800] ss:$12 sps:$4 sm:$0xff]  }
 0x3e3   :  { %5631 = vmatprep.subr.bf16.mxu1 %v6480_v55  ;;  %v6522_v55 = vld [vmem:[#allocation9 + $0x814] ss:$12 sps:$4 sm:$0xff]  }
 0x3e6   :  { %5632 = vmatpush3.bf16.msra.mxu1 %v6481_v56  ;;  %v6559_v56 = vld [vmem:[#allocation9 + $0x8d8] ss:$12 sps:$4 sm:$0xff]  }
 0x3e7   :  { %5633 = vmatprep.subr.bf16.mxu1 %v6485_v54  ;;  %v6520_v54 = vld [vmem:[#allocation9 + $0x810] ss:$12 sps:$4 sm:$0xff]  }
 0x3ea   :  { %5634 = vmatpush3.bf16.msra.mxu1 %v6486_v57  ;;  %v6560_v57 = vld [vmem:[#allocation9 + $0x818] ss:$12 sps:$4 sm:$0xff]  }
 0x3eb   :  { %5635 = vmatprep.subr.bf16.mxu1 %v6490_v58  ;;  %v6525_v58 = vld [vmem:[#allocation9 + $0x82c] ss:$12 sps:$4 sm:$0xff]  }
 0x3ec   :  { %v5619_v60 = vpop.f32.mrb[20].mxu1 }
 0x3ed   :  { %v5620_v61 = vpop.f32.mrb[21].mxu1 }
 0x3ee   :  { %v5621_v62 = vadd.f32 %v5620_v61, %v5619_v60  ;;  %v5622_v63 = vpop.f32.mrb[22].mxu1  ;;  %5636 = vmatpush3.bf16.msra.mxu1 %v6491_v59  ;;  %v6564_v59 = vld [vmem:[#allocation9 + $0x8f0] ss:$12 sps:$4 sm:$0xff]  }
 0x3ef   :  { %v5623_v1 = vpop.f32.mrb[23].mxu1  ;;  %5637 = vmatprep.subr.bf16.mxu1 %v6495_v44  ;;  %v6523_v44 = vld [vmem:[#allocation9 + $0x828] ss:$12 sps:$4 sm:$0xff]   ;;  %v6565_v60 = vld [vmem:[#allocation9 + $0x830] ss:$12 sps:$4 sm:$0xff]  }
 0x3f0   :  { %v3275_v3 = vadd.f32 %v5621_v62, %v5599_v30  ;;  %v5624_v4 = vadd.f32 %v5623_v1, %v5622_v63  ;;  %v6535_v30 = vld [vmem:[#allocation9 + $0x7a0] ss:$12 sps:$4 sm:$0xff]   ;;  %v6528_v61 = vld [vmem:[#allocation9 + $0x844] ss:$12 sps:$4 sm:$0xff]   ;;  %v6533_v63 = vld [vmem:[#allocation9 + $0x85c] ss:$12 sps:$4 sm:$0xff]  }
 0x3f1   :  { %v6526_v62 = vld [vmem:[#allocation9 + $0x840] ss:$12 sps:$4 sm:$0xff]  }
 0x3f2   :  { %v6877_v5 = vadd.f32 %v3275_v3, %v6850_v51  ;;  %v3278_v6 = vadd.f32 %v5624_v4, %v5602_v39  ;;  %5638 = vmatpush3.bf16.msra.mxu1 %v6496_v0  ;;  %v6544_v39 = vld [vmem:[#allocation9 + $0x890] ss:$12 sps:$4 sm:$0xff]   ;;  %v6531_v0 = vld [vmem:[#allocation9 + $0x858] ss:$12 sps:$4 sm:$0xff]   ;;  %v6538_v1 = vld [vmem:[#allocation9 + $0x874] ss:$12 sps:$4 sm:$0xff]  }
 0x3f3   :  { %5639 = vmatprep.subr.bf16.mxu1 %v6500_v2  ;;  %v6536_v2 = vld [vmem:[#allocation9 + $0x870] ss:$12 sps:$4 sm:$0xff]   ;;  %v6543_v3 = vld [vmem:[#allocation9 + $0x88c] ss:$12 sps:$4 sm:$0xff]   ;;  %v6541_v4 = vld [vmem:[#allocation9 + $0x888] ss:$12 sps:$4 sm:$0xff]  }
 0x3f4   :  { %v6880_v10 = vadd.f32 %v3278_v6, %v6852_v53  ;;  %v6548_v6 = vld [vmem:[#allocation9 + $0x8a4] ss:$12 sps:$4 sm:$0xff]  }
 0x3f6   :  { %5640 = vmatpush3.bf16.msra.mxu1 %v6501_v9  ;;  %v6546_v9 = vld [vmem:[#allocation9 + $0x8a0] ss:$12 sps:$4 sm:$0xff]  }
 0x3f7   :  { %5647 = vmatprep.subr.bf16.mxu1 %v6529_v11  ;;  %v6553_v11 = vld [vmem:[#allocation9 + $0x8bc] ss:$12 sps:$4 sm:$0xff]  }
 0x44c   :  { %v3974_v51 = vpop.f32.mrb[24].mxu1 }
 0x44d   :  { %v5685_v15 = vadd.f32 %v3974_v51, %v3400_v13  ;;  %v3976_v17 = vpop.f32.mrb[25].mxu1  ;;  %v6556_v51 = vld [vmem:[#allocation9 + $0x8d0] ss:$12 sps:$4 sm:$0xff]  }
 0x44e   :  { %v5686_v18 = vadd.f32 %v3976_v17, %v3404_v14  ;;  %v3978_v19 = vpop.f32.mrb[26].mxu1  ;;  %v6561_v17 = vld [vmem:[#allocation9 + $0x8e8] ss:$12 sps:$4 sm:$0xff]  }
 0x44f   :  { %v5687_v20 = vadd.f32 %v3978_v19, %v3400_v13  ;;  %v3980_v21 = vpop.f32.mrb[27].mxu1  ;;  %v4069_v22 = vmax.f32 %v5685_v15, 0.0  ;;  %v6551_v13 = vld [vmem:[#allocation9 + $0x8b8] ss:$12 sps:$4 sm:$0xff]   ;;  %v3412_v19 = vrot.slane %v6882_v12, %v6832_v37 }
 0x450   :  { %v5688_v53 = vadd.f32 %v3980_v21, %v3404_v14  ;;  %v4070_v24 = vmax.f32 %v5686_v18, 0.0  ;;  %v6558_v14 = vld [vmem:[#allocation9 + $0x8d4] ss:$12 sps:$4 sm:$0xff]   ;;  %v6563_v15 = vld [vmem:[#allocation9 + $0x8ec] ss:$12 sps:$4 sm:$0xff]   ;;  %v3408_v18 = vrot.slane %v6882_v12, %v6828_v35 }
 0x451   :  { %v4073_v23 = vmax.f32 %v5687_v20, 0.0 }
 0x452   :  { %v4074_v25 = vmax.f32 %v5688_v53, 0.0 }
 0x453   :  { %v4205_v26 = vpack.c.bf16 %v4073_v23, %v4069_v22 }
 0x454   :  { %v4206_v27 = vpack.c.bf16 %v4074_v25, %v4070_v24 }
 0x456   :  { %4753 = vmatprep.mubr.bf16.mxu0 %v4206_v27  ;;  %4839 = vmatprep.mubr.bf16.mxu1 %v4206_v27 }
 0x457   :  { %4754 = vmatmul.mubr.bf16.vlgmr.msra.gmra.mrb[4].mxu0 %v4205_v26  ;;  %4840 = vmatmul.mubr.bf16.vlgmr.msra.gmra.mrb[32].mxu1 %v4205_v26 }
 0x458   :  { %4765 = vmatpush1.bf16.msra.mxu0 %v6502_v8  ;;  %5648 = vmatpush3.bf16.msra.mxu1 %v6530_v28 }
 0x459   :  { %4766 = vmatprep.subr.bf16.mxu0 %v6507_v29  ;;  %5649 = vmatprep.subr.bf16.mxu1 %v6534_v16 }
 0x45c   :  { %4767 = vmatpush1.bf16.msra.mxu0 %v6505_v50  ;;  %5650 = vmatpush3.bf16.msra.mxu1 %v6535_v30 }
 0x45d   :  { %4768 = vmatprep.subr.bf16.mxu0 %v6510_v7  ;;  %5651 = vmatprep.subr.bf16.mxu1 %v6539_v31 }
 0x460   :  { %4769 = vmatpush1.bf16.msra.mxu0 %v6508_v32  ;;  %5652 = vmatpush3.bf16.msra.mxu1 %v6540_v34  ;;  %v4913_v34 = vld [vmem:[#allocation11] sm:$0x7] }
 0x461   :  { %4770 = vmatprep.subr.bf16.mxu0 %v6513_v38  ;;  %5653 = vmatprep.subr.bf16.mxu1 %v6544_v39  ;;  %v4918_v38 = vrot.slane %v4913_v34, %v6826_v33  ;;  %v4922_v39 = vrot.slane %v4913_v34, %v6830_v36 }
 0x464   :  { %4771 = vmatpush1.bf16.msra.mxu0 %v6511_v40  ;;  %5654 = vmatpush3.bf16.msra.mxu1 %v6545_v41 }
 0x465   :  { %4772 = vmatprep.subr.bf16.mxu0 %v6516_v42  ;;  %5655 = vmatprep.subr.bf16.mxu1 %v6549_v43 }
 0x468   :  { %4773 = vmatpush1.bf16.msra.mxu0 %v6514_v45  ;;  %5656 = vmatpush3.bf16.msra.mxu1 %v6550_v46 }
 0x469   :  { %4774 = vmatprep.subr.bf16.mxu0 %v6519_v47  ;;  %5657 = vmatprep.subr.bf16.mxu1 %v6554_v48 }
 0x46c   :  { %4775 = vmatpush1.bf16.msra.mxu0 %v6517_v49  ;;  %5658 = vmatpush3.bf16.msra.mxu1 %v6555_v52 }
 0x46d   :  { %4776 = vmatprep.subr.bf16.mxu0 %v6522_v55  ;;  %5659 = vmatprep.subr.bf16.mxu1 %v6559_v56 }
 0x470   :  { %4777 = vmatpush1.bf16.msra.mxu0 %v6520_v54  ;;  %5660 = vmatpush3.bf16.msra.mxu1 %v6560_v57  ;;  %v4926_v54 = vrot.slane %v4913_v34, %v6828_v35 }
 0x471   :  { %4778 = vmatprep.subr.bf16.mxu0 %v6525_v58  ;;  %5661 = vmatprep.subr.bf16.mxu1 %v6564_v59 }
 0x474   :  { %4779 = vmatpush1.bf16.msra.mxu0 %v6523_v44  ;;  %5662 = vmatpush3.bf16.msra.mxu1 %v6565_v60 }
 0x475   :  { %4780 = vmatprep.subr.bf16.mxu0 %v6528_v61 }
 0x478   :  { %4781 = vmatpush1.bf16.msra.mxu0 %v6526_v62 }
 0x479   :  { %4782 = vmatprep.subr.bf16.mxu0 %v6533_v63 }
 0x47c   :  { %4783 = vmatpush1.bf16.msra.mxu0 %v6531_v0 }
 0x47d   :  { %4784 = vmatprep.subr.bf16.mxu0 %v6538_v1 }
 0x480   :  { %4785 = vmatpush1.bf16.msra.mxu0 %v6536_v2 }
 0x481   :  { %4786 = vmatprep.subr.bf16.mxu0 %v6543_v3 }
 0x484   :  { %4787 = vmatpush1.bf16.msra.mxu0 %v6541_v4 }
 0x485   :  { %4788 = vmatprep.subr.bf16.mxu0 %v6548_v6 }
 0x488   :  { %4789 = vmatpush1.bf16.msra.mxu0 %v6546_v9 }
 0x489   :  { %4790 = vmatprep.subr.bf16.mxu0 %v6553_v11 }
 0x48c   :  { %4791 = vmatpush1.bf16.msra.mxu0 %v6551_v13 }
 0x48d   :  { %4792 = vmatprep.subr.bf16.mxu0 %v6558_v14 }
 0x490   :  { %4793 = vmatpush1.bf16.msra.mxu0 %v6556_v51 }
 0x491   :  { %4794 = vmatprep.subr.bf16.mxu0 %v6563_v15 }
 0x494   :  { %4795 = vmatpush1.bf16.msra.mxu0 %v6561_v17 }
 0x4ac   :  { %v4060_v20 = vpop.f32.mrb[28].mxu1 }
 0x4ad   :  { %v5689_v21 = vadd.f32 %v4060_v20, %v3408_v18  ;;  %v4062_v53 = vpop.f32.mrb[29].mxu1 }
 0x4ae   :  { %v5690_v22 = vadd.f32 %v4062_v53, %v3412_v19  ;;  %v4064_v23 = vpop.f32.mrb[30].mxu1 }
 0x4af   :  { %v5691_v24 = vadd.f32 %v4064_v23, %v3408_v18  ;;  %v4066_v25 = vpop.f32.mrb[31].mxu1  ;;  %v4071_v27 = vmax.f32 %v5689_v21, 0.0 }
 0x4b0   :  { %v5692_v26 = vadd.f32 %v4066_v25, %v3412_v19  ;;  %v4072_v28 = vmax.f32 %v5690_v22, 0.0 }
 0x4b1   :  { %v4075_v8 = vmax.f32 %v5691_v24, 0.0 }
 0x4b2   :  { %v4076_v29 = vmax.f32 %v5692_v26, 0.0 }
 0x4b3   :  { %v4207_v16 = vpack.c.bf16 %v4075_v8, %v4071_v27 }
 0x4b4   :  { %v4208_v50 = vpack.c.bf16 %v4076_v29, %v4072_v28 }
 0x4b6   :  { %4796 = vmatprep.mubr.bf16.mxu0 %v4208_v50  ;;  %4880 = vmatprep.mubr.bf16.mxu1 %v4208_v50 }
 0x4b7   :  { %4797 = vmatmul.mubr.bf16.vlgmr.msra.gmra.mrb[4].mxu0 %v4207_v16  ;;  %4881 = vmatmul.mubr.bf16.vlgmr.msra.gmra.mrb[36].mxu1 %v4207_v16 }
 0x52a   :  { %v5641_v30 = vpop.f32.mrb[32].mxu1 }
 0x52b   :  { %v5642_v37 = vpop.f32.mrb[33].mxu1 }
 0x52c   :  { %v5643_v12 = vadd.f32 %v5642_v37, %v5641_v30  ;;  %v5644_v7 = vpop.f32.mrb[34].mxu1 }
 0x52d   :  { %v5645_v31 = vpop.f32.mrb[35].mxu1 }
 0x52e   :  { %v5646_v32 = vadd.f32 %v5645_v31, %v5644_v7 }
 0x58a   :  { %v4798_v40 = vpop.f32.mrb[4].mxu0  ;;  %v5663_v41 = vpop.f32.mrb[36].mxu1 }
 0x58b   :  { %v4930_v42 = vadd.f32 %v4918_v38, %v4798_v40  ;;  %v4800_v43 = vpop.f32.mrb[5].mxu0  ;;  %v5664_v45 = vpop.f32.mrb[37].mxu1 }
 0x58c   :  { %v4931_v46 = vadd.f32 %v4922_v39, %v4800_v43  ;;  %v5665_v47 = vadd.f32 %v5664_v45, %v5663_v41  ;;  %v4802_v48 = vpop.f32.mrb[6].mxu0  ;;  %v5666_v49 = vpop.f32.mrb[38].mxu1 }
 0x58d   :  { %4936 = vst [vmem:[#allocation12] sm:$0xff] %v4930_v42  ;;  %v4933_v52 = vadd.f32 %v4918_v38, %v4802_v48  ;;  %v4804_v55 = vpop.f32.mrb[7].mxu0  ;;  %v5667_v56 = vpop.f32.mrb[39].mxu1 }
 0x58e   :  { %4937 = vst [vmem:[#allocation12 + $0x8] sm:$0xff] %v4931_v46  ;;  %v4883_v57 = vadd.f32 %v5665_v47, %v5643_v12  ;;  %v4934_v33 = vadd.f32 %v4922_v39, %v4804_v55  ;;  %v5668_v58 = vadd.f32 %v5667_v56, %v5666_v49 }
 0x58f   :  { %4939 = vst [vmem:[#allocation12 + $0x18] sm:$0xff] %v4933_v52 }
 0x590   :  { %v4897_v36 = vadd.f32 %v4883_v57, %v6877_v5  ;;  %4940 = vst [vmem:[#allocation12 + $0x20] sm:$0xff] %v4934_v33  ;;  %v4886_v59 = vadd.f32 %v5668_v58, %v5646_v32 }
 0x592   :  { %v4932_v44 = vadd.f32 %v4926_v54, %v4897_v36  ;;  %v4900_v60 = vadd.f32 %v4886_v59, %v6880_v10 }
 0x594   :  { %4938 = vst [vmem:[#allocation12 + $0x10] sm:$0xff] %v4932_v44  ;;  %v4935_v61 = vadd.f32 %v4926_v54, %v4900_v60 }
 0x596   :  { %4941 = vst [vmem:[#allocation12 + $0x28] sm:$0xff] %v4935_v61 }
 0x597   :  { %6687 = shalt.err (!%p6684_p2)
}
 0x598   :  { %s6688_s10 = scalar_lea.hbm %s6917_s5, 768 }
 0x599   :  { %p6689_p3 = scmp.ne.s32.totalorder %s6917_s5, %s6688_s10  ;;  %p6692_p4 = scmp.lt.u32.totalorder %s6688_s10, %s6917_s5 }
 0x59b   :  { %p6694_p5 = pnand %p6692_p4, %p6689_p3 }
 0x59d   :  { %6697 = shalt.err (!%p6694_p5)
}
 0x59e   :  { %4953 = dma.vmem_to_hbm [thread:$0]  %s4948_s6, 768, %s6917_s5, [#allocation5], %s6713_s3, %s6713_s3, %s6714_s30  }
 0x59f   :  { %6704 = dma.done.wait [#allocation5], 768  }
 0x5a0   :  { %6705 = vsyncadd [#allocation5], 4294966528 }
 0x5a1   :  { %4957 = vsyncpa [#allocation4], 1 }
 0x5a2   :  { %4958 = vsyncpa [#allocation7], 1 }
 0x5a3   :  { %4959 = vsyncpa [#allocation10], 1 }
 0x5a4   :  { %4960 = vsyncpa [#allocation5], 1 }

</bundles_post_ra>
